<compile_context>
chip_gen: v7x
topology: tpu7x:2x2x1
jax: 0.10.0
libtpu: 0.0.40
codegen_flags: <defaults>
</compile_context>

<pallas_src>
import math
import functools

import jax
import jax.numpy as jnp
from jax import lax
from jax.experimental import pallas as pl
from jax.experimental.pallas import tpu as pltpu


def _gelu_exact(x):
    # matches torch.nn.functional.gelu default (erf-based); computed in f32
    return 0.5 * x * (1.0 + lax.erf(x * (1.0 / math.sqrt(2.0))))


def _layernorm(x, gamma, beta, eps=1e-5):
    mean = jnp.mean(x, axis=-1, keepdims=True)
    var = jnp.mean(jnp.square(x - mean), axis=-1, keepdims=True)
    return (x - mean) * lax.rsqrt(var + eps) * gamma + beta


def encoder_layer_kernel(
    x_ref,
    wqkv_ref, bqkv_ref, wo_ref, bo_ref,
    g1_ref, be1_ref, g2_ref, be2_ref,
    w1_ref, b1_ref, w2_ref, b2_ref,
    y_ref, *maybe_attn_ref,
    num_heads, head_dim, mxu_dtype, approx_recip, ff_chunk, return_attn,
):
    H, D = num_heads, head_dim
    Bt, S, E = x_ref.shape                      # static block shape

    # (Bt, S, E) -> (Bt*S, E) slab: big M dimension for all dense matmuls
    x = x_ref[...].reshape(Bt * S, E)           # f32 residual stream

    # ---- sub-layer 1: pre-LN -> fused QKV -> multi-head attention -> residual ----
    xn = _layernorm(x, g1_ref[0], be1_ref[0])   # f32 VPU math
    # 1/sqrt(d_k) is already folded into the Wq / bq columns of the packed wqkv.
    qkv = jnp.dot(xn.astype(mxu_dtype), wqkv_ref[...],
                  preferred_element_type=jnp.float32) + bqkv_ref[0]      # (Bt*S, 3E) f32
    qkv3 = qkv.reshape(Bt, S, 3 * E)            # leading-dim split only; lane dim unchanged

    attn_ref = maybe_attn_ref[0] if return_attn else None
    attn_out = None
    for h in range(H):                          # short static loop over heads
        q_h = qkv3[:, :, h * D:(h + 1) * D].astype(mxu_dtype)            # (Bt, S, D)
        k_h = qkv3[:, :, E + h * D:E + (h + 1) * D].astype(mxu_dtype)
        v_h = qkv3[:, :, 2 * E + h * D:2 * E + (h + 1) * D].astype(mxu_dtype)

        # one batched MXU call over the whole batch tile per attention matmul
        s_h = jnp.einsum('bqd,bkd->bqk', q_h, k_h,
                         preferred_element_type=jnp.float32)             # (Bt, S, S) f32
        s_h = s_h - jnp.max(s_h, axis=-1, keepdims=True)
        e_h = jnp.exp(s_h)
        d_h = jnp.sum(e_h, axis=-1, keepdims=True)
        if approx_recip:
            a_h = e_h * pl.reciprocal(d_h, approx=True)   # EUP slot; VALU stays free
        else:
            a_h = e_h / d_h                               # exact path for tight validation

        if return_attn:
            attn_ref[:, h] = a_h.astype(attn_ref.dtype)   # dense (Bt,S,S) store per head

        ctx_h = jnp.einsum('bqk,bkd->bqd', a_h.astype(mxu_dtype), v_h,
                           preferred_element_type=jnp.float32)           # (Bt, S, D) f32
        # Feed the head context straight into the output projection (no ctx scratch,
        # no D-wide masked stores): accumulate partial products against Wo's row slice.
        part = jnp.dot(ctx_h.reshape(Bt * S, D).astype(mxu_dtype),
                       wo_ref[h * D:(h + 1) * D, :],
                       preferred_element_type=jnp.float32)               # (Bt*S, E) f32
        attn_out = part if attn_out is None else attn_out + part

    x1 = x + attn_out + bo_ref[0]               # residual in f32

    # ---- sub-layer 2: pre-LN -> position-wise FFN (erf-GELU) -> residual ----
    x1n = _layernorm(x1, g2_ref[0], be2_ref[0]).astype(mxu_dtype)
    Fdim = w1_ref.shape[1]
    n_chunks = max(1, Fdim // ff_chunk)
    if n_chunks == 1:
        h1 = _gelu_exact(jnp.dot(x1n, w1_ref[...],
                                 preferred_element_type=jnp.float32) + b1_ref[0])
        ff = jnp.dot(h1.astype(mxu_dtype), w2_ref[...],
                     preferred_element_type=jnp.float32)
    else:
        # chunk the hidden dim so a full (Bt*S, F) f32 intermediate never materializes
        ff = None
        for c in range(n_chunks):
            c0 = c * ff_chunk
            h1 = _gelu_exact(
                jnp.dot(x1n, w1_ref[:, c0:c0 + ff_chunk],
                        preferred_element_type=jnp.float32) + b1_ref[0, c0:c0 + ff_chunk])
            part = jnp.dot(h1.astype(mxu_dtype), w2_ref[c0:c0 + ff_chunk, :],
                           preferred_element_type=jnp.float32)
            ff = part if ff is None else ff + part
    y_ref[...] = (x1 + ff + b2_ref[0]).reshape(Bt, S, E)


def transformer_encoder_layer(x, params, num_heads, *, precise=False, block_b=None,
                              return_attn_weights=True, attn_dtype=jnp.float32):
    B, S, E = x.shape
    Fdim = params["w1"].shape[1]
    H = num_heads
    assert E % H == 0
    D = E // H
    mxu_dtype = jnp.float32 if precise else jnp.bfloat16
    wdt = mxu_dtype
    mxu_bytes = jnp.dtype(mxu_dtype).itemsize
    attn_bytes = jnp.dtype(attn_dtype).itemsize

    # ---- generation-aware VMEM budget (v5e/v6e: 128 MiB, v7x: 64 MiB physical) ----
    try:
        vmem_cap = int(pltpu.get_tpu_info().vmem_capacity_bytes)
    except Exception:
        vmem_cap = 64 * 1024 * 1024                     # conservative (v7x-sized) fallback
    vmem_budget = int(vmem_cap * 0.82)                  # leave compiler-internal scratch headroom

    weight_bytes = (E * 3 * E + E * E + E * Fdim + Fdim * E) * jnp.dtype(wdt).itemsize
    bias_bytes = (3 * E + E + 4 * E + Fdim + E) * 4

    def est_vmem(bb, fc):
        n_x = bb * S * E
        need = 4 * n_x * 4                              # x-in + y-out blocks (double-buffered)
        if return_attn_weights:
            need += 2 * bb * H * S * S * attn_bytes     # attention-weights output blocks
        need += 2 * (weight_bytes + bias_bytes)         # weights (counted double-buffered: worst case)
        need += 4 * n_x * 4                             # x / xn / x1 / attn_out f32 residency
        need += bb * S * 3 * E * 4                      # fused qkv activations
        need += 2 * bb * S * S * 4 + 3 * bb * S * D * mxu_bytes  # per-head scores/softmax + q/k/v
        need += bb * S * fc * 4                         # FFN hidden chunk
        return need

    def pick_ff_chunk(bb):
        fc = Fdim
        while fc > 128 and fc % 2 == 0 and est_vmem(bb, fc) > vmem_budget:
            fc //= 2
        return fc

    if block_b is None:
        divs = sorted({d for d in range(1, B + 1) if B % d == 0}, reverse=True)
        cands = []
        for bb in divs:
            g = B // bb
            if B > 1 and g < 2:
                continue                                # keep >=2 grid steps (pipeline / both v7x TCs)
            fc = pick_ff_chunk(bb)
            if est_vmem(bb, fc) <= vmem_budget:
                cands.append((bb, fc, g))
        if not cands:
            cands = [(1, pick_ff_chunk(1), B)]
        even = [c for c in cands if c[2] % 2 == 0]      # even grid: both v7x TensorCores busy
        pref = even if even else cands
        big = [c for c in pref if c[0] * S >= 256]      # fill the 256-wide MXU on v6e/v7x
        block_b, ff_chunk, _ = (big or pref)[0]
    else:
        assert B % block_b == 0
        ff_chunk = pick_ff_chunk(block_b)
    grid = (B // block_b,)

    need = est_vmem(block_b, ff_chunk)
    vmem_limit = int(min(vmem_budget, max(32 * 1024 * 1024, int(need * 1.5))))

    # ---- pack weights in the MXU dtype (halves weight DMA + VMEM for bf16) ----
    # 1/sqrt(d_k) folded into Wq / bq columns (zero in-kernel cost, exact algebraic rewrite).
    # TODO(synk): on v7x, fp8 weight storage (+ per-channel scales) would halve weight VMEM again.
    inv_sqrt_dk = 1.0 / math.sqrt(D)
    wqkv = jnp.concatenate(
        [params["wq"] * inv_sqrt_dk, params["wk"], params["wv"]], axis=1).astype(wdt)
    bqkv = jnp.concatenate(
        [params["bq"] * inv_sqrt_dk, params["bk"], params["bv"]], axis=1).astype(jnp.float32)
    wo = params["wo"].astype(wdt)
    w1 = params["w1"].astype(wdt)
    w2 = params["w2"].astype(wdt)

    kernel = functools.partial(
        encoder_layer_kernel,
        num_heads=H, head_dim=D, mxu_dtype=mxu_dtype,
        approx_recip=not precise, ff_chunk=ff_chunk,
        return_attn=return_attn_weights,
    )

    Buffered = getattr(pl, "Buffered", None)

    def build(single_buffer_weights):
        wmode = Buffered(1) if (single_buffer_weights and Buffered is not None) else None

        def wspec(shape):
            if wmode is not None:
                return pl.BlockSpec(shape, lambda b: (0,) * len(shape), pipeline_mode=wmode)
            return pl.BlockSpec(shape, lambda b: (0,) * len(shape))

        in_specs = [
            pl.BlockSpec((block_b, S, E), lambda b: (b, 0, 0)),    # x
            wspec((E, 3 * E)), wspec((1, 3 * E)),                  # fused Wqkv, bqkv
            wspec((E, E)), wspec((1, E)),                          # wo, bo
            wspec((1, E)), wspec((1, E)),                          # gamma1, beta1
            wspec((1, E)), wspec((1, E)),                          # gamma2, beta2
            wspec((E, Fdim)), wspec((1, Fdim)),                    # w1, b1
            wspec((Fdim, E)), wspec((1, E)),                       # w2, b2
        ]
        out_specs = [pl.BlockSpec((block_b, S, E), lambda b: (b, 0, 0))]
        out_shape = [jax.ShapeDtypeStruct((B, S, E), jnp.float32)]
        if return_attn_weights:
            out_specs.append(pl.BlockSpec((block_b, H, S, S), lambda b: (b, 0, 0, 0)))
            out_shape.append(jax.ShapeDtypeStruct((B, H, S, S), attn_dtype))

        return pl.pallas_call(
            kernel,
            out_shape=tuple(out_shape) if return_attn_weights else out_shape[0],
            grid_spec=pltpu.PrefetchScalarGridSpec(
                num_scalar_prefetch=0,
                grid=grid,
                in_specs=in_specs,
                out_specs=out_specs if return_attn_weights else out_specs[0],
            ),
            compiler_params=pltpu.CompilerParams(
                dimension_semantics=("parallel",),
                vmem_limit_bytes=vmem_limit,
            ),
        )

    args = (x, wqkv, bqkv, wo, params["bo"], params["g1"], params["be1"],
            params["g2"], params["be2"], w1, params["b1"], w2, params["b2"])
    try:
        # grid-invariant weights: request single-buffering of their VMEM copies
        return build(True)(*args)
    except Exception:
        # stricter / older jax builds may reject pipeline_mode=Buffered(1): fall back
        return build(False)(*args)


# ----------------------------- pure-JAX reference -----------------------------
def reference(x, params, num_heads):
    B, S, E = x.shape
    D = E // num_heads

    def ln(t, g, b):
        m = t.mean(-1, keepdims=True)
        v = ((t - m) ** 2).mean(-1, keepdims=True)
        return (t - m) / jnp.sqrt(v + 1e-5) * g + b

    xn = ln(x, params["g1"][0], params["be1"][0])
    q = xn @ params["wq"] + params["bq"][0]
    k = xn @ params["wk"] + params["bk"][0]
    v = xn @ params["wv"] + params["bv"][0]
    q = q.reshape(B, S, num_heads, D).transpose(0, 2, 1, 3)
    k = k.reshape(B, S, num_heads, D).transpose(0, 2, 1, 3)
    v = v.reshape(B, S, num_heads, D).transpose(0, 2, 1, 3)
    scores = jnp.einsum("bhqd,bhkd->bhqk", q, k) / math.sqrt(D)
    attn = jax.nn.softmax(scores, axis=-1)
    out = jnp.einsum("bhqk,bhkd->bhqd", attn, v)
    out = out.transpose(0, 2, 1, 3).reshape(B, S, E)
    out = out @ params["wo"] + params["bo"][0]
    x1 = x + out
    x1n = ln(x1, params["g2"][0], params["be2"][0])
    ff = jax.nn.gelu(x1n @ params["w1"] + params["b1"][0], approximate=False)
    ff = ff @ params["w2"] + params["b2"][0]
    return x1 + ff, attn


# ----------------------------------- main -----------------------------------
if __name__ == "__main__":
    B, S, E, H, FF = 4, 8, 32, 4, 64

    key = jax.random.PRNGKey(0)
    ks = jax.random.split(key, 13)

    def lin(kk, fan_in, fan_out):
        # weight stored already transposed: (in, out), so kernel does x @ W + b
        return jax.random.normal(kk, (fan_in, fan_out), jnp.float32) / math.sqrt(fan_in)

    params = {
        "wq": lin(ks[0], E, E), "bq": jax.random.normal(ks[1], (1, E), jnp.float32) * 0.02,
        "wk": lin(ks[2], E, E), "bk": jax.random.normal(ks[3], (1, E), jnp.float32) * 0.02,
        "wv": lin(ks[4], E, E), "bv": jax.random.normal(ks[5], (1, E), jnp.float32) * 0.02,
        "wo": lin(ks[6], E, E), "bo": jax.random.normal(ks[7], (1, E), jnp.float32) * 0.02,
        "g1": jnp.ones((1, E), jnp.float32), "be1": jnp.zeros((1, E), jnp.float32),
        "g2": jnp.ones((1, E), jnp.float32), "be2": jnp.zeros((1, E), jnp.float32),
        "w1": lin(ks[8], E, FF), "b1": jax.random.normal(ks[9], (1, FF), jnp.float32) * 0.02,
        "w2": lin(ks[10], FF, E), "b2": jax.random.normal(ks[11], (1, E), jnp.float32) * 0.02,
    }

    x = jax.random.normal(ks[12], (B, S, E), jnp.float32)

    # full-f32 reference (avoid XLA's default bf16 matmul truncation on TPU)
    with jax.default_matmul_precision("highest"):
        y_gold, attn_gold = reference(x, params, num_heads=H)
    y_gold = jax.block_until_ready(y_gold)

    # precise path (f32 MXU inputs, exact softmax divide)
    y32, a32 = transformer_encoder_layer(x, params, num_heads=H, precise=True)
    y32 = jax.block_until_ready(y32)
    a32 = jax.block_until_ready(a32)
    assert jnp.allclose(y32, y_gold, atol=1e-2, rtol=1e-2), "f32 output mismatch"
    assert jnp.max(jnp.abs(a32 - attn_gold)) < 1e-2, "f32 attn mismatch"

    # fast path (bf16 MXU inputs + approx-reciprocal softmax): loose check
    ybf, abf = transformer_encoder_layer(x, params, num_heads=H, precise=False)
    ybf = jax.block_until_ready(ybf)
    abf = jax.block_until_ready(abf)
    rel = jnp.linalg.norm(ybf - y_gold) / jnp.linalg.norm(y_gold)
    assert rel < 3e-2, f"bf16 output relative error too large: {rel}"
    assert jnp.max(jnp.abs(abf - attn_gold)) < 5e-2, "bf16 attn mismatch"

    # attention-weights-free path (drops the O(S^2) HBM writeback entirely)
    y_only = transformer_encoder_layer(x, params, num_heads=H, precise=True,
                                       return_attn_weights=False)
    y_only = jax.block_until_ready(y_only)
    assert jnp.allclose(y_only, y_gold, atol=1e-2, rtol=1e-2), "no-attn-output path mismatch"

    print("KERNEL_OK")
</pallas_src>

<mosaic_0001>
module attributes {stable_mosaic.version = 11 : i64} {
  func.func @encoder_layer_kernel(%arg0: i32, %arg1: memref<2x8x32xf32, #tpu.memory_space<vmem>>, %arg2: memref<32x96xf32, #tpu.memory_space<vmem>>, %arg3: memref<1x96xf32, #tpu.memory_space<vmem>>, %arg4: memref<32x32xf32, #tpu.memory_space<vmem>>, %arg5: memref<1x32xf32, #tpu.memory_space<vmem>>, %arg6: memref<1x32xf32, #tpu.memory_space<vmem>>, %arg7: memref<1x32xf32, #tpu.memory_space<vmem>>, %arg8: memref<1x32xf32, #tpu.memory_space<vmem>>, %arg9: memref<1x32xf32, #tpu.memory_space<vmem>>, %arg10: memref<32x64xf32, #tpu.memory_space<vmem>>, %arg11: memref<1x64xf32, #tpu.memory_space<vmem>>, %arg12: memref<64x32xf32, #tpu.memory_space<vmem>>, %arg13: memref<1x32xf32, #tpu.memory_space<vmem>>, %arg14: memref<2x8x32xf32, #tpu.memory_space<vmem>>, %arg15: memref<2x4x8x8xf32, #tpu.memory_space<vmem>>) attributes {dimension_semantics = [#tpu.dimension_semantics<parallel>], iteration_bounds = array<i64: 2>, scalar_prefetch = 0 : i64, scratch_operands = 0 : i64, tpu.core_type = #tpu.core_type<tc>, window_params = [{transform_indices = @transform_0, window_bounds = array<i64: 2, 8, 32>}, {pipeline_mode = #tpu.pipeline_mode<synchronous>, transform_indices = @transform_1, window_bounds = array<i64: 32, 96>}, {pipeline_mode = #tpu.pipeline_mode<synchronous>, transform_indices = @transform_2, window_bounds = array<i64: 1, 96>}, {pipeline_mode = #tpu.pipeline_mode<synchronous>, transform_indices = @transform_3, window_bounds = array<i64: 32, 32>}, {pipeline_mode = #tpu.pipeline_mode<synchronous>, transform_indices = @transform_4, window_bounds = array<i64: 1, 32>}, {pipeline_mode = #tpu.pipeline_mode<synchronous>, transform_indices = @transform_5, window_bounds = array<i64: 1, 32>}, {pipeline_mode = #tpu.pipeline_mode<synchronous>, transform_indices = @transform_6, window_bounds = array<i64: 1, 32>}, {pipeline_mode = #tpu.pipeline_mode<synchronous>, transform_indices = @transform_7, window_bounds = array<i64: 1, 32>}, {pipeline_mode = #tpu.pipeline_mode<synchronous>, transform_indices = @transform_8, window_bounds = array<i64: 1, 32>}, {pipeline_mode = #tpu.pipeline_mode<synchronous>, transform_indices = @transform_9, window_bounds = array<i64: 32, 64>}, {pipeline_mode = #tpu.pipeline_mode<synchronous>, transform_indices = @transform_10, window_bounds = array<i64: 1, 64>}, {pipeline_mode = #tpu.pipeline_mode<synchronous>, transform_indices = @transform_11, window_bounds = array<i64: 64, 32>}, {pipeline_mode = #tpu.pipeline_mode<synchronous>, transform_indices = @transform_12, window_bounds = array<i64: 1, 32>}, {transform_indices = @transform_13, window_bounds = array<i64: 2, 8, 32>}, {transform_indices = @transform_14, window_bounds = array<i64: 2, 4, 8, 8>}]} {
    %c0 = arith.constant 0 : index
    %c0_0 = arith.constant 0 : index
    %c0_1 = arith.constant 0 : index
    %0 = vector.load %arg1[%c0, %c0_0, %c0_1] : memref<2x8x32xf32, #tpu.memory_space<vmem>>, vector<2x8x32xf32>
    %1 = vector.shape_cast %0 : vector<2x8x32xf32> to vector<16x32xf32>
    %c0_2 = arith.constant 0 : index
    %c0_3 = arith.constant 0 : index
    %2 = vector.load %arg6[%c0_2, %c0_3] : memref<1x32xf32, #tpu.memory_space<vmem>>, vector<1x32xf32>
    %3 = vector.shape_cast %2 : vector<1x32xf32> to vector<32xf32>
    %c0_4 = arith.constant 0 : index
    %c0_5 = arith.constant 0 : index
    %4 = vector.load %arg7[%c0_4, %c0_5] : memref<1x32xf32, #tpu.memory_space<vmem>>, vector<1x32xf32>
    %5 = vector.shape_cast %4 : vector<1x32xf32> to vector<32xf32>
    %cst = arith.constant dense<0.000000e+00> : vector<16xf32>
    %6 = vector.multi_reduction <add>, %1, %cst [1] : vector<16x32xf32> to vector<16xf32>
    %7 = vector.shape_cast %6 : vector<16xf32> to vector<16x1xf32>
    %cst_6 = arith.constant 3.200000e+01 : f32
    %8 = vector.broadcast %cst_6 : f32 to vector<16x1xf32>
    %9 = arith.divf %7, %8 : vector<16x1xf32>
    %10 = vector.broadcast %9 : vector<16x1xf32> to vector<16x32xf32>
    %11 = arith.subf %1, %10 : vector<16x32xf32>
    %12 = arith.mulf %11, %11 : vector<16x32xf32>
    %cst_7 = arith.constant dense<0.000000e+00> : vector<16xf32>
    %13 = vector.multi_reduction <add>, %12, %cst_7 [1] : vector<16x32xf32> to vector<16xf32>
    %14 = vector.shape_cast %13 : vector<16xf32> to vector<16x1xf32>
    %cst_8 = arith.constant 3.200000e+01 : f32
    %15 = vector.broadcast %cst_8 : f32 to vector<16x1xf32>
    %16 = arith.divf %14, %15 : vector<16x1xf32>
    %17 = vector.broadcast %9 : vector<16x1xf32> to vector<16x32xf32>
    %18 = arith.subf %1, %17 : vector<16x32xf32>
    %cst_9 = arith.constant 9.99999974E-6 : f32
    %19 = vector.broadcast %cst_9 : f32 to vector<16x1xf32>
    %20 = arith.addf %16, %19 : vector<16x1xf32>
    %21 = math.rsqrt %20 : vector<16x1xf32>
    %22 = vector.broadcast %21 : vector<16x1xf32> to vector<16x32xf32>
    %23 = arith.mulf %18, %22 : vector<16x32xf32>
    %24 = vector.shape_cast %3 : vector<32xf32> to vector<1x32xf32>
    %25 = vector.broadcast %24 : vector<1x32xf32> to vector<16x32xf32>
    %26 = arith.mulf %23, %25 : vector<16x32xf32>
    %27 = vector.shape_cast %5 : vector<32xf32> to vector<1x32xf32>
    %28 = vector.broadcast %27 : vector<1x32xf32> to vector<16x32xf32>
    %29 = arith.addf %26, %28 : vector<16x32xf32>
    %c0_10 = arith.constant 0 : index
    %c0_11 = arith.constant 0 : index
    %30 = vector.load %arg2[%c0_10, %c0_11] : memref<32x96xf32, #tpu.memory_space<vmem>>, vector<32x96xf32>
    %cst_12 = arith.constant dense<0.000000e+00> : vector<16x96xf32>
    %31 = tpu.matmul %29, %30, %cst_12 {dimension_numbers = #tpu.dot_dimension_numbers<[1], [0], [0], [1], [0, 0, 1, 1], [], []>} : vector<16x32xf32>, vector<32x96xf32>, vector<16x96xf32> -> vector<16x96xf32>
    %c0_13 = arith.constant 0 : index
    %c0_14 = arith.constant 0 : index
    %32 = vector.load %arg3[%c0_13, %c0_14] : memref<1x96xf32, #tpu.memory_space<vmem>>, vector<1x96xf32>
    %33 = vector.shape_cast %32 : vector<1x96xf32> to vector<96xf32>
    %34 = vector.shape_cast %33 : vector<96xf32> to vector<1x96xf32>
    %35 = vector.broadcast %34 : vector<1x96xf32> to vector<16x96xf32>
    %36 = arith.addf %31, %35 : vector<16x96xf32>
    %37 = vector.shape_cast %36 : vector<16x96xf32> to vector<2x8x96xf32>
    %38 = vector.extract_strided_slice %37 {offsets = [0, 0, 0], sizes = [2, 8, 8], strides = [1, 1, 1]} : vector<2x8x96xf32> to vector<2x8x8xf32>
    %39 = vector.extract_strided_slice %37 {offsets = [0, 0, 32], sizes = [2, 8, 8], strides = [1, 1, 1]} : vector<2x8x96xf32> to vector<2x8x8xf32>
    %40 = vector.extract_strided_slice %37 {offsets = [0, 0, 64], sizes = [2, 8, 8], strides = [1, 1, 1]} : vector<2x8x96xf32> to vector<2x8x8xf32>
    "tpu.trace_start"() <{level = 10 : i32, message = "bqd,bkd->bqk"}> : () -> ()
    %cst_15 = arith.constant dense<0.000000e+00> : vector<2x8x8xf32>
    %41 = tpu.matmul %38, %39, %cst_15 {dimension_numbers = #tpu.dot_dimension_numbers<[2], [2], [1], [1], [0, 0, 0, 1, 1, 1], [0], [0]>} : vector<2x8x8xf32>, vector<2x8x8xf32>, vector<2x8x8xf32> -> vector<2x8x8xf32>
    "tpu.trace_stop"() : () -> ()
    %cst_16 = arith.constant dense<0xFF800000> : vector<2x8xf32>
    %42 = vector.multi_reduction <maximumf>, %41, %cst_16 [2] : vector<2x8x8xf32> to vector<2x8xf32>
    %43 = vector.shape_cast %42 : vector<2x8xf32> to vector<2x8x1xf32>
    %44 = vector.broadcast %43 : vector<2x8x1xf32> to vector<2x8x8xf32>
    %45 = arith.subf %41, %44 : vector<2x8x8xf32>
    %46 = math.exp %45 : vector<2x8x8xf32>
    %cst_17 = arith.constant dense<0.000000e+00> : vector<2x8xf32>
    %47 = vector.multi_reduction <add>, %46, %cst_17 [2] : vector<2x8x8xf32> to vector<2x8xf32>
    %48 = vector.shape_cast %47 : vector<2x8xf32> to vector<2x8x1xf32>
    %49 = vector.broadcast %48 : vector<2x8x1xf32> to vector<2x8x8xf32>
    %50 = arith.divf %46, %49 : vector<2x8x8xf32>
    %c0_18 = arith.constant 0 : index
    %c0_19 = arith.constant 0 : index
    %c0_20 = arith.constant 0 : index
    %c0_21 = arith.constant 0 : index
    %51 = vector.load %arg15[%c0_18, %c0_19, %c0_20, %c0_21] : memref<2x4x8x8xf32, #tpu.memory_space<vmem>>, vector<2x1x8x8xf32>
    %52 = vector.shape_cast %51 : vector<2x1x8x8xf32> to vector<2x8x8xf32>
    %53 = vector.shape_cast %50 : vector<2x8x8xf32> to vector<2x1x8x8xf32>
    tpu.vector_store %arg15[%c0_18, %c0_19, %c0_20, %c0_21], %53 {strides = array<i32>} : memref<2x4x8x8xf32, #tpu.memory_space<vmem>>, vector<2x1x8x8xf32>,
    "tpu.trace_start"() <{level = 10 : i32, message = "bqk,bkd->bqd"}> : () -> ()
    %cst_22 = arith.constant dense<0.000000e+00> : vector<2x8x8xf32>
    %54 = tpu.matmul %50, %40, %cst_22 {dimension_numbers = #tpu.dot_dimension_numbers<[2], [1], [1], [2], [0, 0, 0, 1, 1, 2], [0], [0]>} : vector<2x8x8xf32>, vector<2x8x8xf32>, vector<2x8x8xf32> -> vector<2x8x8xf32>
    "tpu.trace_stop"() : () -> ()
    %55 = vector.shape_cast %54 : vector<2x8x8xf32> to vector<16x8xf32>
    %c0_23 = arith.constant 0 : index
    %c0_24 = arith.constant 0 : index
    %56 = vector.load %arg4[%c0_23, %c0_24] : memref<32x32xf32, #tpu.memory_space<vmem>>, vector<8x32xf32>
    %cst_25 = arith.constant dense<0.000000e+00> : vector<16x32xf32>
    %57 = tpu.matmul %55, %56, %cst_25 {dimension_numbers = #tpu.dot_dimension_numbers<[1], [0], [0], [1], [0, 0, 1, 1], [], []>} : vector<16x8xf32>, vector<8x32xf32>, vector<16x32xf32> -> vector<16x32xf32>
    %58 = vector.extract_strided_slice %37 {offsets = [0, 0, 8], sizes = [2, 8, 8], strides = [1, 1, 1]} : vector<2x8x96xf32> to vector<2x8x8xf32>
    %59 = vector.extract_strided_slice %37 {offsets = [0, 0, 40], sizes = [2, 8, 8], strides = [1, 1, 1]} : vector<2x8x96xf32> to vector<2x8x8xf32>
    %60 = vector.extract_strided_slice %37 {offsets = [0, 0, 72], sizes = [2, 8, 8], strides = [1, 1, 1]} : vector<2x8x96xf32> to vector<2x8x8xf32>
    "tpu.trace_start"() <{level = 10 : i32, message = "bqd,bkd->bqk"}> : () -> ()
    %cst_26 = arith.constant dense<0.000000e+00> : vector<2x8x8xf32>
    %61 = tpu.matmul %58, %59, %cst_26 {dimension_numbers = #tpu.dot_dimension_numbers<[2], [2], [1], [1], [0, 0, 0, 1, 1, 1], [0], [0]>} : vector<2x8x8xf32>, vector<2x8x8xf32>, vector<2x8x8xf32> -> vector<2x8x8xf32>
    "tpu.trace_stop"() : () -> ()
    %cst_27 = arith.constant dense<0xFF800000> : vector<2x8xf32>
    %62 = vector.multi_reduction <maximumf>, %61, %cst_27 [2] : vector<2x8x8xf32> to vector<2x8xf32>
    %63 = vector.shape_cast %62 : vector<2x8xf32> to vector<2x8x1xf32>
    %64 = vector.broadcast %63 : vector<2x8x1xf32> to vector<2x8x8xf32>
    %65 = arith.subf %61, %64 : vector<2x8x8xf32>
    %66 = math.exp %65 : vector<2x8x8xf32>
    %cst_28 = arith.constant dense<0.000000e+00> : vector<2x8xf32>
    %67 = vector.multi_reduction <add>, %66, %cst_28 [2] : vector<2x8x8xf32> to vector<2x8xf32>
    %68 = vector.shape_cast %67 : vector<2x8xf32> to vector<2x8x1xf32>
    %69 = vector.broadcast %68 : vector<2x8x1xf32> to vector<2x8x8xf32>
    %70 = arith.divf %66, %69 : vector<2x8x8xf32>
    %c0_29 = arith.constant 0 : index
    %c1 = arith.constant 1 : index
    %c0_30 = arith.constant 0 : index
    %c0_31 = arith.constant 0 : index
    %71 = vector.load %arg15[%c0_29, %c1, %c0_30, %c0_31] : memref<2x4x8x8xf32, #tpu.memory_space<vmem>>, vector<2x1x8x8xf32>
    %72 = vector.shape_cast %71 : vector<2x1x8x8xf32> to vector<2x8x8xf32>
    %73 = vector.shape_cast %70 : vector<2x8x8xf32> to vector<2x1x8x8xf32>
    tpu.vector_store %arg15[%c0_29, %c1, %c0_30, %c0_31], %73 {strides = array<i32>} : memref<2x4x8x8xf32, #tpu.memory_space<vmem>>, vector<2x1x8x8xf32>,
    "tpu.trace_start"() <{level = 10 : i32, message = "bqk,bkd->bqd"}> : () -> ()
    %cst_32 = arith.constant dense<0.000000e+00> : vector<2x8x8xf32>
    %74 = tpu.matmul %70, %60, %cst_32 {dimension_numbers = #tpu.dot_dimension_numbers<[2], [1], [1], [2], [0, 0, 0, 1, 1, 2], [0], [0]>} : vector<2x8x8xf32>, vector<2x8x8xf32>, vector<2x8x8xf32> -> vector<2x8x8xf32>
    "tpu.trace_stop"() : () -> ()
    %75 = vector.shape_cast %74 : vector<2x8x8xf32> to vector<16x8xf32>
    %c8 = arith.constant 8 : index
    %c0_33 = arith.constant 0 : index
    %76 = vector.load %arg4[%c8, %c0_33] : memref<32x32xf32, #tpu.memory_space<vmem>>, vector<8x32xf32>
    %cst_34 = arith.constant dense<0.000000e+00> : vector<16x32xf32>
    %77 = tpu.matmul %75, %76, %cst_34 {dimension_numbers = #tpu.dot_dimension_numbers<[1], [0], [0], [1], [0, 0, 1, 1], [], []>} : vector<16x8xf32>, vector<8x32xf32>, vector<16x32xf32> -> vector<16x32xf32>
    %78 = arith.addf %57, %77 : vector<16x32xf32>
    %79 = vector.extract_strided_slice %37 {offsets = [0, 0, 16], sizes = [2, 8, 8], strides = [1, 1, 1]} : vector<2x8x96xf32> to vector<2x8x8xf32>
    %80 = vector.extract_strided_slice %37 {offsets = [0, 0, 48], sizes = [2, 8, 8], strides = [1, 1, 1]} : vector<2x8x96xf32> to vector<2x8x8xf32>
    %81 = vector.extract_strided_slice %37 {offsets = [0, 0, 80], sizes = [2, 8, 8], strides = [1, 1, 1]} : vector<2x8x96xf32> to vector<2x8x8xf32>
    "tpu.trace_start"() <{level = 10 : i32, message = "bqd,bkd->bqk"}> : () -> ()
    %cst_35 = arith.constant dense<0.000000e+00> : vector<2x8x8xf32>
    %82 = tpu.matmul %79, %80, %cst_35 {dimension_numbers = #tpu.dot_dimension_numbers<[2], [2], [1], [1], [0, 0, 0, 1, 1, 1], [0], [0]>} : vector<2x8x8xf32>, vector<2x8x8xf32>, vector<2x8x8xf32> -> vector<2x8x8xf32>
    "tpu.trace_stop"() : () -> ()
    %cst_36 = arith.constant dense<0xFF800000> : vector<2x8xf32>
    %83 = vector.multi_reduction <maximumf>, %82, %cst_36 [2] : vector<2x8x8xf32> to vector<2x8xf32>
    %84 = vector.shape_cast %83 : vector<2x8xf32> to vector<2x8x1xf32>
    %85 = vector.broadcast %84 : vector<2x8x1xf32> to vector<2x8x8xf32>
    %86 = arith.subf %82, %85 : vector<2x8x8xf32>
    %87 = math.exp %86 : vector<2x8x8xf32>
    %cst_37 = arith.constant dense<0.000000e+00> : vector<2x8xf32>
    %88 = vector.multi_reduction <add>, %87, %cst_37 [2] : vector<2x8x8xf32> to vector<2x8xf32>
    %89 = vector.shape_cast %88 : vector<2x8xf32> to vector<2x8x1xf32>
    %90 = vector.broadcast %89 : vector<2x8x1xf32> to vector<2x8x8xf32>
    %91 = arith.divf %87, %90 : vector<2x8x8xf32>
    %c0_38 = arith.constant 0 : index
    %c2 = arith.constant 2 : index
    %c0_39 = arith.constant 0 : index
    %c0_40 = arith.constant 0 : index
    %92 = vector.load %arg15[%c0_38, %c2, %c0_39, %c0_40] : memref<2x4x8x8xf32, #tpu.memory_space<vmem>>, vector<2x1x8x8xf32>
    %93 = vector.shape_cast %92 : vector<2x1x8x8xf32> to vector<2x8x8xf32>
    %94 = vector.shape_cast %91 : vector<2x8x8xf32> to vector<2x1x8x8xf32>
    tpu.vector_store %arg15[%c0_38, %c2, %c0_39, %c0_40], %94 {strides = array<i32>} : memref<2x4x8x8xf32, #tpu.memory_space<vmem>>, vector<2x1x8x8xf32>,
    "tpu.trace_start"() <{level = 10 : i32, message = "bqk,bkd->bqd"}> : () -> ()
    %cst_41 = arith.constant dense<0.000000e+00> : vector<2x8x8xf32>
    %95 = tpu.matmul %91, %81, %cst_41 {dimension_numbers = #tpu.dot_dimension_numbers<[2], [1], [1], [2], [0, 0, 0, 1, 1, 2], [0], [0]>} : vector<2x8x8xf32>, vector<2x8x8xf32>, vector<2x8x8xf32> -> vector<2x8x8xf32>
    "tpu.trace_stop"() : () -> ()
    %96 = vector.shape_cast %95 : vector<2x8x8xf32> to vector<16x8xf32>
    %c16 = arith.constant 16 : index
    %c0_42 = arith.constant 0 : index
    %97 = vector.load %arg4[%c16, %c0_42] : memref<32x32xf32, #tpu.memory_space<vmem>>, vector<8x32xf32>
    %cst_43 = arith.constant dense<0.000000e+00> : vector<16x32xf32>
    %98 = tpu.matmul %96, %97, %cst_43 {dimension_numbers = #tpu.dot_dimension_numbers<[1], [0], [0], [1], [0, 0, 1, 1], [], []>} : vector<16x8xf32>, vector<8x32xf32>, vector<16x32xf32> -> vector<16x32xf32>
    %99 = arith.addf %78, %98 : vector<16x32xf32>
    %100 = vector.extract_strided_slice %37 {offsets = [0, 0, 24], sizes = [2, 8, 8], strides = [1, 1, 1]} : vector<2x8x96xf32> to vector<2x8x8xf32>
    %101 = vector.extract_strided_slice %37 {offsets = [0, 0, 56], sizes = [2, 8, 8], strides = [1, 1, 1]} : vector<2x8x96xf32> to vector<2x8x8xf32>
    %102 = vector.extract_strided_slice %37 {offsets = [0, 0, 88], sizes = [2, 8, 8], strides = [1, 1, 1]} : vector<2x8x96xf32> to vector<2x8x8xf32>
    "tpu.trace_start"() <{level = 10 : i32, message = "bqd,bkd->bqk"}> : () -> ()
    %cst_44 = arith.constant dense<0.000000e+00> : vector<2x8x8xf32>
    %103 = tpu.matmul %100, %101, %cst_44 {dimension_numbers = #tpu.dot_dimension_numbers<[2], [2], [1], [1], [0, 0, 0, 1, 1, 1], [0], [0]>} : vector<2x8x8xf32>, vector<2x8x8xf32>, vector<2x8x8xf32> -> vector<2x8x8xf32>
    "tpu.trace_stop"() : () -> ()
    %cst_45 = arith.constant dense<0xFF800000> : vector<2x8xf32>
    %104 = vector.multi_reduction <maximumf>, %103, %cst_45 [2] : vector<2x8x8xf32> to vector<2x8xf32>
    %105 = vector.shape_cast %104 : vector<2x8xf32> to vector<2x8x1xf32>
    %106 = vector.broadcast %105 : vector<2x8x1xf32> to vector<2x8x8xf32>
    %107 = arith.subf %103, %106 : vector<2x8x8xf32>
    %108 = math.exp %107 : vector<2x8x8xf32>
    %cst_46 = arith.constant dense<0.000000e+00> : vector<2x8xf32>
    %109 = vector.multi_reduction <add>, %108, %cst_46 [2] : vector<2x8x8xf32> to vector<2x8xf32>
    %110 = vector.shape_cast %109 : vector<2x8xf32> to vector<2x8x1xf32>
    %111 = vector.broadcast %110 : vector<2x8x1xf32> to vector<2x8x8xf32>
    %112 = arith.divf %108, %111 : vector<2x8x8xf32>
    %c0_47 = arith.constant 0 : index
    %c3 = arith.constant 3 : index
    %c0_48 = arith.constant 0 : index
    %c0_49 = arith.constant 0 : index
    %113 = vector.load %arg15[%c0_47, %c3, %c0_48, %c0_49] : memref<2x4x8x8xf32, #tpu.memory_space<vmem>>, vector<2x1x8x8xf32>
    %114 = vector.shape_cast %113 : vector<2x1x8x8xf32> to vector<2x8x8xf32>
    %115 = vector.shape_cast %112 : vector<2x8x8xf32> to vector<2x1x8x8xf32>
    tpu.vector_store %arg15[%c0_47, %c3, %c0_48, %c0_49], %115 {strides = array<i32>} : memref<2x4x8x8xf32, #tpu.memory_space<vmem>>, vector<2x1x8x8xf32>,
    "tpu.trace_start"() <{level = 10 : i32, message = "bqk,bkd->bqd"}> : () -> ()
    %cst_50 = arith.constant dense<0.000000e+00> : vector<2x8x8xf32>
    %116 = tpu.matmul %112, %102, %cst_50 {dimension_numbers = #tpu.dot_dimension_numbers<[2], [1], [1], [2], [0, 0, 0, 1, 1, 2], [0], [0]>} : vector<2x8x8xf32>, vector<2x8x8xf32>, vector<2x8x8xf32> -> vector<2x8x8xf32>
    "tpu.trace_stop"() : () -> ()
    %117 = vector.shape_cast %116 : vector<2x8x8xf32> to vector<16x8xf32>
    %c24 = arith.constant 24 : index
    %c0_51 = arith.constant 0 : index
    %118 = vector.load %arg4[%c24, %c0_51] : memref<32x32xf32, #tpu.memory_space<vmem>>, vector<8x32xf32>
    %cst_52 = arith.constant dense<0.000000e+00> : vector<16x32xf32>
    %119 = tpu.matmul %117, %118, %cst_52 {dimension_numbers = #tpu.dot_dimension_numbers<[1], [0], [0], [1], [0, 0, 1, 1], [], []>} : vector<16x8xf32>, vector<8x32xf32>, vector<16x32xf32> -> vector<16x32xf32>
    %120 = arith.addf %99, %119 : vector<16x32xf32>
    %121 = arith.addf %1, %120 : vector<16x32xf32>
    %c0_53 = arith.constant 0 : index
    %c0_54 = arith.constant 0 : index
    %122 = vector.load %arg5[%c0_53, %c0_54] : memref<1x32xf32, #tpu.memory_space<vmem>>, vector<1x32xf32>
    %123 = vector.shape_cast %122 : vector<1x32xf32> to vector<32xf32>
    %124 = vector.shape_cast %123 : vector<32xf32> to vector<1x32xf32>
    %125 = vector.broadcast %124 : vector<1x32xf32> to vector<16x32xf32>
    %126 = arith.addf %121, %125 : vector<16x32xf32>
    %c0_55 = arith.constant 0 : index
    %c0_56 = arith.constant 0 : index
    %127 = vector.load %arg8[%c0_55, %c0_56] : memref<1x32xf32, #tpu.memory_space<vmem>>, vector<1x32xf32>
    %128 = vector.shape_cast %127 : vector<1x32xf32> to vector<32xf32>
    %c0_57 = arith.constant 0 : index
    %c0_58 = arith.constant 0 : index
    %129 = vector.load %arg9[%c0_57, %c0_58] : memref<1x32xf32, #tpu.memory_space<vmem>>, vector<1x32xf32>
    %130 = vector.shape_cast %129 : vector<1x32xf32> to vector<32xf32>
    %cst_59 = arith.constant dense<0.000000e+00> : vector<16xf32>
    %131 = vector.multi_reduction <add>, %126, %cst_59 [1] : vector<16x32xf32> to vector<16xf32>
    %132 = vector.shape_cast %131 : vector<16xf32> to vector<16x1xf32>
    %cst_60 = arith.constant 3.200000e+01 : f32
    %133 = vector.broadcast %cst_60 : f32 to vector<16x1xf32>
    %134 = arith.divf %132, %133 : vector<16x1xf32>
    %135 = vector.broadcast %134 : vector<16x1xf32> to vector<16x32xf32>
    %136 = arith.subf %126, %135 : vector<16x32xf32>
    %137 = arith.mulf %136, %136 : vector<16x32xf32>
    %cst_61 = arith.constant dense<0.000000e+00> : vector<16xf32>
    %138 = vector.multi_reduction <add>, %137, %cst_61 [1] : vector<16x32xf32> to vector<16xf32>
    %139 = vector.shape_cast %138 : vector<16xf32> to vector<16x1xf32>
    %cst_62 = arith.constant 3.200000e+01 : f32
    %140 = vector.broadcast %cst_62 : f32 to vector<16x1xf32>
    %141 = arith.divf %139, %140 : vector<16x1xf32>
    %142 = vector.broadcast %134 : vector<16x1xf32> to vector<16x32xf32>
    %143 = arith.subf %126, %142 : vector<16x32xf32>
    %cst_63 = arith.constant 9.99999974E-6 : f32
    %144 = vector.broadcast %cst_63 : f32 to vector<16x1xf32>
    %145 = arith.addf %141, %144 : vector<16x1xf32>
    %146 = math.rsqrt %145 : vector<16x1xf32>
    %147 = vector.broadcast %146 : vector<16x1xf32> to vector<16x32xf32>
    %148 = arith.mulf %143, %147 : vector<16x32xf32>
    %149 = vector.shape_cast %128 : vector<32xf32> to vector<1x32xf32>
    %150 = vector.broadcast %149 : vector<1x32xf32> to vector<16x32xf32>
    %151 = arith.mulf %148, %150 : vector<16x32xf32>
    %152 = vector.shape_cast %130 : vector<32xf32> to vector<1x32xf32>
    %153 = vector.broadcast %152 : vector<1x32xf32> to vector<16x32xf32>
    %154 = arith.addf %151, %153 : vector<16x32xf32>
    %c0_64 = arith.constant 0 : index
    %c0_65 = arith.constant 0 : index
    %155 = vector.load %arg10[%c0_64, %c0_65] : memref<32x64xf32, #tpu.memory_space<vmem>>, vector<32x64xf32>
    %cst_66 = arith.constant dense<0.000000e+00> : vector<16x64xf32>
    %156 = tpu.matmul %154, %155, %cst_66 {dimension_numbers = #tpu.dot_dimension_numbers<[1], [0], [0], [1], [0, 0, 1, 1], [], []>} : vector<16x32xf32>, vector<32x64xf32>, vector<16x64xf32> -> vector<16x64xf32>
    %c0_67 = arith.constant 0 : index
    %c0_68 = arith.constant 0 : index
    %157 = vector.load %arg11[%c0_67, %c0_68] : memref<1x64xf32, #tpu.memory_space<vmem>>, vector<1x64xf32>
    %158 = vector.shape_cast %157 : vector<1x64xf32> to vector<64xf32>
    %159 = vector.shape_cast %158 : vector<64xf32> to vector<1x64xf32>
    %160 = vector.broadcast %159 : vector<1x64xf32> to vector<16x64xf32>
    %161 = arith.addf %156, %160 : vector<16x64xf32>
    %cst_69 = arith.constant 5.000000e-01 : f32
    %162 = vector.broadcast %cst_69 : f32 to vector<16x64xf32>
    %163 = arith.mulf %162, %161 : vector<16x64xf32>
    %cst_70 = arith.constant 0.707106769 : f32
    %164 = vector.broadcast %cst_70 : f32 to vector<16x64xf32>
    %165 = arith.mulf %161, %164 : vector<16x64xf32>
    %166 = math.erf %165 : vector<16x64xf32>
    %cst_71 = arith.constant 1.000000e+00 : f32
    %167 = vector.broadcast %cst_71 : f32 to vector<16x64xf32>
    %168 = arith.addf %167, %166 : vector<16x64xf32>
    %169 = arith.mulf %163, %168 : vector<16x64xf32>
    %c0_72 = arith.constant 0 : index
    %c0_73 = arith.constant 0 : index
    %170 = vector.load %arg12[%c0_72, %c0_73] : memref<64x32xf32, #tpu.memory_space<vmem>>, vector<64x32xf32>
    %cst_74 = arith.constant dense<0.000000e+00> : vector<16x32xf32>
    %171 = tpu.matmul %169, %170, %cst_74 {dimension_numbers = #tpu.dot_dimension_numbers<[1], [0], [0], [1], [0, 0, 1, 1], [], []>} : vector<16x64xf32>, vector<64x32xf32>, vector<16x32xf32> -> vector<16x32xf32>
    %172 = arith.addf %126, %171 : vector<16x32xf32>
    %c0_75 = arith.constant 0 : index
    %c0_76 = arith.constant 0 : index
    %173 = vector.load %arg13[%c0_75, %c0_76] : memref<1x32xf32, #tpu.memory_space<vmem>>, vector<1x32xf32>
    %174 = vector.shape_cast %173 : vector<1x32xf32> to vector<32xf32>
    %175 = vector.shape_cast %174 : vector<32xf32> to vector<1x32xf32>
    %176 = vector.broadcast %175 : vector<1x32xf32> to vector<16x32xf32>
    %177 = arith.addf %172, %176 : vector<16x32xf32>
    %178 = vector.shape_cast %177 : vector<16x32xf32> to vector<2x8x32xf32>
    %c0_77 = arith.constant 0 : index
    %c0_78 = arith.constant 0 : index
    %c0_79 = arith.constant 0 : index
    %179 = vector.load %arg14[%c0_77, %c0_78, %c0_79] : memref<2x8x32xf32, #tpu.memory_space<vmem>>, vector<2x8x32xf32>
    tpu.vector_store %arg14[%c0_77, %c0_78, %c0_79], %178 {strides = array<i32>} : memref<2x8x32xf32, #tpu.memory_space<vmem>>, vector<2x8x32xf32>,
    return
  }
  func.func @transform_0(%arg0: i32) -> (i32, i32, i32) {
    %c0_i32 = arith.constant 0 : i32
    %c0_i32_0 = arith.constant 0 : i32
    %c0_i32_1 = arith.constant 0 : i32
    return %arg0, %c0_i32, %c0_i32_0 : i32, i32, i32
  }
  func.func @transform_1(%arg0: i32) -> (i32, i32) {
    %c0_i32 = arith.constant 0 : i32
    %c0_i32_0 = arith.constant 0 : i32
    %c0_i32_1 = arith.constant 0 : i32
    return %c0_i32, %c0_i32_0 : i32, i32
  }
  func.func @transform_2(%arg0: i32) -> (i32, i32) {
    %c0_i32 = arith.constant 0 : i32
    %c0_i32_0 = arith.constant 0 : i32
    %c0_i32_1 = arith.constant 0 : i32
    return %c0_i32, %c0_i32_0 : i32, i32
  }
  func.func @transform_3(%arg0: i32) -> (i32, i32) {
    %c0_i32 = arith.constant 0 : i32
    %c0_i32_0 = arith.constant 0 : i32
    %c0_i32_1 = arith.constant 0 : i32
    return %c0_i32, %c0_i32_0 : i32, i32
  }
  func.func @transform_4(%arg0: i32) -> (i32, i32) {
    %c0_i32 = arith.constant 0 : i32
    %c0_i32_0 = arith.constant 0 : i32
    %c0_i32_1 = arith.constant 0 : i32
    return %c0_i32, %c0_i32_0 : i32, i32
  }
  func.func @transform_5(%arg0: i32) -> (i32, i32) {
    %c0_i32 = arith.constant 0 : i32
    %c0_i32_0 = arith.constant 0 : i32
    %c0_i32_1 = arith.constant 0 : i32
    return %c0_i32, %c0_i32_0 : i32, i32
  }
  func.func @transform_6(%arg0: i32) -> (i32, i32) {
    %c0_i32 = arith.constant 0 : i32
    %c0_i32_0 = arith.constant 0 : i32
    %c0_i32_1 = arith.constant 0 : i32
    return %c0_i32, %c0_i32_0 : i32, i32
  }
  func.func @transform_7(%arg0: i32) -> (i32, i32) {
    %c0_i32 = arith.constant 0 : i32
    %c0_i32_0 = arith.constant 0 : i32
    %c0_i32_1 = arith.constant 0 : i32
    return %c0_i32, %c0_i32_0 : i32, i32
  }
  func.func @transform_8(%arg0: i32) -> (i32, i32) {
    %c0_i32 = arith.constant 0 : i32
    %c0_i32_0 = arith.constant 0 : i32
    %c0_i32_1 = arith.constant 0 : i32
    return %c0_i32, %c0_i32_0 : i32, i32
  }
  func.func @transform_9(%arg0: i32) -> (i32, i32) {
    %c0_i32 = arith.constant 0 : i32
    %c0_i32_0 = arith.constant 0 : i32
    %c0_i32_1 = arith.constant 0 : i32
    return %c0_i32, %c0_i32_0 : i32, i32
  }
  func.func @transform_10(%arg0: i32) -> (i32, i32) {
    %c0_i32 = arith.constant 0 : i32
    %c0_i32_0 = arith.constant 0 : i32
    %c0_i32_1 = arith.constant 0 : i32
    return %c0_i32, %c0_i32_0 : i32, i32
  }
  func.func @transform_11(%arg0: i32) -> (i32, i32) {
    %c0_i32 = arith.constant 0 : i32
    %c0_i32_0 = arith.constant 0 : i32
    %c0_i32_1 = arith.constant 0 : i32
    return %c0_i32, %c0_i32_0 : i32, i32
  }
  func.func @transform_12(%arg0: i32) -> (i32, i32) {
    %c0_i32 = arith.constant 0 : i32
    %c0_i32_0 = arith.constant 0 : i32
    %c0_i32_1 = arith.constant 0 : i32
    return %c0_i32, %c0_i32_0 : i32, i32
  }
  func.func @transform_13(%arg0: i32) -> (i32, i32, i32) {
    %c0_i32 = arith.constant 0 : i32
    %c0_i32_0 = arith.constant 0 : i32
    %c0_i32_1 = arith.constant 0 : i32
    return %arg0, %c0_i32, %c0_i32_0 : i32, i32, i32
  }
  func.func @transform_14(%arg0: i32) -> (i32, i32, i32, i32) {
    %c0_i32 = arith.constant 0 : i32
    %c0_i32_0 = arith.constant 0 : i32
    %c0_i32_1 = arith.constant 0 : i32
    %c0_i32_2 = arith.constant 0 : i32
    return %arg0, %c0_i32, %c0_i32_0, %c0_i32_1 : i32, i32, i32, i32
  }
}

module attributes {stable_mosaic.version = 11 : i64} {
  func.func @encoder_layer_kernel(%arg0: i32, %arg1: memref<2x8x32xf32, #tpu.memory_space<vmem>>, %arg2: memref<32x96xf32, #tpu.memory_space<vmem>>, %arg3: memref<1x96xf32, #tpu.memory_space<vmem>>, %arg4: memref<32x32xf32, #tpu.memory_space<vmem>>, %arg5: memref<1x32xf32, #tpu.memory_space<vmem>>, %arg6: memref<1x32xf32, #tpu.memory_space<vmem>>, %arg7: memref<1x32xf32, #tpu.memory_space<vmem>>, %arg8: memref<1x32xf32, #tpu.memory_space<vmem>>, %arg9: memref<1x32xf32, #tpu.memory_space<vmem>>, %arg10: memref<32x64xf32, #tpu.memory_space<vmem>>, %arg11: memref<1x64xf32, #tpu.memory_space<vmem>>, %arg12: memref<64x32xf32, #tpu.memory_space<vmem>>, %arg13: memref<1x32xf32, #tpu.memory_space<vmem>>, %arg14: memref<2x8x32xf32, #tpu.memory_space<vmem>>, %arg15: memref<2x4x8x8xf32, #tpu.memory_space<vmem>>) attributes {dimension_semantics = [#tpu.dimension_semantics<parallel>], iteration_bounds = array<i64: 2>, scalar_prefetch = 0 : i64, scratch_operands = 0 : i64, tpu.core_type = #tpu.core_type<tc>, window_params = [{transform_indices = @transform_0, window_bounds = array<i64: 2, 8, 32>}, {pipeline_mode = #tpu.pipeline_mode<synchronous>, transform_indices = @transform_1, window_bounds = array<i64: 32, 96>}, {pipeline_mode = #tpu.pipeline_mode<synchronous>, transform_indices = @transform_2, window_bounds = array<i64: 1, 96>}, {pipeline_mode = #tpu.pipeline_mode<synchronous>, transform_indices = @transform_3, window_bounds = array<i64: 32, 32>}, {pipeline_mode = #tpu.pipeline_mode<synchronous>, transform_indices = @transform_4, window_bounds = array<i64: 1, 32>}, {pipeline_mode = #tpu.pipeline_mode<synchronous>, transform_indices = @transform_5, window_bounds = array<i64: 1, 32>}, {pipeline_mode = #tpu.pipeline_mode<synchronous>, transform_indices = @transform_6, window_bounds = array<i64: 1, 32>}, {pipeline_mode = #tpu.pipeline_mode<synchronous>, transform_indices = @transform_7, window_bounds = array<i64: 1, 32>}, {pipeline_mode = #tpu.pipeline_mode<synchronous>, transform_indices = @transform_8, window_bounds = array<i64: 1, 32>}, {pipeline_mode = #tpu.pipeline_mode<synchronous>, transform_indices = @transform_9, window_bounds = array<i64: 32, 64>}, {pipeline_mode = #tpu.pipeline_mode<synchronous>, transform_indices = @transform_10, window_bounds = array<i64: 1, 64>}, {pipeline_mode = #tpu.pipeline_mode<synchronous>, transform_indices = @transform_11, window_bounds = array<i64: 64, 32>}, {pipeline_mode = #tpu.pipeline_mode<synchronous>, transform_indices = @transform_12, window_bounds = array<i64: 1, 32>}, {transform_indices = @transform_13, window_bounds = array<i64: 2, 8, 32>}, {transform_indices = @transform_14, window_bounds = array<i64: 2, 4, 8, 8>}]} {
    %c0 = arith.constant 0 : index
    %c0_0 = arith.constant 0 : index
    %c0_1 = arith.constant 0 : index
    %0 = vector.load %arg1[%c0, %c0_0, %c0_1] : memref<2x8x32xf32, #tpu.memory_space<vmem>>, vector<2x8x32xf32>
    %1 = vector.shape_cast %0 : vector<2x8x32xf32> to vector<16x32xf32>
    %c0_2 = arith.constant 0 : index
    %c0_3 = arith.constant 0 : index
    %2 = vector.load %arg6[%c0_2, %c0_3] : memref<1x32xf32, #tpu.memory_space<vmem>>, vector<1x32xf32>
    %3 = vector.shape_cast %2 : vector<1x32xf32> to vector<32xf32>
    %c0_4 = arith.constant 0 : index
    %c0_5 = arith.constant 0 : index
    %4 = vector.load %arg7[%c0_4, %c0_5] : memref<1x32xf32, #tpu.memory_space<vmem>>, vector<1x32xf32>
    %5 = vector.shape_cast %4 : vector<1x32xf32> to vector<32xf32>
    %cst = arith.constant dense<0.000000e+00> : vector<16xf32>
    %6 = vector.multi_reduction <add>, %1, %cst [1] : vector<16x32xf32> to vector<16xf32>
    %7 = vector.shape_cast %6 : vector<16xf32> to vector<16x1xf32>
    %cst_6 = arith.constant 3.200000e+01 : f32
    %8 = vector.broadcast %cst_6 : f32 to vector<16x1xf32>
    %9 = arith.divf %7, %8 : vector<16x1xf32>
    %10 = vector.broadcast %9 : vector<16x1xf32> to vector<16x32xf32>
    %11 = arith.subf %1, %10 : vector<16x32xf32>
    %12 = arith.mulf %11, %11 : vector<16x32xf32>
    %cst_7 = arith.constant dense<0.000000e+00> : vector<16xf32>
    %13 = vector.multi_reduction <add>, %12, %cst_7 [1] : vector<16x32xf32> to vector<16xf32>
    %14 = vector.shape_cast %13 : vector<16xf32> to vector<16x1xf32>
    %cst_8 = arith.constant 3.200000e+01 : f32
    %15 = vector.broadcast %cst_8 : f32 to vector<16x1xf32>
    %16 = arith.divf %14, %15 : vector<16x1xf32>
    %17 = vector.broadcast %9 : vector<16x1xf32> to vector<16x32xf32>
    %18 = arith.subf %1, %17 : vector<16x32xf32>
    %cst_9 = arith.constant 9.99999974E-6 : f32
    %19 = vector.broadcast %cst_9 : f32 to vector<16x1xf32>
    %20 = arith.addf %16, %19 : vector<16x1xf32>
    %21 = math.rsqrt %20 : vector<16x1xf32>
    %22 = vector.broadcast %21 : vector<16x1xf32> to vector<16x32xf32>
    %23 = arith.mulf %18, %22 : vector<16x32xf32>
    %24 = vector.shape_cast %3 : vector<32xf32> to vector<1x32xf32>
    %25 = vector.broadcast %24 : vector<1x32xf32> to vector<16x32xf32>
    %26 = arith.mulf %23, %25 : vector<16x32xf32>
    %27 = vector.shape_cast %5 : vector<32xf32> to vector<1x32xf32>
    %28 = vector.broadcast %27 : vector<1x32xf32> to vector<16x32xf32>
    %29 = arith.addf %26, %28 : vector<16x32xf32>
    %c0_10 = arith.constant 0 : index
    %c0_11 = arith.constant 0 : index
    %30 = vector.load %arg2[%c0_10, %c0_11] : memref<32x96xf32, #tpu.memory_space<vmem>>, vector<32x96xf32>
    %cst_12 = arith.constant dense<0.000000e+00> : vector<16x96xf32>
    %31 = tpu.matmul %29, %30, %cst_12 {dimension_numbers = #tpu.dot_dimension_numbers<[1], [0], [0], [1], [0, 0, 1, 1], [], []>} : vector<16x32xf32>, vector<32x96xf32>, vector<16x96xf32> -> vector<16x96xf32>
    %c0_13 = arith.constant 0 : index
    %c0_14 = arith.constant 0 : index
    %32 = vector.load %arg3[%c0_13, %c0_14] : memref<1x96xf32, #tpu.memory_space<vmem>>, vector<1x96xf32>
    %33 = vector.shape_cast %32 : vector<1x96xf32> to vector<96xf32>
    %34 = vector.shape_cast %33 : vector<96xf32> to vector<1x96xf32>
    %35 = vector.broadcast %34 : vector<1x96xf32> to vector<16x96xf32>
    %36 = arith.addf %31, %35 : vector<16x96xf32>
    %37 = vector.shape_cast %36 : vector<16x96xf32> to vector<2x8x96xf32>
    %38 = vector.extract_strided_slice %37 {offsets = [0, 0, 0], sizes = [2, 8, 8], strides = [1, 1, 1]} : vector<2x8x96xf32> to vector<2x8x8xf32>
    %39 = vector.extract_strided_slice %37 {offsets = [0, 0, 32], sizes = [2, 8, 8], strides = [1, 1, 1]} : vector<2x8x96xf32> to vector<2x8x8xf32>
    %40 = vector.extract_strided_slice %37 {offsets = [0, 0, 64], sizes = [2, 8, 8], strides = [1, 1, 1]} : vector<2x8x96xf32> to vector<2x8x8xf32>
    "tpu.trace_start"() <{level = 10 : i32, message = "bqd,bkd->bqk"}> : () -> ()
    %cst_15 = arith.constant dense<0.000000e+00> : vector<2x8x8xf32>
    %41 = tpu.matmul %38, %39, %cst_15 {dimension_numbers = #tpu.dot_dimension_numbers<[2], [2], [1], [1], [0, 0, 0, 1, 1, 1], [0], [0]>} : vector<2x8x8xf32>, vector<2x8x8xf32>, vector<2x8x8xf32> -> vector<2x8x8xf32>
    "tpu.trace_stop"() : () -> ()
    %cst_16 = arith.constant dense<0xFF800000> : vector<2x8xf32>
    %42 = vector.multi_reduction <maximumf>, %41, %cst_16 [2] : vector<2x8x8xf32> to vector<2x8xf32>
    %43 = vector.shape_cast %42 : vector<2x8xf32> to vector<2x8x1xf32>
    %44 = vector.broadcast %43 : vector<2x8x1xf32> to vector<2x8x8xf32>
    %45 = arith.subf %41, %44 : vector<2x8x8xf32>
    %46 = math.exp %45 : vector<2x8x8xf32>
    %cst_17 = arith.constant dense<0.000000e+00> : vector<2x8xf32>
    %47 = vector.multi_reduction <add>, %46, %cst_17 [2] : vector<2x8x8xf32> to vector<2x8xf32>
    %48 = vector.shape_cast %47 : vector<2x8xf32> to vector<2x8x1xf32>
    %49 = vector.broadcast %48 : vector<2x8x1xf32> to vector<2x8x8xf32>
    %50 = arith.divf %46, %49 : vector<2x8x8xf32>
    %c0_18 = arith.constant 0 : index
    %c0_19 = arith.constant 0 : index
    %c0_20 = arith.constant 0 : index
    %c0_21 = arith.constant 0 : index
    %51 = vector.load %arg15[%c0_18, %c0_19, %c0_20, %c0_21] : memref<2x4x8x8xf32, #tpu.memory_space<vmem>>, vector<2x1x8x8xf32>
    %52 = vector.shape_cast %51 : vector<2x1x8x8xf32> to vector<2x8x8xf32>
    %53 = vector.shape_cast %50 : vector<2x8x8xf32> to vector<2x1x8x8xf32>
    tpu.vector_store %arg15[%c0_18, %c0_19, %c0_20, %c0_21], %53 {strides = array<i32>} : memref<2x4x8x8xf32, #tpu.memory_space<vmem>>, vector<2x1x8x8xf32>,
    "tpu.trace_start"() <{level = 10 : i32, message = "bqk,bkd->bqd"}> : () -> ()
    %cst_22 = arith.constant dense<0.000000e+00> : vector<2x8x8xf32>
    %54 = tpu.matmul %50, %40, %cst_22 {dimension_numbers = #tpu.dot_dimension_numbers<[2], [1], [1], [2], [0, 0, 0, 1, 1, 2], [0], [0]>} : vector<2x8x8xf32>, vector<2x8x8xf32>, vector<2x8x8xf32> -> vector<2x8x8xf32>
    "tpu.trace_stop"() : () -> ()
    %55 = vector.shape_cast %54 : vector<2x8x8xf32> to vector<16x8xf32>
    %c0_23 = arith.constant 0 : index
    %c0_24 = arith.constant 0 : index
    %56 = vector.load %arg4[%c0_23, %c0_24] : memref<32x32xf32, #tpu.memory_space<vmem>>, vector<8x32xf32>
    %cst_25 = arith.constant dense<0.000000e+00> : vector<16x32xf32>
    %57 = tpu.matmul %55, %56, %cst_25 {dimension_numbers = #tpu.dot_dimension_numbers<[1], [0], [0], [1], [0, 0, 1, 1], [], []>} : vector<16x8xf32>, vector<8x32xf32>, vector<16x32xf32> -> vector<16x32xf32>
    %58 = vector.extract_strided_slice %37 {offsets = [0, 0, 8], sizes = [2, 8, 8], strides = [1, 1, 1]} : vector<2x8x96xf32> to vector<2x8x8xf32>
    %59 = vector.extract_strided_slice %37 {offsets = [0, 0, 40], sizes = [2, 8, 8], strides = [1, 1, 1]} : vector<2x8x96xf32> to vector<2x8x8xf32>
    %60 = vector.extract_strided_slice %37 {offsets = [0, 0, 72], sizes = [2, 8, 8], strides = [1, 1, 1]} : vector<2x8x96xf32> to vector<2x8x8xf32>
    "tpu.trace_start"() <{level = 10 : i32, message = "bqd,bkd->bqk"}> : () -> ()
    %cst_26 = arith.constant dense<0.000000e+00> : vector<2x8x8xf32>
    %61 = tpu.matmul %58, %59, %cst_26 {dimension_numbers = #tpu.dot_dimension_numbers<[2], [2], [1], [1], [0, 0, 0, 1, 1, 1], [0], [0]>} : vector<2x8x8xf32>, vector<2x8x8xf32>, vector<2x8x8xf32> -> vector<2x8x8xf32>
    "tpu.trace_stop"() : () -> ()
    %cst_27 = arith.constant dense<0xFF800000> : vector<2x8xf32>
    %62 = vector.multi_reduction <maximumf>, %61, %cst_27 [2] : vector<2x8x8xf32> to vector<2x8xf32>
    %63 = vector.shape_cast %62 : vector<2x8xf32> to vector<2x8x1xf32>
    %64 = vector.broadcast %63 : vector<2x8x1xf32> to vector<2x8x8xf32>
    %65 = arith.subf %61, %64 : vector<2x8x8xf32>
    %66 = math.exp %65 : vector<2x8x8xf32>
    %cst_28 = arith.constant dense<0.000000e+00> : vector<2x8xf32>
    %67 = vector.multi_reduction <add>, %66, %cst_28 [2] : vector<2x8x8xf32> to vector<2x8xf32>
    %68 = vector.shape_cast %67 : vector<2x8xf32> to vector<2x8x1xf32>
    %69 = vector.broadcast %68 : vector<2x8x1xf32> to vector<2x8x8xf32>
    %70 = arith.divf %66, %69 : vector<2x8x8xf32>
    %c0_29 = arith.constant 0 : index
    %c1 = arith.constant 1 : index
    %c0_30 = arith.constant 0 : index
    %c0_31 = arith.constant 0 : index
    %71 = vector.load %arg15[%c0_29, %c1, %c0_30, %c0_31] : memref<2x4x8x8xf32, #tpu.memory_space<vmem>>, vector<2x1x8x8xf32>
    %72 = vector.shape_cast %71 : vector<2x1x8x8xf32> to vector<2x8x8xf32>
    %73 = vector.shape_cast %70 : vector<2x8x8xf32> to vector<2x1x8x8xf32>
    tpu.vector_store %arg15[%c0_29, %c1, %c0_30, %c0_31], %73 {strides = array<i32>} : memref<2x4x8x8xf32, #tpu.memory_space<vmem>>, vector<2x1x8x8xf32>,
    "tpu.trace_start"() <{level = 10 : i32, message = "bqk,bkd->bqd"}> : () -> ()
    %cst_32 = arith.constant dense<0.000000e+00> : vector<2x8x8xf32>
    %74 = tpu.matmul %70, %60, %cst_32 {dimension_numbers = #tpu.dot_dimension_numbers<[2], [1], [1], [2], [0, 0, 0, 1, 1, 2], [0], [0]>} : vector<2x8x8xf32>, vector<2x8x8xf32>, vector<2x8x8xf32> -> vector<2x8x8xf32>
    "tpu.trace_stop"() : () -> ()
    %75 = vector.shape_cast %74 : vector<2x8x8xf32> to vector<16x8xf32>
    %c8 = arith.constant 8 : index
    %c0_33 = arith.constant 0 : index
    %76 = vector.load %arg4[%c8, %c0_33] : memref<32x32xf32, #tpu.memory_space<vmem>>, vector<8x32xf32>
    %cst_34 = arith.constant dense<0.000000e+00> : vector<16x32xf32>
    %77 = tpu.matmul %75, %76, %cst_34 {dimension_numbers = #tpu.dot_dimension_numbers<[1], [0], [0], [1], [0, 0, 1, 1], [], []>} : vector<16x8xf32>, vector<8x32xf32>, vector<16x32xf32> -> vector<16x32xf32>
    %78 = arith.addf %57, %77 : vector<16x32xf32>
    %79 = vector.extract_strided_slice %37 {offsets = [0, 0, 16], sizes = [2, 8, 8], strides = [1, 1, 1]} : vector<2x8x96xf32> to vector<2x8x8xf32>
    %80 = vector.extract_strided_slice %37 {offsets = [0, 0, 48], sizes = [2, 8, 8], strides = [1, 1, 1]} : vector<2x8x96xf32> to vector<2x8x8xf32>
    %81 = vector.extract_strided_slice %37 {offsets = [0, 0, 80], sizes = [2, 8, 8], strides = [1, 1, 1]} : vector<2x8x96xf32> to vector<2x8x8xf32>
    "tpu.trace_start"() <{level = 10 : i32, message = "bqd,bkd->bqk"}> : () -> ()
    %cst_35 = arith.constant dense<0.000000e+00> : vector<2x8x8xf32>
    %82 = tpu.matmul %79, %80, %cst_35 {dimension_numbers = #tpu.dot_dimension_numbers<[2], [2], [1], [1], [0, 0, 0, 1, 1, 1], [0], [0]>} : vector<2x8x8xf32>, vector<2x8x8xf32>, vector<2x8x8xf32> -> vector<2x8x8xf32>
    "tpu.trace_stop"() : () -> ()
    %cst_36 = arith.constant dense<0xFF800000> : vector<2x8xf32>
    %83 = vector.multi_reduction <maximumf>, %82, %cst_36 [2] : vector<2x8x8xf32> to vector<2x8xf32>
    %84 = vector.shape_cast %83 : vector<2x8xf32> to vector<2x8x1xf32>
    %85 = vector.broadcast %84 : vector<2x8x1xf32> to vector<2x8x8xf32>
    %86 = arith.subf %82, %85 : vector<2x8x8xf32>
    %87 = math.exp %86 : vector<2x8x8xf32>
    %cst_37 = arith.constant dense<0.000000e+00> : vector<2x8xf32>
    %88 = vector.multi_reduction <add>, %87, %cst_37 [2] : vector<2x8x8xf32> to vector<2x8xf32>
    %89 = vector.shape_cast %88 : vector<2x8xf32> to vector<2x8x1xf32>
    %90 = vector.broadcast %89 : vector<2x8x1xf32> to vector<2x8x8xf32>
    %91 = arith.divf %87, %90 : vector<2x8x8xf32>
    %c0_38 = arith.constant 0 : index
    %c2 = arith.constant 2 : index
    %c0_39 = arith.constant 0 : index
    %c0_40 = arith.constant 0 : index
    %92 = vector.load %arg15[%c0_38, %c2, %c0_39, %c0_40] : memref<2x4x8x8xf32, #tpu.memory_space<vmem>>, vector<2x1x8x8xf32>
    %93 = vector.shape_cast %92 : vector<2x1x8x8xf32> to vector<2x8x8xf32>
    %94 = vector.shape_cast %91 : vector<2x8x8xf32> to vector<2x1x8x8xf32>
    tpu.vector_store %arg15[%c0_38, %c2, %c0_39, %c0_40], %94 {strides = array<i32>} : memref<2x4x8x8xf32, #tpu.memory_space<vmem>>, vector<2x1x8x8xf32>,
    "tpu.trace_start"() <{level = 10 : i32, message = "bqk,bkd->bqd"}> : () -> ()
    %cst_41 = arith.constant dense<0.000000e+00> : vector<2x8x8xf32>
    %95 = tpu.matmul %91, %81, %cst_41 {dimension_numbers = #tpu.dot_dimension_numbers<[2], [1], [1], [2], [0, 0, 0, 1, 1, 2], [0], [0]>} : vector<2x8x8xf32>, vector<2x8x8xf32>, vector<2x8x8xf32> -> vector<2x8x8xf32>
    "tpu.trace_stop"() : () -> ()
    %96 = vector.shape_cast %95 : vector<2x8x8xf32> to vector<16x8xf32>
    %c16 = arith.constant 16 : index
    %c0_42 = arith.constant 0 : index
    %97 = vector.load %arg4[%c16, %c0_42] : memref<32x32xf32, #tpu.memory_space<vmem>>, vector<8x32xf32>
    %cst_43 = arith.constant dense<0.000000e+00> : vector<16x32xf32>
    %98 = tpu.matmul %96, %97, %cst_43 {dimension_numbers = #tpu.dot_dimension_numbers<[1], [0], [0], [1], [0, 0, 1, 1], [], []>} : vector<16x8xf32>, vector<8x32xf32>, vector<16x32xf32> -> vector<16x32xf32>
    %99 = arith.addf %78, %98 : vector<16x32xf32>
    %100 = vector.extract_strided_slice %37 {offsets = [0, 0, 24], sizes = [2, 8, 8], strides = [1, 1, 1]} : vector<2x8x96xf32> to vector<2x8x8xf32>
    %101 = vector.extract_strided_slice %37 {offsets = [0, 0, 56], sizes = [2, 8, 8], strides = [1, 1, 1]} : vector<2x8x96xf32> to vector<2x8x8xf32>
    %102 = vector.extract_strided_slice %37 {offsets = [0, 0, 88], sizes = [2, 8, 8], strides = [1, 1, 1]} : vector<2x8x96xf32> to vector<2x8x8xf32>
    "tpu.trace_start"() <{level = 10 : i32, message = "bqd,bkd->bqk"}> : () -> ()
    %cst_44 = arith.constant dense<0.000000e+00> : vector<2x8x8xf32>
    %103 = tpu.matmul %100, %101, %cst_44 {dimension_numbers = #tpu.dot_dimension_numbers<[2], [2], [1], [1], [0, 0, 0, 1, 1, 1], [0], [0]>} : vector<2x8x8xf32>, vector<2x8x8xf32>, vector<2x8x8xf32> -> vector<2x8x8xf32>
    "tpu.trace_stop"() : () -> ()
    %cst_45 = arith.constant dense<0xFF800000> : vector<2x8xf32>
    %104 = vector.multi_reduction <maximumf>, %103, %cst_45 [2] : vector<2x8x8xf32> to vector<2x8xf32>
    %105 = vector.shape_cast %104 : vector<2x8xf32> to vector<2x8x1xf32>
    %106 = vector.broadcast %105 : vector<2x8x1xf32> to vector<2x8x8xf32>
    %107 = arith.subf %103, %106 : vector<2x8x8xf32>
    %108 = math.exp %107 : vector<2x8x8xf32>
    %cst_46 = arith.constant dense<0.000000e+00> : vector<2x8xf32>
    %109 = vector.multi_reduction <add>, %108, %cst_46 [2] : vector<2x8x8xf32> to vector<2x8xf32>
    %110 = vector.shape_cast %109 : vector<2x8xf32> to vector<2x8x1xf32>
    %111 = vector.broadcast %110 : vector<2x8x1xf32> to vector<2x8x8xf32>
    %112 = arith.divf %108, %111 : vector<2x8x8xf32>
    %c0_47 = arith.constant 0 : index
    %c3 = arith.constant 3 : index
    %c0_48 = arith.constant 0 : index
    %c0_49 = arith.constant 0 : index
    %113 = vector.load %arg15[%c0_47, %c3, %c0_48, %c0_49] : memref<2x4x8x8xf32, #tpu.memory_space<vmem>>, vector<2x1x8x8xf32>
    %114 = vector.shape_cast %113 : vector<2x1x8x8xf32> to vector<2x8x8xf32>
    %115 = vector.shape_cast %112 : vector<2x8x8xf32> to vector<2x1x8x8xf32>
    tpu.vector_store %arg15[%c0_47, %c3, %c0_48, %c0_49], %115 {strides = array<i32>} : memref<2x4x8x8xf32, #tpu.memory_space<vmem>>, vector<2x1x8x8xf32>,
    "tpu.trace_start"() <{level = 10 : i32, message = "bqk,bkd->bqd"}> : () -> ()
    %cst_50 = arith.constant dense<0.000000e+00> : vector<2x8x8xf32>
    %116 = tpu.matmul %112, %102, %cst_50 {dimension_numbers = #tpu.dot_dimension_numbers<[2], [1], [1], [2], [0, 0, 0, 1, 1, 2], [0], [0]>} : vector<2x8x8xf32>, vector<2x8x8xf32>, vector<2x8x8xf32> -> vector<2x8x8xf32>
    "tpu.trace_stop"() : () -> ()
    %117 = vector.shape_cast %116 : vector<2x8x8xf32> to vector<16x8xf32>
    %c24 = arith.constant 24 : index
    %c0_51 = arith.constant 0 : index
    %118 = vector.load %arg4[%c24, %c0_51] : memref<32x32xf32, #tpu.memory_space<vmem>>, vector<8x32xf32>
    %cst_52 = arith.constant dense<0.000000e+00> : vector<16x32xf32>
    %119 = tpu.matmul %117, %118, %cst_52 {dimension_numbers = #tpu.dot_dimension_numbers<[1], [0], [0], [1], [0, 0, 1, 1], [], []>} : vector<16x8xf32>, vector<8x32xf32>, vector<16x32xf32> -> vector<16x32xf32>
    %120 = arith.addf %99, %119 : vector<16x32xf32>
    %121 = arith.addf %1, %120 : vector<16x32xf32>
    %c0_53 = arith.constant 0 : index
    %c0_54 = arith.constant 0 : index
    %122 = vector.load %arg5[%c0_53, %c0_54] : memref<1x32xf32, #tpu.memory_space<vmem>>, vector<1x32xf32>
    %123 = vector.shape_cast %122 : vector<1x32xf32> to vector<32xf32>
    %124 = vector.shape_cast %123 : vector<32xf32> to vector<1x32xf32>
    %125 = vector.broadcast %124 : vector<1x32xf32> to vector<16x32xf32>
    %126 = arith.addf %121, %125 : vector<16x32xf32>
    %c0_55 = arith.constant 0 : index
    %c0_56 = arith.constant 0 : index
    %127 = vector.load %arg8[%c0_55, %c0_56] : memref<1x32xf32, #tpu.memory_space<vmem>>, vector<1x32xf32>
    %128 = vector.shape_cast %127 : vector<1x32xf32> to vector<32xf32>
    %c0_57 = arith.constant 0 : index
    %c0_58 = arith.constant 0 : index
    %129 = vector.load %arg9[%c0_57, %c0_58] : memref<1x32xf32, #tpu.memory_space<vmem>>, vector<1x32xf32>
    %130 = vector.shape_cast %129 : vector<1x32xf32> to vector<32xf32>
    %cst_59 = arith.constant dense<0.000000e+00> : vector<16xf32>
    %131 = vector.multi_reduction <add>, %126, %cst_59 [1] : vector<16x32xf32> to vector<16xf32>
    %132 = vector.shape_cast %131 : vector<16xf32> to vector<16x1xf32>
    %cst_60 = arith.constant 3.200000e+01 : f32
    %133 = vector.broadcast %cst_60 : f32 to vector<16x1xf32>
    %134 = arith.divf %132, %133 : vector<16x1xf32>
    %135 = vector.broadcast %134 : vector<16x1xf32> to vector<16x32xf32>
    %136 = arith.subf %126, %135 : vector<16x32xf32>
    %137 = arith.mulf %136, %136 : vector<16x32xf32>
    %cst_61 = arith.constant dense<0.000000e+00> : vector<16xf32>
    %138 = vector.multi_reduction <add>, %137, %cst_61 [1] : vector<16x32xf32> to vector<16xf32>
    %139 = vector.shape_cast %138 : vector<16xf32> to vector<16x1xf32>
    %cst_62 = arith.constant 3.200000e+01 : f32
    %140 = vector.broadcast %cst_62 : f32 to vector<16x1xf32>
    %141 = arith.divf %139, %140 : vector<16x1xf32>
    %142 = vector.broadcast %134 : vector<16x1xf32> to vector<16x32xf32>
    %143 = arith.subf %126, %142 : vector<16x32xf32>
    %cst_63 = arith.constant 9.99999974E-6 : f32
    %144 = vector.broadcast %cst_63 : f32 to vector<16x1xf32>
    %145 = arith.addf %141, %144 : vector<16x1xf32>
    %146 = math.rsqrt %145 : vector<16x1xf32>
    %147 = vector.broadcast %146 : vector<16x1xf32> to vector<16x32xf32>
    %148 = arith.mulf %143, %147 : vector<16x32xf32>
    %149 = vector.shape_cast %128 : vector<32xf32> to vector<1x32xf32>
    %150 = vector.broadcast %149 : vector<1x32xf32> to vector<16x32xf32>
    %151 = arith.mulf %148, %150 : vector<16x32xf32>
    %152 = vector.shape_cast %130 : vector<32xf32> to vector<1x32xf32>
    %153 = vector.broadcast %152 : vector<1x32xf32> to vector<16x32xf32>
    %154 = arith.addf %151, %153 : vector<16x32xf32>
    %c0_64 = arith.constant 0 : index
    %c0_65 = arith.constant 0 : index
    %155 = vector.load %arg10[%c0_64, %c0_65] : memref<32x64xf32, #tpu.memory_space<vmem>>, vector<32x64xf32>
    %cst_66 = arith.constant dense<0.000000e+00> : vector<16x64xf32>
    %156 = tpu.matmul %154, %155, %cst_66 {dimension_numbers = #tpu.dot_dimension_numbers<[1], [0], [0], [1], [0, 0, 1, 1], [], []>} : vector<16x32xf32>, vector<32x64xf32>, vector<16x64xf32> -> vector<16x64xf32>
    %c0_67 = arith.constant 0 : index
    %c0_68 = arith.constant 0 : index
    %157 = vector.load %arg11[%c0_67, %c0_68] : memref<1x64xf32, #tpu.memory_space<vmem>>, vector<1x64xf32>
    %158 = vector.shape_cast %157 : vector<1x64xf32> to vector<64xf32>
    %159 = vector.shape_cast %158 : vector<64xf32> to vector<1x64xf32>
    %160 = vector.broadcast %159 : vector<1x64xf32> to vector<16x64xf32>
    %161 = arith.addf %156, %160 : vector<16x64xf32>
    %cst_69 = arith.constant 5.000000e-01 : f32
    %162 = vector.broadcast %cst_69 : f32 to vector<16x64xf32>
    %163 = arith.mulf %162, %161 : vector<16x64xf32>
    %cst_70 = arith.constant 0.707106769 : f32
    %164 = vector.broadcast %cst_70 : f32 to vector<16x64xf32>
    %165 = arith.mulf %161, %164 : vector<16x64xf32>
    %166 = math.erf %165 : vector<16x64xf32>
    %cst_71 = arith.constant 1.000000e+00 : f32
    %167 = vector.broadcast %cst_71 : f32 to vector<16x64xf32>
    %168 = arith.addf %167, %166 : vector<16x64xf32>
    %169 = arith.mulf %163, %168 : vector<16x64xf32>
    %c0_72 = arith.constant 0 : index
    %c0_73 = arith.constant 0 : index
    %170 = vector.load %arg12[%c0_72, %c0_73] : memref<64x32xf32, #tpu.memory_space<vmem>>, vector<64x32xf32>
    %cst_74 = arith.constant dense<0.000000e+00> : vector<16x32xf32>
    %171 = tpu.matmul %169, %170, %cst_74 {dimension_numbers = #tpu.dot_dimension_numbers<[1], [0], [0], [1], [0, 0, 1, 1], [], []>} : vector<16x64xf32>, vector<64x32xf32>, vector<16x32xf32> -> vector<16x32xf32>
    %172 = arith.addf %126, %171 : vector<16x32xf32>
    %c0_75 = arith.constant 0 : index
    %c0_76 = arith.constant 0 : index
    %173 = vector.load %arg13[%c0_75, %c0_76] : memref<1x32xf32, #tpu.memory_space<vmem>>, vector<1x32xf32>
    %174 = vector.shape_cast %173 : vector<1x32xf32> to vector<32xf32>
    %175 = vector.shape_cast %174 : vector<32xf32> to vector<1x32xf32>
    %176 = vector.broadcast %175 : vector<1x32xf32> to vector<16x32xf32>
    %177 = arith.addf %172, %176 : vector<16x32xf32>
    %178 = vector.shape_cast %177 : vector<16x32xf32> to vector<2x8x32xf32>
    %c0_77 = arith.constant 0 : index
    %c0_78 = arith.constant 0 : index
    %c0_79 = arith.constant 0 : index
    %179 = vector.load %arg14[%c0_77, %c0_78, %c0_79] : memref<2x8x32xf32, #tpu.memory_space<vmem>>, vector<2x8x32xf32>
    tpu.vector_store %arg14[%c0_77, %c0_78, %c0_79], %178 {strides = array<i32>} : memref<2x8x32xf32, #tpu.memory_space<vmem>>, vector<2x8x32xf32>,
    return
  }
  func.func @transform_0(%arg0: i32) -> (i32, i32, i32) {
    %c0_i32 = arith.constant 0 : i32
    %c0_i32_0 = arith.constant 0 : i32
    %c0_i32_1 = arith.constant 0 : i32
    return %arg0, %c0_i32, %c0_i32_0 : i32, i32, i32
  }
  func.func @transform_1(%arg0: i32) -> (i32, i32) {
    %c0_i32 = arith.constant 0 : i32
    %c0_i32_0 = arith.constant 0 : i32
    %c0_i32_1 = arith.constant 0 : i32
    return %c0_i32, %c0_i32_0 : i32, i32
  }
  func.func @transform_2(%arg0: i32) -> (i32, i32) {
    %c0_i32 = arith.constant 0 : i32
    %c0_i32_0 = arith.constant 0 : i32
    %c0_i32_1 = arith.constant 0 : i32
    return %c0_i32, %c0_i32_0 : i32, i32
  }
  func.func @transform_3(%arg0: i32) -> (i32, i32) {
    %c0_i32 = arith.constant 0 : i32
    %c0_i32_0 = arith.constant 0 : i32
    %c0_i32_1 = arith.constant 0 : i32
    return %c0_i32, %c0_i32_0 : i32, i32
  }
  func.func @transform_4(%arg0: i32) -> (i32, i32) {
    %c0_i32 = arith.constant 0 : i32
    %c0_i32_0 = arith.constant 0 : i32
    %c0_i32_1 = arith.constant 0 : i32
    return %c0_i32, %c0_i32_0 : i32, i32
  }
  func.func @transform_5(%arg0: i32) -> (i32, i32) {
    %c0_i32 = arith.constant 0 : i32
    %c0_i32_0 = arith.constant 0 : i32
    %c0_i32_1 = arith.constant 0 : i32
    return %c0_i32, %c0_i32_0 : i32, i32
  }
  func.func @transform_6(%arg0: i32) -> (i32, i32) {
    %c0_i32 = arith.constant 0 : i32
    %c0_i32_0 = arith.constant 0 : i32
    %c0_i32_1 = arith.constant 0 : i32
    return %c0_i32, %c0_i32_0 : i32, i32
  }
  func.func @transform_7(%arg0: i32) -> (i32, i32) {
    %c0_i32 = arith.constant 0 : i32
    %c0_i32_0 = arith.constant 0 : i32
    %c0_i32_1 = arith.constant 0 : i32
    return %c0_i32, %c0_i32_0 : i32, i32
  }
  func.func @transform_8(%arg0: i32) -> (i32, i32) {
    %c0_i32 = arith.constant 0 : i32
    %c0_i32_0 = arith.constant 0 : i32
    %c0_i32_1 = arith.constant 0 : i32
    return %c0_i32, %c0_i32_0 : i32, i32
  }
  func.func @transform_9(%arg0: i32) -> (i32, i32) {
    %c0_i32 = arith.constant 0 : i32
    %c0_i32_0 = arith.constant 0 : i32
    %c0_i32_1 = arith.constant 0 : i32
    return %c0_i32, %c0_i32_0 : i32, i32
  }
  func.func @transform_10(%arg0: i32) -> (i32, i32) {
    %c0_i32 = arith.constant 0 : i32
    %c0_i32_0 = arith.constant 0 : i32
    %c0_i32_1 = arith.constant 0 : i32
    return %c0_i32, %c0_i32_0 : i32, i32
  }
  func.func @transform_11(%arg0: i32) -> (i32, i32) {
    %c0_i32 = arith.constant 0 : i32
    %c0_i32_0 = arith.constant 0 : i32
    %c0_i32_1 = arith.constant 0 : i32
    return %c0_i32, %c0_i32_0 : i32, i32
  }
  func.func @transform_12(%arg0: i32) -> (i32, i32) {
    %c0_i32 = arith.constant 0 : i32
    %c0_i32_0 = arith.constant 0 : i32
    %c0_i32_1 = arith.constant 0 : i32
    return %c0_i32, %c0_i32_0 : i32, i32
  }
  func.func @transform_13(%arg0: i32) -> (i32, i32, i32) {
    %c0_i32 = arith.constant 0 : i32
    %c0_i32_0 = arith.constant 0 : i32
    %c0_i32_1 = arith.constant 0 : i32
    return %arg0, %c0_i32, %c0_i32_0 : i32, i32, i32
  }
  func.func @transform_14(%arg0: i32) -> (i32, i32, i32, i32) {
    %c0_i32 = arith.constant 0 : i32
    %c0_i32_0 = arith.constant 0 : i32
    %c0_i32_1 = arith.constant 0 : i32
    %c0_i32_2 = arith.constant 0 : i32
    return %arg0, %c0_i32, %c0_i32_0, %c0_i32_1 : i32, i32, i32, i32
  }
}

</mosaic_0001>

<bundles_post_ra>
// kernel: tpu_custom_call.1
= control target key start
LH: loop header
LB: loop body
LE: loop exit
PB: predicated region body
PF: predicated region fallthrough
CT: control target
= control target key end

     0   :  { %s3800_s0 = inlined_call_operand.vmem [shape: f32[4,8,32], index: 0, kind: input, shape index: {}]   ;;  %s3801_s1 = inlined_call_operand.vmem [shape: f32[32,96], index: 1, kind: input, shape index: {}]   ;;  %s3802_s2 = inlined_call_operand.vmem [shape: f32[1,96], index: 2, kind: input, shape index: {}]   ;;  %s3803_s3 = inlined_call_operand.vmem [shape: f32[32,32], index: 3, kind: input, shape index: {}]   ;;  %s3804_s4 = inlined_call_operand.vmem [shape: f32[1,32], index: 4, kind: input, shape index: {}]   ;;  %s3805_s5 = inlined_call_operand.vmem [shape: f32[1,32], index: 5, kind: input, shape index: {}]   ;;  %s3806_s6 = inlined_call_operand.vmem [shape: f32[1,32], index: 6, kind: input, shape index: {}]   ;;  %s3807_s7 = inlined_call_operand.vmem [shape: f32[1,32], index: 7, kind: input, shape index: {}]   ;;  %s3808_s8 = inlined_call_operand.vmem [shape: f32[1,32], index: 8, kind: input, shape index: {}]   ;;  %s3809_s9 = inlined_call_operand.hbm [shape: f32[32,64], index: 9, kind: input, shape index: {}]   ;;  %s3810_s10 = inlined_call_operand.vmem [shape: f32[1,64], index: 10, kind: input, shape index: {}]   ;;  %s3811_s11 = inlined_call_operand.vmem [shape: f32[64,32], index: 11, kind: input, shape index: {}]   ;;  %s3812_s12 = inlined_call_operand.vmem [shape: f32[1,32], index: 12, kind: input, shape index: {}]   ;;  %s3813_s13 = inlined_call_operand.hbm [shape: f32[4,8,32], index: 13, kind: output, shape index: {0}]   ;;  %s3814_s14 = inlined_call_operand.hbm [shape: f32[4,4,8,8], index: 14, kind: output, shape index: {1}]  }
   0x1   :  { %3822 = sst [smem:[#allocation15_spill]] %s3800_s0 }
   0x2   :  { %3823 = sst [smem:[#allocation16_spill]] %s3801_s1 }
   0x3   :  { %20 = vsyncpa [#allocation3], 0 }
   0x4   :  { %21 = vsyncpa [#allocation4], 0 }
   0x5   :  { %23 = vsyncpa [#allocation4 + $0x1], 0 }
   0x6   :  { %24 = vsyncpa [#allocation7], 0 }
   0x7   :  { %26 = vsyncpa [#allocation7 + $0x1], 0  ;;  %s3358_s29 = smov 0   ;;  %s3360_s30 = smov 0  }
   0x8   :  { %s3362_s15 = smov 0   ;;  %s3364_s16 = smov 0  }
   0x9 LB: > { %3824 = sst [smem:[#allocation11_spill]] %s3257_s15  ;;  %s3379_s17 = sadd.s32 4294967295, %s3261_s16   ;;  %s3261_s16 = sphi %s3364_s16, %s3840_s16   ;;  %s3257_s15 = sphi %s3362_s15, %s3842_s15   ;;  %s3253_s30 = sphi %s3360_s30, %s3844_s30   ;;  %s3249_s29 = sphi %s3358_s29, %s3843_s29  }
   0xa   : > { %s2700_s18 = sadd.s32 4294967294, %s3261_s16   ;;  %s3383_s19 = sadd.s32 1, %s3261_s16  }
   0xb   : > { %3825 = sst [smem:[#allocation12_spill]] %s3383_s19  ;;  %s317_s20 = sadd.s32 1, %s3257_s15 }
   0xc   : > { %s314_s21 = ssub.s32 %s3261_s16, %s3383_s19  ;;  %p327_p0 = scmp.ne.s32.totalorder %s3257_s15, %s3253_s30 }
   0xd   : > { %p315_p1 = scmp.eq.s32.totalorder %s314_s21, 0  ;;  %p328_p2 = scmp.eq.s32.totalorder %s3379_s17, 1 }
   0xe   : > { %p333_p3 = scmp.ne.s32.totalorder %s3253_s30, %s3249_s29  ;;  %p334_p4 = scmp.eq.s32.totalorder %s2700_s18, 1 }
   0xf   : > { %s3394_s22 = scalar_select %p315_p1, %s3257_s15, %s317_s20  }
  0x10   : > { %p3396_p5 = por %p328_p2, %p327_p0  ;;  %p3400_p6 = por %p334_p4, %p333_p3 }
  0x11   : > { %3826 = sst [smem:[#allocation13_spill]] %s3394_s22  ;;  %p2701_p7 = scmp.ge.s32.totalorder %s3261_s16, 1 }
  0x12   : > { %s3827_s23 = scalar_select %p3396_p5, 1, 0 }
  0x13   : > { %s3828_s24 = scalar_select %p3400_p6, 1, 0 }
  0x14   : > { %p367_p8 = scmp.lt.s32.totalorder %s3261_s16, 3  ;;  %p3819_p9 = scmp.eq.s32.totalorder %s3379_s17, 0 }
  0x15   : > { %3829 = sst [smem:[#allocation14_spill]] %s3828_s24  ;;  %s3263_s26 = smov [#allocation2]  }
  0x16   : > { %p3407_p10 = pnand %p2701_p7, %p367_p8  ;;  %s403_s27 = sshll.u32 %s3263_s26, 4  ;;  %s404_s27 = int_to_ptr.vmem [resolvable:$true] %s403_s27 }
  0x17   : > { %s3135_s21 = scalar_lea.hbm %s3809_s9, 512 }
  0x18   : > { %s3830_s25 = scalar_select %p3407_p10, 1, 0 }
  0x19   : > { %p3027_p11 = pneg %p3407_p10  ;;  %p3136_p13 = scmp.ne.s32.totalorder %s3809_s9, %s3135_s21 }
  0x1a   : > { %p3142_p3 = scmp.lt.u32.totalorder %s3135_s21, %s3809_s9 }
  0x1b   : > { %p3415_p12 = pnand %p3819_p9, %p3027_p11 }
  0x1d   : > { %p3137_p0 = pneg %p3415_p12 }
  0x1f   : > { %p3138_p1 = pnand %p3137_p0, %p3136_p13 }
  0x21   : > { %p3139_p2 = pneg %p3138_p1 }
  0x23   : > { %p3144_p4 = pnand %p3142_p3, %p3139_p2 }
  0x25   : > { %3147 = shalt.err (!%p3144_p4)
}
  0x26   : > { %s3148_s24 = scalar_lea.vmem %s404_s27, 512  ;;  %p3156_p9 = scmp.lt.s32.totalorder %s404_s27, %s404_s27 }
  0x27   : > { %p3149_p7 = scmp.ne.s32.totalorder %s404_s27, %s3148_s24  ;;  %p3157_p6 = scmp.lt.s32.totalorder %s3148_s24, %s3148_s24 }
  0x29   : > { %p3151_p8 = pnand %p3149_p7, %p3137_p0  ;;  %p3158_p5 = por %p3157_p6, %p3156_p9 }
  0x2b   : > { %p3152_p11 = pneg %p3151_p8 }
  0x2d   : > { %p3159_p10 = pnand %p3158_p5, %p3152_p11 }
  0x2f   : > { %3162 = shalt.err (!%p3159_p10)
}
  0x30   : > { %s3264_s15 = smov 128   ;;  %s3265_s22 = smov 8  }
  0x31   : > { %3030 = dma.hbm_to_vmem [thread:$0]  (!%p3415_p12), %s3809_s9, 512, %s404_s27, [#allocation3], %s3264_s15, %s3264_s15, %s3265_s22  }
  0x32   : > { %p3832_p13 = scmp.ne.s32.totalorder %s3830_s25, 0 }
  0x33   : > { %p3833_p1 = scmp.eq.s32.totalorder (!%p3832_p13), %s3379_s17, 0 }
  0x34   : > { %437 = sbr.rel (%p3832_p13) target bundleno = 4261 (0x10a5), region = 72 }
  0x3b   : > { %3236 = dma.done.wait (%p3833_p1), [#allocation3], 512   ;;  %p3834_p0 = pmov %p3833_p1 }
  0x3c   : > { %s2708_s19 = sshll.u32 %s3379_s17, 1  ;;  %vm500_vm0 = vcmask 261120   ;;  %s3835_s0 = sld [smem:[#allocation15_spill]]  ;;  %v2710_v27 = vld [vmem:[%s3805_s5] ss:$0 sm:$0xff]  ;;  %v3266_v36 = vmov 0.0  }
  0x3d   : > { %3238 = vsyncadd (%p3834_p0), [#allocation3], 4294966784  ;;  %p489_p5 = scmp.lt.s32.totalorder %s2708_s19, 3  ;;  %s3836_s1 = sld [smem:[#allocation16_spill]]  ;;  %v2711_v29 = vld [vmem:[%s3806_s6] ss:$0 sm:$0xff]  ;;  %2861 = vmatprep.subr.mxu0 %v3266_v36 }
  0x3e   : > { %vm3267_vm1 = vmmov 0   ;;  %v2712_v37 = vld [vmem:[%s3802_s2] ss:$0 sm:$0xff]  ;;  %s3268_s22 = smov 96   ;;  %vm639_vm2 = vcmask 64512   ;;  %s3269_s18 = smov 88  }
  0x3f   : > { %s3846_s19 = smov (!%p489_p5, %s2708_s19), 3  ;;  %2863 = vmatprep.mubr.msk.f32.mxu0 %vm3267_vm1, %v3266_v36  ;;  %s3270_s20 = smov 120   ;;  %vm2463_vm3 = vcmask 523264  }
  0x40   : > { %s2709_s24 = sshll.u32 %s3846_s19, 3  ;;  %s3271_s19 = smov 80  }
  0x41   : > { %s3517_s28 = sand.u32 1, %s3253_s30   ;;  %s3273_s25 = smov 56  }
  0x42   : > { %s492_s26 = scalar_lea.vmem %s3835_s0, %s2709_s24  ;;  %s3272_s24 = smov 64  }
  0x43   : > { %v3445_v0 = vld [vmem:[%s492_s26] sm:$0xff]  ;;  %v3447_v1 = vld [vmem:[%s492_s26 + $0x8] sm:$0xff]  ;;  %v546_v16 = vld [vmem:[%s3836_s1 + $0x10] sm:$0xff]  ;;  %s2707_s21 = sshll.u32 %s3517_s28, 6  ;;  %s3274_s27 = smov 112  }
  0x44   : > { %v501_v2 = vsel %vm500_vm0, %v3445_v0, 0.0  ;;  %v504_v3 = vsel %vm500_vm0, %v3447_v1, 0.0  ;;  %v544_v14 = vld [vmem:[%s3836_s1] sm:$0xff]  ;;  %v545_v15 = vld [vmem:[%s3836_s1 + $0x8] sm:$0xff]  ;;  %v547_v18 = vld [vmem:[%s3836_s1 + $0x18] sm:$0xff]  ;;  %s3522_s26 = scalar_lea.vmem [#allocation6], %s2707_s21 }
  0x45   : > { %502 = vadd.xlane.f32.xlu0 %v501_v2  ;;  %v2981_v17 = vpack.c.bf16 %v545_v15, %v544_v14  ;;  %v2985_v19 = vpack.c.bf16 %v547_v18, %v546_v16  ;;  %s3275_s15 = smov 48   ;;  %p3837_p9 = scmp.ne.s32.totalorder %s3827_s23, 0 }
  0x47   : > { %2982 = vmatprep.subr.bf16.mxu1 %v2981_v17 }
  0x48   : > { %2984 = vmatpush3.bf16.msra.mxu1 %v2981_v17 }
  0x49   : > { %505 = vadd.xlane.f32.xlu0 %v504_v3  ;;  %2986 = vmatprep.subr.bf16.mxu1 %v2985_v19 }
  0x4c   : > { %2988 = vmatpush3.bf16.msra.mxu1 %v2985_v19 }
  0x4d   : > { %2851 = vmatprep.subr.mxu1 %v3266_v36 }
  0xd2   : > { %v503_v4 = vpop.xlane.xlu0 %502 }
  0xd3   : > { %v508_v5 = vmul.f32 0.03125, %v503_v4 }
  0xd5   : > { %v510_v6 = vsub.f32 %v3445_v0, %v508_v5 }
  0xd6   : > { %v506_v7 = vpop.xlane.xlu0 %505 }
  0xd7   : > { %v509_v8 = vmul.f32 0.03125, %v506_v7  ;;  %v512_v9 = vmul.f32 %v510_v6, %v510_v6 }
  0xd9   : > { %v511_v10 = vsub.f32 %v3447_v1, %v509_v8  ;;  %v514_v11 = vsel %vm500_vm0, %v512_v9, 0.0 }
  0xda   : > { %515 = vadd.xlane.f32.xlu1 %v514_v11 }
  0xdb   : > { %v513_v12 = vmul.f32 %v511_v10, %v511_v10 }
  0xdd   : > { %v517_v13 = vsel %vm500_vm0, %v513_v12, 0.0 }
  0xde   : > { %518 = vadd.xlane.f32.xlu1 %v517_v13 }
 0x167   : > { %v516_v20 = vpop.xlane.xlu1 %515 }
 0x168   : > { %v520_v21 = vmul.f32 0.03125, %v516_v20 }
 0x16a   : > { %v522_v22 = vadd.f32 1e-05, %v520_v21 }
 0x16b   : > { %v519_v23 = vpop.xlane.xlu1 %518 }
 0x16c   : > { %3091 = vrsqrt.f32 %v522_v22  ;;  %v521_v24 = vmul.f32 0.03125, %v519_v23 }
 0x16e   : > { %v523_v25 = vadd.f32 1e-05, %v521_v24 }
 0x170   : > { %3093 = vrsqrt.f32 %v523_v25 }
 0x176   : > { %v3092_v26 = vpop.eup %3091 }
 0x177   : > { %v526_v28 = vmul.f32 %v3092_v26, %v510_v6 }
 0x179   : > { %v534_v30 = vmul.f32 %v2710_v27, %v526_v28 }
 0x17a   : > { %v3094_v31 = vpop.eup %3093 }
 0x17b   : > { %v527_v32 = vmul.f32 %v3094_v31, %v511_v10  ;;  %v542_v33 = vadd.f32 %v2711_v29, %v534_v30 }
 0x17d   : > { %v535_v34 = vmul.f32 %v2710_v27, %v527_v32  ;;  %2848 = vmatprep.mubr.msk.f32.mxu1 %vm500_vm0, %v542_v33 }
 0x17f   : > { %v543_v35 = vadd.f32 %v2711_v29, %v535_v34 }
 0x181   : > { %2849 = vmatmul.mubr.msk.f32.vlgmr.msra.gmra.mrb[0].mxu1 %vm500_vm0, %v543_v35 }
 0x182   : > { %2853 = vmatprep.mubr.msk.f32.mxu1 %vm3267_vm1, %v3266_v36 }
 0x254   : > { %v2850_v38 = vpop.f32.mrb[0].mxu1 }
 0x255   : > { %v3486_v39 = vadd.f32 %v2850_v38, %v2712_v37  ;;  %v627_v40 = vpop.f32.mrb[1].mxu1 }
 0x256   : > { %v3488_v41 = vadd.f32 %v2712_v37, %v627_v40 }
 0x257   : > { %715 = vrot.lane.b32.xlu1 %v3486_v39, %s3268_s22 }
 0x258   : > { %637 = vrot.lane.b32.xlu0 %v3488_v41, %s3268_s22  ;;  %s3276_s22 = smov 72  }
 0x2c9   : > { %v716_v43 = vpop.permute.xlu1 %715 }
 0x2ca   : > { %v638_v42 = vpop.permute.xlu0 %637 }
 0x2cb   : > { %2852 = vmatpush3.xpose.msk.msra.mxu1 %vm639_vm2, %v638_v42 }
 0x2cc   : > { %2856 = vmatprep.subr.mxu1 %v3266_v36 }
 0x2ce   : > { %2854 = vmatmul.mubr.msk.f32.vlgmr.msra.gmra.mrb[2].mxu1 %vm639_vm2, %v3488_v41 }
 0x2cf   : > { %2857 = vmatpush3.xpose.msk.msra.mxu1 %vm639_vm2, %v716_v43  ;;  %2858 = vmatprep.mubr.msk.f32.mxu1 %vm3267_vm1, %v3266_v36 }
 0x2d0   : > { %2866 = vmatprep.subr.mxu1 %v3266_v36 }
 0x2d2   : > { %2859 = vmatmul.mubr.msk.f32.vlgmr.msra.gmra.mrb[4].mxu1 %vm639_vm2, %v3486_v39 }
 0x2d3   : > { %2868 = vmatprep.mubr.msk.f32.mxu1 %vm3267_vm1, %v3266_v36 }
 0x3a1   : > { %v710_v44 = vpop.f32.mrb[2].mxu1 }
 0x3a2   : > { %v2855_v45 = vpop.f32.mrb[3].mxu1  ;;  %v791_v49 = vsel %vm639_vm2, %v710_v44, -inf }
 0x3a5   : > { %v787_v46 = vpop.f32.mrb[4].mxu1 }
 0x3a6   : > { %v2860_v47 = vpop.f32.mrb[5].mxu1  ;;  %v794_v48 = vsel %vm639_vm2, %v787_v46, -inf }
 0x3a7   : > { %795 = vmax.xlane.f32.xlu1 %v794_v48 }
 0x3b8   : > { %1048 = vrot.lane.b32.xlu1 %v3486_v39, %s3269_s18 }
 0x3bc   : > { %1046 = vrot.lane.b32.xlu1 %v3486_v39, %s3270_s20 }
 0x3e0   : > { %792 = vmax.xlane.f32.xlu1 %v791_v49 }
 0x3f1   : > { %970 = vrot.lane.b32.xlu1 %v3488_v41, %s3269_s18  ;;  %s3277_s18 = smov 104  }
 0x3f5   : > { %968 = vrot.lane.b32.xlu1 %v3488_v41, %s3270_s20 }
 0x3f9   : > { %1466 = vrot.lane.b32.xlu1 %v3488_v41, %s3271_s19 }
 0x434   : > { %v796_v50 = vpop.xlane.xlu1 %795 }
 0x435   : > { %v798_v51 = vsub.f32 %v787_v46, %v796_v50 }
 0x437   : > { %v801_v52 = vmul.f32 1.442695, %v798_v51 }
 0x438   : > { %v1049_v55 = vpop.permute.xlu1 %1048 }
 0x439   : > { %3095 = vpow2.f32 %v801_v52 }
 0x43c   : > { %v1047_v56 = vpop.permute.xlu1 %1046 }
 0x443   : > { %v3096_v53 = vpop.eup %3095 }
 0x444   : > { %v806_v54 = vsel %vm639_vm2, %v3096_v53, 0.0 }
 0x445   : > { %807 = vadd.xlane.f32.xlu0 %v806_v54  ;;  %v1301_v54 = vld [vmem:[%s3803_s3 + $0x8] sm:$0xff] }
 0x45b   : > { %891 = vrot.lane.b32.xlu0 %v3486_v39, %s3272_s24 }
 0x46d   : > { %v793_v57 = vpop.xlane.xlu1 %792 }
 0x46e   : > { %v797_v58 = vsub.f32 %v710_v44, %v793_v57 }
 0x470   : > { %v799_v59 = vmul.f32 1.442695, %v797_v58 }
 0x471   : > { %v971_v7 = vpop.permute.xlu1 %970 }
 0x472   : > { %3097 = vpow2.f32 %v799_v59 }
 0x475   : > { %v969_v9 = vpop.permute.xlu1 %968 }
 0x479   : > { %v1467_v26 = vpop.permute.xlu1 %1466 }
 0x47c   : > { %v3098_v60 = vpop.eup %3097 }
 0x47d   : > { %v803_v61 = vsel %vm639_vm2, %v3098_v60, 0.0 }
 0x47e   : > { %804 = vadd.xlane.f32.xlu0 %v803_v61 }
 0x494   : > { %815 = vrot.lane.b32.xlu0 %v3488_v41, %s3272_s24  ;;  %s2564_s24 = scalar_lea.sflag [#allocation7], %s3517_s28 }
 0x4d2   : > { %v808_v62 = vpop.xlane.xlu0 %807 }
 0x4d3   : > { %3099 = vrcp.f32 %v808_v62 }
 0x4d6   : > { %v892_v63 = vpop.permute.xlu0 %891 }
 0x4d7   : > { %2867 = vmatpush3.msra.mxu1 %v892_v63 }
 0x4d8   : > { %2876 = vmatprep.subr.mxu1 %v3266_v36 }
 0x4dd   : > { %v3100_v2 = vpop.eup %3099 }
 0x4de   : > { %v812_v3 = vmul.f32 %v3100_v2, %v3096_v53 }
 0x4e0   : > { %2869 = vmatmul.mubr.msk.f32.vlgmr.msra.gmra.mrb[6].mxu1 %vm639_vm2, %v812_v3  ;;  %814 = vst.msk [vmem:[%s3522_s26 + $0x20] sm:$0xff] %vm639_vm2, %v812_v3 }
 0x4e1   : > { %2877 = vmatpush3.xpose.msk.msra.mxu1 %vm639_vm2, %v1049_v55  ;;  %2878 = vmatprep.mubr.msk.f32.mxu1 %vm3267_vm1, %v3266_v36  ;;  %v967_v55 = vld [vmem:[%s3803_s3] sm:$0xff] }
 0x4e2   : > { %2886 = vmatprep.subr.mxu1 %v3266_v36 }
 0x4e4   : > { %2879 = vmatmul.mubr.msk.f32.vlgmr.msra.gmra.mrb[8].mxu1 %vm639_vm2, %v1047_v56 }
 0x4e5   : > { %2888 = vmatprep.mubr.msk.f32.mxu1 %vm3267_vm1, %v3266_v36 }
 0x50b   : > { %v805_v4 = vpop.xlane.xlu0 %804 }
 0x50c   : > { %3101 = vrcp.f32 %v805_v4 }
 0x50f   : > { %v816_v5 = vpop.permute.xlu0 %815 }
 0x510   : > { %2862 = vmatpush3.msra.mxu0 %v816_v5 }
 0x511   : > { %2871 = vmatprep.subr.mxu0 %v3266_v36 }
 0x516   : > { %v3102_v6 = vpop.eup %3101 }
 0x517   : > { %v810_v8 = vmul.f32 %v3102_v6, %v3098_v60 }
 0x519   : > { %813 = vst.msk [vmem:[%s3522_s26] sm:$0xff] %vm639_vm2, %v810_v8  ;;  %2864 = vmatmul.mubr.msk.f32.vlgmr.msra.gmra.mrb[0].mxu0 %vm639_vm2, %v810_v8  ;;  %v1797_v8 = vld [vmem:[%s3803_s3 + $0x10] sm:$0xff] }
 0x51a   : > { %2872 = vmatpush3.xpose.msk.msra.mxu0 %vm639_vm2, %v971_v7  ;;  %2873 = vmatprep.mubr.msk.f32.mxu0 %vm3267_vm1, %v3266_v36 }
 0x51b   : > { %2881 = vmatprep.subr.mxu0 %v3266_v36 }
 0x51d   : > { %2874 = vmatmul.mubr.msk.f32.vlgmr.msra.gmra.mrb[2].mxu0 %vm639_vm2, %v969_v9 }
 0x51e   : > { %2883 = vmatprep.mubr.msk.f32.mxu0 %vm3267_vm1, %v3266_v36 }
 0x5b3   : > { %v3544_v10 = vpop.f32.mrb[6].mxu1 }
 0x5b4   : > { %v2870_v11 = vpop.f32.mrb[7].mxu1 }
 0x5b7   : > { %v1120_v12 = vpop.f32.mrb[8].mxu1 }
 0x5b8   : > { %v2880_v13 = vpop.f32.mrb[9].mxu1  ;;  %v1127_v14 = vsel %vm639_vm2, %v1120_v12, -inf }
 0x5b9   : > { %1128 = vmax.xlane.f32.xlu0 %v1127_v14 }
 0x5cf   : > { %1225 = vrot.lane.b32.xlu0 %v3486_v39, %s3273_s25 }
 0x5d3   : > { %1464 = vrot.lane.b32.xlu0 %v3488_v41, %s3274_s27 }
 0x5d7   : > { %1542 = vrot.lane.b32.xlu0 %v3486_v39, %s3274_s27 }
 0x5ec   : > { %v3551_v15 = vpop.f32.mrb[0].mxu0 }
 0x5ed   : > { %v2865_v16 = vpop.f32.mrb[1].mxu0 }
 0x5f0   : > { %v1042_v17 = vpop.f32.mrb[2].mxu0 }
 0x5f1   : > { %v2875_v18 = vpop.f32.mrb[3].mxu0  ;;  %v1124_v25 = vsel %vm639_vm2, %v1042_v17, -inf }
 0x646   : > { %v1129_v19 = vpop.xlane.xlu0 %1128 }
 0x647   : > { %v1131_v20 = vsub.f32 %v1120_v12, %v1129_v19 }
 0x649   : > { %v1134_v21 = vmul.f32 1.442695, %v1131_v20 }
 0x64a   : > { %v1226_v22 = vpop.permute.xlu0 %1225 }
 0x64b   : > { %3103 = vpow2.f32 %v1134_v21  ;;  %2887 = vmatpush3.msra.mxu1 %v1226_v22 }
 0x64c   : > { %2901 = vmatprep.subr.mxu1 %v3266_v36 }
 0x64e   : > { %v1465_v30 = vpop.permute.xlu0 %1464 }
 0x652   : > { %v1543_v32 = vpop.permute.xlu0 %1542 }
 0x655   : > { %v3104_v23 = vpop.eup %3103 }
 0x656   : > { %v1139_v24 = vsel %vm639_vm2, %v3104_v23, 0.0 }
 0x657   : > { %1140 = vadd.xlane.f32.xlu1 %v1139_v24 }
 0x668   : > { %1544 = vrot.lane.b32.xlu1 %v3486_v39, %s3271_s19  ;;  %s2594_s19 = sshll.u32 %s3522_s26, 4  ;;  %s3711_s19 = int_to_ptr.vmem [resolvable:$true] %s2594_s19 }
 0x669   : > { %s3163_s21 = scalar_lea.vmem %s3711_s19, 1024 }
 0x66a   : > { %p3164_p6 = scmp.ne.s32.totalorder %s3711_s19, %s3163_s21 }
 0x66c   : > { %p3165_p10 = pnand %p3164_p6, %p3837_p9 }
 0x66e   : > { %p3166_p12 = pneg %p3165_p10 }
 0x68c   : > { %1125 = vmax.xlane.f32.xlu1 %v1124_v25 }
 0x6e4   : > { %v1141_v27 = vpop.xlane.xlu1 %1140 }
 0x6e5   : > { %3105 = vrcp.f32 %v1141_v27 }
 0x6e8   : > { %v1545_v31 = vpop.permute.xlu1 %1544 }
 0x6ef   : > { %v3106_v28 = vpop.eup %3105 }
 0x6f0   : > { %v1145_v29 = vmul.f32 %v3106_v28, %v3104_v23 }
 0x6f2   : > { %2726 = vst.msk [vmem:[%s3522_s26 + $0x28] sm:$0xff] %vm639_vm2, %v1145_v29  ;;  %2889 = vmatmul.mubr.msk.f32.vlgmr.msra.gmra.mrb[10].mxu1 %vm639_vm2, %v1145_v29 }
 0x6f3   : > { %2902 = vmatpush3.xpose.msk.msra.mxu1 %vm639_vm2, %v1467_v26  ;;  %2903 = vmatprep.mubr.msk.f32.mxu1 %vm3267_vm1, %v3266_v36 }
 0x6f4   : > { %2906 = vmatprep.subr.mxu1 %v3266_v36 }
 0x6f6   : > { %2904 = vmatmul.mubr.msk.f32.vlgmr.msra.gmra.mrb[12].mxu1 %vm639_vm2, %v1465_v30 }
 0x6f7   : > { %2907 = vmatpush3.xpose.msk.msra.mxu1 %vm639_vm2, %v1545_v31  ;;  %2908 = vmatprep.mubr.msk.f32.mxu1 %vm3267_vm1, %v3266_v36 }
 0x6f8   : > { %2916 = vmatprep.subr.mxu1 %v3266_v36 }
 0x6fa   : > { %2909 = vmatmul.mubr.msk.f32.vlgmr.msra.gmra.mrb[14].mxu1 %vm639_vm2, %v1543_v32 }
 0x6fb   : > { %2918 = vmatprep.mubr.msk.f32.mxu1 %vm3267_vm1, %v3266_v36 }
 0x719   : > { %v1126_v33 = vpop.xlane.xlu1 %1125 }
 0x71a   : > { %v1130_v34 = vsub.f32 %v1042_v17, %v1126_v33 }
 0x71c   : > { %v1132_v35 = vmul.f32 1.442695, %v1130_v34 }
 0x71e   : > { %3107 = vpow2.f32 %v1132_v35 }
 0x728   : > { %v3108_v37 = vpop.eup %3107 }
 0x729   : > { %v1136_v38 = vsel %vm639_vm2, %v3108_v37, 0.0 }
 0x72a   : > { %1137 = vadd.xlane.f32.xlu0 %v1136_v38 }
 0x740   : > { %1149 = vrot.lane.b32.xlu0 %v3488_v41, %s3273_s25  ;;  %s3279_s25 = smov [#allocation6]  }
 0x741   : > { %s3167_s27 = sshll.u32 %s3279_s25, 4  ;;  %s3168_s27 = int_to_ptr.vmem [resolvable:$false] %s3167_s27 }
 0x742   : > { %s3169_s0 = scalar_lea.vmem %s3168_s27, 2048  ;;  %p3170_p2 = scmp.lt.s32.totalorder %s3711_s19, %s3168_s27 }
 0x743   : > { %p3171_p3 = scmp.lt.s32.totalorder %s3169_s0, %s3163_s21 }
 0x744   : > { %1721 = vrot.lane.b32.xlu0 %v3486_v39, %s3275_s15 }
 0x745   : > { %p3172_p4 = por %p3171_p3, %p3170_p2 }
 0x747   : > { %p3173_p7 = pnand %p3172_p4, %p3166_p12 }
 0x748   : > { %1883 = vrot.lane.b32.xlu0 %v3488_v41, %s3276_s22 }
 0x74c   : > { %1961 = vrot.lane.b32.xlu0 %v3486_v39, %s3276_s22 }
 0x750   : > { %1881 = vrot.lane.b32.xlu0 %v3488_v41, %s3277_s18 }
 0x7b7   : > { %v1138_v40 = vpop.xlane.xlu0 %1137 }
 0x7b8   : > { %3109 = vrcp.f32 %v1138_v40 }
 0x7bb   : > { %v1150_v42 = vpop.permute.xlu0 %1149 }
 0x7bc   : > { %2882 = vmatpush3.msra.mxu0 %v1150_v42 }
 0x7bd   : > { %2891 = vmatprep.subr.mxu0 %v1301_v54 }
 0x7bf   : > { %v1722_v43 = vpop.permute.xlu0 %1721 }
 0x7c0   : > { %2917 = vmatpush3.msra.mxu1 %v1722_v43 }
 0x7c1   : > { %2926 = vmatprep.subr.mxu1 %v3266_v36 }
 0x7c2   : > { %v3110_v44 = vpop.eup %3109 }
 0x7c3   : > { %v1143_v45 = vmul.f32 %v3110_v44, %v3108_v37  ;;  %v1884_v11 = vpop.permute.xlu0 %1883 }
 0x7c5   : > { %2725 = vst.msk [vmem:[%s3522_s26 + $0x8] sm:$0xff] %vm639_vm2, %v1143_v45  ;;  %2884 = vmatmul.mubr.msk.f32.vlgmr.msra.gmra.mrb[4].mxu0 %vm639_vm2, %v1143_v45  ;;  %v1297_v46 = vpop.f32.mrb[10].mxu1 }
 0x7c6   : > { %v2890_v47 = vpop.f32.mrb[11].mxu1  ;;  %2892 = vmatpush3.msra.mxu0 %v1301_v54 }
 0x7c7   : > { %2896 = vmatprep.subr.mxu0 %v967_v55  ;;  %v1962_v14 = vpop.permute.xlu0 %1961  ;;  %v2214_v47 = vld [vmem:[%s3803_s3 + $0x18] sm:$0xff] }
 0x7c9   : > { %v1538_v48 = vpop.f32.mrb[12].mxu1 }
 0x7ca   : > { %v2905_v49 = vpop.f32.mrb[13].mxu1  ;;  %v1620_v50 = vsel %vm639_vm2, %v1538_v48, -inf }
 0x7cb   : > { %1621 = vmax.xlane.f32.xlu1 %v1620_v50  ;;  %v1882_v16 = vpop.permute.xlu0 %1881 }
 0x7cd   : > { %v1616_v51 = vpop.f32.mrb[14].mxu1 }
 0x7ce   : > { %v2910_v52 = vpop.f32.mrb[15].mxu1  ;;  %v1623_v53 = vsel %vm639_vm2, %v1616_v51, -inf }
 0x7cf   : > { %1624 = vmax.xlane.f32.xlu1 %v1623_v53  ;;  %v2753_v52 = vld [vmem:[%s3804_s4] ss:$0 sm:$0xff] }
 0x858   : > { %v1622_v56 = vpop.xlane.xlu1 %1621 }
 0x859   : > { %v1626_v57 = vsub.f32 %v1538_v48, %v1622_v56 }
 0x85b   : > { %v1628_v58 = vmul.f32 1.442695, %v1626_v57 }
 0x85c   : > { %v1625_v59 = vpop.xlane.xlu1 %1624 }
 0x85d   : > { %3111 = vpow2.f32 %v1628_v58  ;;  %v1627_v60 = vsub.f32 %v1616_v51, %v1625_v59 }
 0x85f   : > { %v1630_v61 = vmul.f32 1.442695, %v1627_v60 }
 0x861   : > { %3113 = vpow2.f32 %v1630_v61 }
 0x867   : > { %v3112_v62 = vpop.eup %3111 }
 0x868   : > { %v1632_v63 = vsel %vm639_vm2, %v3112_v62, 0.0 }
 0x869   : > { %1633 = vadd.xlane.f32.xlu1 %v1632_v63 }
 0x86b   : > { %v3114_v2 = vpop.eup %3113 }
 0x86c   : > { %v1635_v3 = vsel %vm639_vm2, %v3114_v2, 0.0 }
 0x86d   : > { %1636 = vadd.xlane.f32.xlu1 %v1635_v3 }
 0x87e   : > { %1645 = vrot.lane.b32.xlu1 %v3488_v41, %s3275_s15  ;;  %s3278_s15 = smov 40  }
 0x882   : > { %1959 = vrot.lane.b32.xlu1 %v3486_v39, %s3277_s18 }
 0x898   : > { %v1221_v4 = vpop.f32.mrb[4].mxu0 }
 0x899   : > { %v2885_v5 = vpop.f32.mrb[5].mxu0  ;;  %2893 = vmatprep.mubr.msk.f32.mxu0 %vm639_vm2, %v1221_v4 }
 0x89a   : > { %2894 = vmatmul.mubr.msk.f32.vlgmr.msra.gmra.mrb[6].mxu0 %vm639_vm2, %v1297_v46 }
 0x89b   : > { %2898 = vmatprep.mubr.msk.f32.mxu0 %vm639_vm2, %v3551_v15  ;;  %2897 = vmatpush3.msra.mxu0 %v967_v55 }
 0x89c   : > { %2911 = vmatprep.subr.mxu0 %v3266_v36 }
 0x8a2   : > { %2899 = vmatmul.mubr.msk.f32.vlgmr.msra.gmra.mrb[6].mxu0 %vm639_vm2, %v3544_v10 }
 0x8a3   : > { %2913 = vmatprep.mubr.msk.f32.mxu0 %vm3267_vm1, %v3266_v36 }
 0x8f6   : > { %v1634_v6 = vpop.xlane.xlu1 %1633 }
 0x8f7   : > { %3115 = vrcp.f32 %v1634_v6  ;;  %v2353_v6 = vld [vmem:[#allocation2] sm:$0xff] }
 0x8fa   : > { %v1637_v7 = vpop.xlane.xlu1 %1636 }
 0x8fb   : > { %3117 = vrcp.f32 %v1637_v7  ;;  %v2354_v7 = vld [vmem:[#allocation2 + $0x8] sm:$0xff] }
 0x8fe   : > { %v1646_v9 = vpop.permute.xlu1 %1645 }
 0x8ff   : > { %2912 = vmatpush3.msra.mxu0 %v1646_v9  ;;  %v2355_v9 = vld [vmem:[#allocation2 + $0x10] sm:$0xff] }
 0x900   : > { %2921 = vmatprep.subr.mxu0 %v1797_v8 }
 0x901   : > { %v3116_v12 = vpop.eup %3115 }
 0x902   : > { %v1639_v13 = vmul.f32 %v3116_v12, %v3112_v62  ;;  %v1960_v21 = vpop.permute.xlu1 %1959 }
 0x904   : > { %2737 = vst.msk [vmem:[%s3522_s26 + $0x10] sm:$0xff] %vm639_vm2, %v1639_v13  ;;  %2914 = vmatmul.mubr.msk.f32.vlgmr.msra.gmra.mrb[8].mxu0 %vm639_vm2, %v1639_v13 }
 0x905   : > { %v3118_v10 = vpop.eup %3117  ;;  %2922 = vmatpush3.msra.mxu0 %v1797_v8  ;;  %v2989_v8 = vpack.c.bf16 %v2354_v7, %v2353_v6 }
 0x906   : > { %v1641_v15 = vmul.f32 %v3118_v10, %v3114_v2  ;;  %2931 = vmatprep.subr.mxu0 %v3266_v36 }
 0x908   : > { %2738 = vst.msk [vmem:[%s3522_s26 + $0x30] sm:$0xff] %vm639_vm2, %v1641_v15  ;;  %2919 = vmatmul.mubr.msk.f32.vlgmr.msra.gmra.mrb[16].mxu1 %vm639_vm2, %v1641_v15 }
 0x909   : > { %2927 = vmatpush3.xpose.msk.msra.mxu1 %vm639_vm2, %v1884_v11  ;;  %2928 = vmatprep.mubr.msk.f32.mxu1 %vm3267_vm1, %v3266_v36  ;;  %v2356_v11 = vld [vmem:[#allocation2 + $0x18] sm:$0xff] }
 0x90a   : > { %2936 = vmatprep.subr.mxu1 %v3266_v36  ;;  %v2993_v12 = vpack.c.bf16 %v2356_v11, %v2355_v9 }
 0x90c   : > { %2929 = vmatmul.mubr.msk.f32.vlgmr.msra.gmra.mrb[18].mxu1 %vm639_vm2, %v1882_v16 }
 0x90d   : > { %2938 = vmatprep.mubr.msk.f32.mxu1 %vm3267_vm1, %v3266_v36 }
 0x9d7   : > { %v1717_v17 = vpop.f32.mrb[8].mxu0 }
 0x9d8   : > { %v2915_v18 = vpop.f32.mrb[9].mxu0  ;;  %2923 = vmatprep.mubr.msk.f32.mxu0 %vm639_vm2, %v1717_v17 }
 0x9db   : > { %v1793_v19 = vpop.f32.mrb[16].mxu1 }
 0x9dc   : > { %v2920_v20 = vpop.f32.mrb[17].mxu1  ;;  %2924 = vmatmul.mubr.msk.f32.vlgmr.msra.gmra.mrb[6].mxu0 %vm639_vm2, %v1793_v19  ;;  %v2754_v19 = vld [vmem:[%s3807_s7] ss:$0 sm:$0xff] }
 0x9dd   : > { %2932 = vmatpush3.xpose.msk.msra.mxu0 %vm639_vm2, %v1962_v14  ;;  %2933 = vmatprep.mubr.msk.f32.mxu0 %vm3267_vm1, %v3266_v36 }
 0x9de   : > { %2941 = vmatprep.subr.mxu0 %v3266_v36 }
 0x9df   : > { %v1955_v22 = vpop.f32.mrb[18].mxu1 }
 0x9e0   : > { %v2930_v23 = vpop.f32.mrb[19].mxu1  ;;  %2934 = vmatmul.mubr.msk.f32.vlgmr.msra.gmra.mrb[10].mxu0 %vm639_vm2, %v1960_v21  ;;  %v2037_v24 = vsel %vm639_vm2, %v1955_v22, -inf }
 0x9e1   : > { %2038 = vmax.xlane.f32.xlu0 %v2037_v24  ;;  %2943 = vmatprep.mubr.msk.f32.mxu0 %vm3267_vm1, %v3266_v36  ;;  %v2755_v23 = vld [vmem:[%s3808_s8] ss:$0 sm:$0xff] }
 0xa6e   : > { %v2039_v25 = vpop.xlane.xlu0 %2038 }
 0xa6f   : > { %v2043_v26 = vsub.f32 %v1955_v22, %v2039_v25 }
 0xa71   : > { %v2045_v27 = vmul.f32 1.442695, %v2043_v26 }
 0xa73   : > { %3119 = vpow2.f32 %v2045_v27 }
 0xa7d   : > { %v3120_v28 = vpop.eup %3119 }
 0xa7e   : > { %v2049_v29 = vsel %vm639_vm2, %v3120_v28, 0.0 }
 0xa7f   : > { %2050 = vadd.xlane.f32.xlu0 %v2049_v29  ;;  %v2456_v29 = vld [vmem:[%s3811_s11 + $0x8] sm:$0xff] }
 0xab3   : > { %v2033_v30 = vpop.f32.mrb[10].mxu0 }
 0xab4   : > { %v2935_v31 = vpop.f32.mrb[11].mxu0  ;;  %v2040_v32 = vsel %vm639_vm2, %v2033_v30, -inf }
 0xab5   : > { %2041 = vmax.xlane.f32.xlu1 %v2040_v32  ;;  %v2457_v31 = vld [vmem:[%s3811_s11 + $0x10] sm:$0xff]  ;;  %v2458_v32 = vld [vmem:[%s3811_s11 + $0x18] sm:$0xff] }
 0xac6   : > { %2138 = vrot.lane.b32.xlu1 %v3486_v39, %s3278_s15 }
 0xb0c   : > { %v2051_v33 = vpop.xlane.xlu0 %2050 }
 0xb0d   : > { %3121 = vrcp.f32 %v2051_v33  ;;  %v3001_v33 = vpack.c.bf16 %v2458_v32, %v2457_v31 }
 0xb17   : > { %v3122_v36 = vpop.eup %3121 }
 0xb18   : > { %v2056_v34 = vmul.f32 %v3122_v36, %v3120_v28  ;;  %v2455_v28 = vld [vmem:[%s3811_s11] sm:$0xff] }
 0xb19   : > { %v2459_v36 = vld [vmem:[%s3811_s11 + $0x20] sm:$0xff] }
 0xb1a   : > { %2747 = vst.msk [vmem:[%s3522_s26 + $0x18] sm:$0xff] %vm639_vm2, %v2056_v34 }
 0xb42   : > { %v2042_v35 = vpop.xlane.xlu1 %2041 }
 0xb43   : > { %v2044_v37 = vsub.f32 %v2033_v30, %v2042_v35  ;;  %v2997_v30 = vpack.c.bf16 %v2456_v29, %v2455_v28 }
 0xb45   : > { %v2047_v38 = vmul.f32 1.442695, %v2044_v37  ;;  %v2461_v37 = vld [vmem:[%s3811_s11 + $0x30] sm:$0xff] }
 0xb46   : > { %v2139_v40 = vpop.permute.xlu1 %2138 }
 0xb47   : > { %3123 = vpow2.f32 %v2047_v38  ;;  %2942 = vmatpush3.msra.mxu0 %v2139_v40  ;;  %v2462_v38 = vld [vmem:[%s3811_s11 + $0x38] sm:$0xff] }
 0xb48   : > { %2946 = vmatprep.subr.mxu0 %v2214_v47  ;;  %v3009_v40 = vpack.c.bf16 %v2462_v38, %v2461_v37 }
 0xb51   : > { %v3124_v42 = vpop.eup %3123 }
 0xb52   : > { %v2052_v43 = vsel %vm639_vm2, %v3124_v42, 0.0 }
 0xb53   : > { %2053 = vadd.xlane.f32.xlu0 %v2052_v43 }
 0xb69   : > { %2062 = vrot.lane.b32.xlu0 %v3488_v41, %s3278_s15  ;;  %s2773_s15 = sshll.u32 %s3379_s17, 10 }
 0xb6a   : > { %s3708_s20 = scalar_lea.hbm %s3814_s14, %s2773_s15 }
 0xbe0   : > { %v2054_v39 = vpop.xlane.xlu0 %2053 }
 0xbe1   : > { %3125 = vrcp.f32 %v2054_v39 }
 0xbe4   : > { %v2063_v44 = vpop.permute.xlu0 %2062 }
 0xbe5   : > { %2937 = vmatpush3.msra.mxu1 %v2063_v44 }
 0xbe6   : > { %2939 = vmatmul.mubr.msk.f32.vlgmr.msra.gmra.mrb[20].mxu1 %vm639_vm2, %v2056_v34  ;;  %2990 = vmatprep.subr.bf16.mxu1 %v2989_v8  ;;  %v2460_v34 = vld [vmem:[%s3811_s11 + $0x28] sm:$0xff] }
 0xbe7   : > { %2992 = vmatpush3.bf16.msra.mxu1 %v2989_v8  ;;  %v3005_v35 = vpack.c.bf16 %v2460_v34, %v2459_v36 }
 0xbe8   : > { %2994 = vmatprep.subr.bf16.mxu1 %v2993_v12 }
 0xbeb   : > { %v3126_v45 = vpop.eup %3125  ;;  %2996 = vmatpush3.bf16.msra.mxu1 %v2993_v12 }
 0xbec   : > { %v2058_v46 = vmul.f32 %v3126_v45, %v3124_v42  ;;  %v2756_v42 = vld [vmem:[%s3810_s10] ss:$0 sm:$0xff] }
 0xbee   : > { %2748 = vst.msk [vmem:[%s3522_s26 + $0x38] sm:$0xff] %vm639_vm2, %v2058_v46  ;;  %2944 = vmatmul.mubr.msk.f32.vlgmr.msra.gmra.mrb[12].mxu0 %vm639_vm2, %v2058_v46 }
 0xbef   : > { %2947 = vmatpush3.msra.mxu0 %v2214_v47 }
 0xbf0   : > { %2998 = vmatprep.subr.bf16.mxu0 %v2997_v30 }
 0xcb9   : > { %v2134_v48 = vpop.f32.mrb[20].mxu1 }
 0xcba   : > { %v2940_v41 = vpop.f32.mrb[21].mxu1  ;;  %2948 = vmatprep.mubr.msk.f32.mxu0 %vm639_vm2, %v2134_v48 }
 0xcc1   : > { %v2210_v49 = vpop.f32.mrb[12].mxu0 }
 0xcc2   : > { %v2945_v50 = vpop.f32.mrb[13].mxu0  ;;  %2949 = vmatmul.mubr.msk.f32.vlgmr.msra.gmra.mrb[6].mxu0 %vm639_vm2, %v2210_v49 }
 0xcc3   : > { %3000 = vmatpush3.bf16.msra.mxu0 %v2997_v30 }
 0xcc4   : > { %3002 = vmatprep.subr.bf16.mxu0 %v3001_v33 }
 0xcc7   : > { %3004 = vmatpush3.bf16.msra.mxu0 %v3001_v33 }
 0xcc8   : > { %3006 = vmatprep.subr.bf16.mxu0 %v3005_v35 }
 0xccb   : > { %3008 = vmatpush3.bf16.msra.mxu0 %v3005_v35 }
 0xccc   : > { %3010 = vmatprep.subr.bf16.mxu0 %v3009_v40 }
 0xccf   : > { %3012 = vmatpush3.bf16.msra.mxu0 %v3009_v40 }
 0xd95   : > { %v2950_v51 = vpop.f32.mrb[6].mxu0 }
 0xd96   : > { %v2299_v53 = vadd.f32 %v2950_v51, %v3447_v1  ;;  %v2287_v54 = vpop.f32.mrb[7].mxu0 }
 0xd97   : > { %v2298_v55 = vadd.f32 %v2287_v54, %v3445_v0 }
 0xd98   : > { %v3657_v56 = vadd.f32 %v2753_v52, %v2299_v53 }
 0xd99   : > { %v3659_v57 = vadd.f32 %v2753_v52, %v2298_v55 }
 0xd9a   : > { %v2314_v58 = vsel %vm500_vm0, %v3657_v56, 0.0 }
 0xd9b   : > { %2315 = vadd.xlane.f32.xlu0 %v2314_v58  ;;  %v2311_v59 = vsel %vm500_vm0, %v3659_v57, 0.0 }
 0xd9c   : > { %2312 = vadd.xlane.f32.xlu1 %v2311_v59 }
 0xe28   : > { %v2316_v60 = vpop.xlane.xlu0 %2315 }
 0xe29   : > { %v2318_v61 = vmul.f32 0.03125, %v2316_v60  ;;  %v2313_v62 = vpop.xlane.xlu1 %2312 }
 0xe2a   : > { %v2317_v63 = vmul.f32 0.03125, %v2313_v62 }
 0xe2b   : > { %v2320_v1 = vsub.f32 %v3657_v56, %v2318_v61 }
 0xe2c   : > { %v2319_v0 = vsub.f32 %v3659_v57, %v2317_v63 }
 0xe2d   : > { %v2322_v2 = vmul.f32 %v2320_v1, %v2320_v1 }
 0xe2e   : > { %v2321_v3 = vmul.f32 %v2319_v0, %v2319_v0 }
 0xe2f   : > { %v2326_v4 = vsel %vm500_vm0, %v2322_v2, 0.0 }
 0xe30   : > { %2327 = vadd.xlane.f32.xlu1 %v2326_v4  ;;  %v2323_v5 = vsel %vm500_vm0, %v2321_v3, 0.0 }
 0xe31   : > { %2324 = vadd.xlane.f32.xlu0 %v2323_v5 }
 0xebd   : > { %v2328_v13 = vpop.xlane.xlu1 %2327 }
 0xebe   : > { %v2330_v10 = vmul.f32 0.03125, %v2328_v13  ;;  %v2325_v14 = vpop.xlane.xlu0 %2324 }
 0xebf   : > { %v2329_v15 = vmul.f32 0.03125, %v2325_v14 }
 0xec0   : > { %v2332_v16 = vadd.f32 1e-05, %v2330_v10 }
 0xec1   : > { %v2331_v17 = vadd.f32 1e-05, %v2329_v15 }
 0xec2   : > { %3127 = vrsqrt.f32 %v2332_v16 }
 0xec3   : > { %3129 = vrsqrt.f32 %v2331_v17 }
 0xecc   : > { %v3128_v18 = vpop.eup %3127 }
 0xecd   : > { %v3130_v20 = vpop.eup %3129  ;;  %v2336_v21 = vmul.f32 %v3128_v18, %v2320_v1 }
 0xece   : > { %v2335_v22 = vmul.f32 %v3130_v20, %v2319_v0 }
 0xecf   : > { %v2344_v24 = vmul.f32 %v2754_v19, %v2336_v21 }
 0xed0   : > { %v2343_v25 = vmul.f32 %v2754_v19, %v2335_v22 }
 0xed1   : > { %v2352_v27 = vadd.f32 %v2755_v23, %v2344_v24 }
 0xed2   : > { %v2351_v26 = vadd.f32 %v2755_v23, %v2343_v25 }
 0xed4   : > { %2959 = vmatprep.mubr.msk.f32.mxu1 %vm500_vm0, %v2351_v26 }
 0xed5   : > { %2960 = vmatmul.mubr.msk.f32.vlgmr.msra.gmra.mrb[22].mxu1 %vm500_vm0, %v2352_v27 }
 0xfa8   : > { %v2961_v43 = vpop.f32.mrb[22].mxu1 }
 0xfa9   : > { %v2442_v39 = vadd.f32 %v2961_v43, %v2756_v42  ;;  %v2436_v44 = vpop.f32.mrb[23].mxu1 }
 0xfaa   : > { %v2437_v45 = vadd.f32 %v2756_v42, %v2436_v44 }
 0xfab   : > { %v2448_v46 = vmul.f32 0.70710677, %v2442_v39  ;;  %v2446_v52 = vmul.f32 0.5, %v2442_v39 }
 0xfac   : > { %v2447_v47 = vmul.f32 0.70710677, %v2437_v45  ;;  %v2445_v50 = vmul.f32 0.5, %v2437_v45 }
 0xfad   : > { %3131 = verf.f32 %v2448_v46 }
 0xfae   : > { %3133 = verf.f32 %v2447_v47 }
 0xfb7   : > { %v3132_v48 = vpop.eup %3131 }
 0xfb8   : > { %v3134_v41 = vpop.eup %3133  ;;  %v2452_v49 = vadd.f32 1.0, %v3132_v48 }
 0xfb9   : > { %v2451_v51 = vadd.f32 1.0, %v3134_v41 }
 0xfba   : > { %v2454_v54 = vmul.f32 %v2452_v49, %v2446_v52 }
 0xfbb   : > { %v2453_v53 = vmul.f32 %v2451_v51, %v2445_v50 }
 0xfbd   : > { %2978 = vmatprep.mubr.msk.f32.mxu0 %vm2463_vm3, %v2453_v53 }
 0xfbe   : > { %2979 = vmatmul.mubr.msk.f32.vlgmr.msra.gmra.mrb[14].mxu0 %vm2463_vm3, %v2454_v54 }
 0xfbf   : > { %3176 = shalt.err (!%p3173_p7)
}
 0xfc0   : > { %s3177_s26 = scalar_lea.hbm %s3708_s20, 1024  ;;  %s3181_s18 = scalar_lea.hbm %s3814_s14, 2048 }
 0xfc1   : > { %p3178_p8 = scmp.ne.s32.totalorder %s3708_s20, %s3177_s26  ;;  %p3182_p1 = scmp.lt.u32.totalorder %s3708_s20, %s3814_s14 }
 0xfc2   : > { %p3183_p0 = scmp.lt.u32.totalorder %s3181_s18, %s3177_s26  ;;  %p3185_p6 = scmp.lt.u32.totalorder %s3177_s26, %s3708_s20 }
 0xfc3   : > { %p3179_p11 = pnand %p3178_p8, %p3837_p9 }
 0xfc4   : > { %p3184_p5 = por %p3183_p0, %p3182_p1 }
 0xfc5   : > { %p3180_p13 = pneg %p3179_p11 }
 0xfc6   : > { %p3186_p10 = por %p3185_p6, %p3184_p5 }
 0xfc8   : > { %p3187_p12 = pnand %p3186_p10, %p3180_p13 }
 0xfca   : > { %3190 = shalt.err (!%p3187_p12)
}
 0xfcb   : > { %s3280_s0 = smov 128   ;;  %s3281_s21 = smov 8   ;;  %v2761_v58 = vld [vmem:[%s3812_s12] ss:$0 sm:$0xff] }
 0xfcc   : > { %3024 = dma.vmem_to_hbm [thread:$0]  (%p3837_p9), %s3711_s19, 1024, %s3708_s20, %s2564_s24, %s3280_s0, %s3280_s0, %s3281_s21  }
 0xfcd   : > { %s2706_s15 = sshll.u32 %s3517_s28, 4  ;;  %s2771_s18 = sshll.u32 %s3379_s17, 8 }
 0xfce   : > { %s480_s25 = scalar_lea.vmem [#allocation5], %s2706_s15  ;;  %s3750_s19 = scalar_lea.hbm %s3813_s13, %s2771_s18 }
 0xfcf   : > { %s2577_s27 = sshll.u32 %s480_s25, 4  ;;  %s2559_s17 = scalar_lea.sflag [#allocation4], %s3517_s28  ;;  %s3752_s27 = int_to_ptr.vmem [resolvable:$true] %s2577_s27 }
 0xfd0   : > { %s3191_s24 = scalar_lea.vmem %s3752_s27, 256  ;;  %s3282_s15 = smov [#allocation5]  }
 0xfd1   : > { %p3192_p2 = scmp.ne.s32.totalorder %s3752_s27, %s3191_s24  ;;  %s3195_s26 = sshll.u32 %s3282_s15, 4  ;;  %s3196_s26 = int_to_ptr.vmem [resolvable:$false] %s3195_s26 }
 0xfd2   : > { %s3197_s1 = scalar_lea.vmem %s3196_s26, 512  ;;  %p3198_p7 = scmp.lt.s32.totalorder %s3752_s27, %s3196_s26 }
 0xfd3   : > { %p3193_p3 = pnand %p3192_p2, %p3837_p9  ;;  %p3199_p8 = scmp.lt.s32.totalorder %s3197_s1, %s3191_s24 }
 0xfd5   : > { %p3194_p4 = pneg %p3193_p3  ;;  %p3200_p11 = por %p3199_p8, %p3198_p7 }
 0xfd7   : > { %p3201_p13 = pnand %p3200_p11, %p3194_p4 }
0x1091   : > { %v2980_v55 = vpop.f32.mrb[14].mxu0 }
0x1092   : > { %v2546_v59 = vadd.f32 %v2980_v55, %v3657_v56  ;;  %v2536_v60 = vpop.f32.mrb[15].mxu0 }
0x1093   : > { %v2545_v61 = vadd.f32 %v2536_v60, %v3659_v57 }
0x1094   : > { %v2555_v62 = vadd.f32 %v2761_v58, %v2546_v59 }
0x1095   : > { %v2554_v63 = vadd.f32 %v2761_v58, %v2545_v61 }
0x1096   : > { %2557 = vst.msk [vmem:[%s480_s25 + $0x8] sm:$0xff] %vm500_vm0, %v2555_v62 }
0x1097   : > { %2556 = vst.msk [vmem:[%s480_s25] sm:$0xff] %vm500_vm0, %v2554_v63 }
0x1098   : > { %3204 = shalt.err (!%p3201_p13)
}
0x1099   : > { %s3205_s22 = scalar_lea.hbm %s3750_s19, 256  ;;  %s3209_s20 = scalar_lea.hbm %s3813_s13, 512 }
0x109a   : > { %p3206_p1 = scmp.ne.s32.totalorder %s3750_s19, %s3205_s22  ;;  %p3210_p6 = scmp.lt.u32.totalorder %s3750_s19, %s3813_s13 }
0x109b   : > { %p3211_p10 = scmp.lt.u32.totalorder %s3209_s20, %s3205_s22  ;;  %p3213_p2 = scmp.lt.u32.totalorder %s3205_s22, %s3750_s19 }
0x109c   : > { %p3207_p0 = pnand %p3206_p1, %p3837_p9 }
0x109d   : > { %p3212_p12 = por %p3211_p10, %p3210_p6 }
0x109e   : > { %p3208_p5 = pneg %p3207_p0 }
0x109f   : > { %p3214_p3 = por %p3213_p2, %p3212_p12 }
0x10a1   : > { %p3215_p4 = pnand %p3214_p3, %p3208_p5 }
0x10a3   : > { %3218 = shalt.err (!%p3215_p4)
}
0x10a4   : > { %3023 = dma.vmem_to_hbm [thread:$0]  (%p3837_p9), %s3752_s27, 256, %s3750_s19, %s2559_s17, %s3280_s0, %s3280_s0, %s3281_s21  }
0x10a5 PF: > { %s3838_s24 = sld [smem:[#allocation14_spill]]  ;;  %p3040_p7 = scmp.ge.s32.totalorder %s3261_s16, 2 }
0x10a6   : > { %s2609_s1 = sand.u32 1, %s3249_s29  }
0x10a7   : > { %s2610_s22 = scalar_lea.sflag [#allocation4], %s2609_s1 }
0x10ab   : > { %p3839_p8 = scmp.ne.s32.totalorder %s3838_s24, 0 }
0x10ad   : > { %p3032_p11 = pnand %p3040_p7, %p3839_p8 }
0x10af   : > { %3240 = dma.done.wait (!%p3032_p11), %s2610_s22, 256  }
0x10b0   : > { %3242 = vsyncadd (!%p3032_p11), %s2610_s22, 4294967040  ;;  %s2619_s23 = scalar_lea.sflag [#allocation7], %s2609_s1 }
0x10b1   : > { %3244 = dma.done.wait (!%p3032_p11), %s2619_s23, 1024  }
0x10b2   : > { %3246 = vsyncadd (!%p3032_p11), %s2619_s23, 4294966272  ;;  %s3840_s16 = sld [smem:[#allocation12_spill]]  ;;  %s3841_s28 = sld [smem:[#allocation11_spill]] }
0x10b3   : > { %s3842_s15 = sld [smem:[#allocation13_spill]]  ;;  %s3843_s29 = smov %s3253_s30 }
0x10b8   : > { %p29_p9 = scmp.ge.s32.totalorder %s3840_s16, 4   ;;  %s3844_s30 = smov %s3841_s28 }
0x10ba   :  { %31 = sbr.rel (!%p29_p9) target bundleno = 9 (0x9), region = 132 }
0x10c1   :  { %2624 = vsyncpa [#allocation3], 1 }
0x10c2   :  { %2626 = vsyncpa [#allocation3 + $0x1], 1 }
0x10c3   :  { %2627 = vsyncpa [#allocation4], 1 }
0x10c4   :  { %2629 = vsyncpa [#allocation4 + $0x1], 1 }
0x10c5   :  { %2630 = vsyncpa [#allocation7], 1 }
0x10c6   :  { %2632 = vsyncpa [#allocation7 + $0x1], 1 }

// kernel: tpu_custom_call.1
= control target key start
LH: loop header
LB: loop body
LE: loop exit
PB: predicated region body
PF: predicated region fallthrough
CT: control target
= control target key end

     0   :  { %s3800_s0 = inlined_call_operand.vmem [shape: f32[4,8,32], index: 0, kind: input, shape index: {}]   ;;  %s3801_s1 = inlined_call_operand.vmem [shape: f32[32,96], index: 1, kind: input, shape index: {}]   ;;  %s3802_s2 = inlined_call_operand.vmem [shape: f32[1,96], index: 2, kind: input, shape index: {}]   ;;  %s3803_s3 = inlined_call_operand.vmem [shape: f32[32,32], index: 3, kind: input, shape index: {}]   ;;  %s3804_s4 = inlined_call_operand.vmem [shape: f32[1,32], index: 4, kind: input, shape index: {}]   ;;  %s3805_s5 = inlined_call_operand.vmem [shape: f32[1,32], index: 5, kind: input, shape index: {}]   ;;  %s3806_s6 = inlined_call_operand.vmem [shape: f32[1,32], index: 6, kind: input, shape index: {}]   ;;  %s3807_s7 = inlined_call_operand.vmem [shape: f32[1,32], index: 7, kind: input, shape index: {}]   ;;  %s3808_s8 = inlined_call_operand.vmem [shape: f32[1,32], index: 8, kind: input, shape index: {}]   ;;  %s3809_s9 = inlined_call_operand.hbm [shape: f32[32,64], index: 9, kind: input, shape index: {}]   ;;  %s3810_s10 = inlined_call_operand.vmem [shape: f32[1,64], index: 10, kind: input, shape index: {}]   ;;  %s3811_s11 = inlined_call_operand.vmem [shape: f32[64,32], index: 11, kind: input, shape index: {}]   ;;  %s3812_s12 = inlined_call_operand.vmem [shape: f32[1,32], index: 12, kind: input, shape index: {}]   ;;  %s3813_s13 = inlined_call_operand.hbm [shape: f32[4,8,32], index: 13, kind: output, shape index: {0}]   ;;  %s3814_s14 = inlined_call_operand.hbm [shape: f32[4,4,8,8], index: 14, kind: output, shape index: {1}]  }
   0x1   :  { %3822 = sst [smem:[#allocation15_spill]] %s3800_s0 }
   0x2   :  { %3823 = sst [smem:[#allocation16_spill]] %s3801_s1 }
   0x3   :  { %20 = vsyncpa [#allocation3], 0 }
   0x4   :  { %21 = vsyncpa [#allocation4], 0 }
   0x5   :  { %23 = vsyncpa [#allocation4 + $0x1], 0 }
   0x6   :  { %24 = vsyncpa [#allocation7], 0 }
   0x7   :  { %26 = vsyncpa [#allocation7 + $0x1], 0  ;;  %s3358_s29 = smov 0   ;;  %s3360_s30 = smov 0  }
   0x8   :  { %s3362_s15 = smov 0   ;;  %s3364_s16 = smov 0  }
   0x9 LB: > { %3824 = sst [smem:[#allocation11_spill]] %s3257_s15  ;;  %s3379_s17 = sadd.s32 4294967295, %s3261_s16   ;;  %s3261_s16 = sphi %s3364_s16, %s3840_s16   ;;  %s3257_s15 = sphi %s3362_s15, %s3842_s15   ;;  %s3253_s30 = sphi %s3360_s30, %s3844_s30   ;;  %s3249_s29 = sphi %s3358_s29, %s3843_s29  }
   0xa   : > { %s2700_s18 = sadd.s32 4294967294, %s3261_s16   ;;  %s3383_s19 = sadd.s32 1, %s3261_s16  }
   0xb   : > { %3825 = sst [smem:[#allocation12_spill]] %s3383_s19  ;;  %s317_s20 = sadd.s32 1, %s3257_s15 }
   0xc   : > { %s314_s21 = ssub.s32 %s3261_s16, %s3383_s19  ;;  %p327_p0 = scmp.ne.s32.totalorder %s3257_s15, %s3253_s30 }
   0xd   : > { %p315_p1 = scmp.eq.s32.totalorder %s314_s21, 0  ;;  %p328_p2 = scmp.eq.s32.totalorder %s3379_s17, 1 }
   0xe   : > { %p333_p3 = scmp.ne.s32.totalorder %s3253_s30, %s3249_s29  ;;  %p334_p4 = scmp.eq.s32.totalorder %s2700_s18, 1 }
   0xf   : > { %s3394_s22 = scalar_select %p315_p1, %s3257_s15, %s317_s20  }
  0x10   : > { %p3396_p5 = por %p328_p2, %p327_p0  ;;  %p3400_p6 = por %p334_p4, %p333_p3 }
  0x11   : > { %3826 = sst [smem:[#allocation13_spill]] %s3394_s22  ;;  %p2701_p7 = scmp.ge.s32.totalorder %s3261_s16, 1 }
  0x12   : > { %s3827_s23 = scalar_select %p3396_p5, 1, 0 }
  0x13   : > { %s3828_s24 = scalar_select %p3400_p6, 1, 0 }
  0x14   : > { %p367_p8 = scmp.lt.s32.totalorder %s3261_s16, 3  ;;  %p3819_p9 = scmp.eq.s32.totalorder %s3379_s17, 0 }
  0x15   : > { %3829 = sst [smem:[#allocation14_spill]] %s3828_s24  ;;  %s3263_s26 = smov [#allocation2]  }
  0x16   : > { %p3407_p10 = pnand %p2701_p7, %p367_p8  ;;  %s403_s27 = sshll.u32 %s3263_s26, 4  ;;  %s404_s27 = int_to_ptr.vmem [resolvable:$true] %s403_s27 }
  0x17   : > { %s3135_s21 = scalar_lea.hbm %s3809_s9, 512 }
  0x18   : > { %s3830_s25 = scalar_select %p3407_p10, 1, 0 }
  0x19   : > { %p3027_p11 = pneg %p3407_p10  ;;  %p3136_p13 = scmp.ne.s32.totalorder %s3809_s9, %s3135_s21 }
  0x1a   : > { %p3142_p3 = scmp.lt.u32.totalorder %s3135_s21, %s3809_s9 }
  0x1b   : > { %p3415_p12 = pnand %p3819_p9, %p3027_p11 }
  0x1d   : > { %p3137_p0 = pneg %p3415_p12 }
  0x1f   : > { %p3138_p1 = pnand %p3137_p0, %p3136_p13 }
  0x21   : > { %p3139_p2 = pneg %p3138_p1 }
  0x23   : > { %p3144_p4 = pnand %p3142_p3, %p3139_p2 }
  0x25   : > { %3147 = shalt.err (!%p3144_p4)
}
  0x26   : > { %s3148_s24 = scalar_lea.vmem %s404_s27, 512  ;;  %p3156_p9 = scmp.lt.s32.totalorder %s404_s27, %s404_s27 }
  0x27   : > { %p3149_p7 = scmp.ne.s32.totalorder %s404_s27, %s3148_s24  ;;  %p3157_p6 = scmp.lt.s32.totalorder %s3148_s24, %s3148_s24 }
  0x29   : > { %p3151_p8 = pnand %p3149_p7, %p3137_p0  ;;  %p3158_p5 = por %p3157_p6, %p3156_p9 }
  0x2b   : > { %p3152_p11 = pneg %p3151_p8 }
  0x2d   : > { %p3159_p10 = pnand %p3158_p5, %p3152_p11 }
  0x2f   : > { %3162 = shalt.err (!%p3159_p10)
}
  0x30   : > { %s3264_s15 = smov 128   ;;  %s3265_s22 = smov 8  }
  0x31   : > { %3030 = dma.hbm_to_vmem [thread:$0]  (!%p3415_p12), %s3809_s9, 512, %s404_s27, [#allocation3], %s3264_s15, %s3264_s15, %s3265_s22  }
  0x32   : > { %p3832_p13 = scmp.ne.s32.totalorder %s3830_s25, 0 }
  0x33   : > { %p3833_p1 = scmp.eq.s32.totalorder (!%p3832_p13), %s3379_s17, 0 }
  0x34   : > { %437 = sbr.rel (%p3832_p13) target bundleno = 4261 (0x10a5), region = 72 }
  0x3b   : > { %3236 = dma.done.wait (%p3833_p1), [#allocation3], 512   ;;  %p3834_p0 = pmov %p3833_p1 }
  0x3c   : > { %s2708_s19 = sshll.u32 %s3379_s17, 1  ;;  %vm500_vm0 = vcmask 261120   ;;  %s3835_s0 = sld [smem:[#allocation15_spill]]  ;;  %v2710_v27 = vld [vmem:[%s3805_s5] ss:$0 sm:$0xff]  ;;  %v3266_v36 = vmov 0.0  }
  0x3d   : > { %3238 = vsyncadd (%p3834_p0), [#allocation3], 4294966784  ;;  %p489_p5 = scmp.lt.s32.totalorder %s2708_s19, 3  ;;  %s3836_s1 = sld [smem:[#allocation16_spill]]  ;;  %v2711_v29 = vld [vmem:[%s3806_s6] ss:$0 sm:$0xff]  ;;  %2861 = vmatprep.subr.mxu0 %v3266_v36 }
  0x3e   : > { %vm3267_vm1 = vmmov 0   ;;  %v2712_v37 = vld [vmem:[%s3802_s2] ss:$0 sm:$0xff]  ;;  %s3268_s22 = smov 96   ;;  %vm639_vm2 = vcmask 64512   ;;  %s3269_s18 = smov 88  }
  0x3f   : > { %s3846_s19 = smov (!%p489_p5, %s2708_s19), 3  ;;  %2863 = vmatprep.mubr.msk.f32.mxu0 %vm3267_vm1, %v3266_v36  ;;  %s3270_s20 = smov 120   ;;  %vm2463_vm3 = vcmask 523264  }
  0x40   : > { %s2709_s24 = sshll.u32 %s3846_s19, 3  ;;  %s3271_s19 = smov 80  }
  0x41   : > { %s3517_s28 = sand.u32 1, %s3253_s30   ;;  %s3273_s25 = smov 56  }
  0x42   : > { %s492_s26 = scalar_lea.vmem %s3835_s0, %s2709_s24  ;;  %s3272_s24 = smov 64  }
  0x43   : > { %v3445_v0 = vld [vmem:[%s492_s26] sm:$0xff]  ;;  %v3447_v1 = vld [vmem:[%s492_s26 + $0x8] sm:$0xff]  ;;  %v546_v16 = vld [vmem:[%s3836_s1 + $0x10] sm:$0xff]  ;;  %s2707_s21 = sshll.u32 %s3517_s28, 6  ;;  %s3274_s27 = smov 112  }
  0x44   : > { %v501_v2 = vsel %vm500_vm0, %v3445_v0, 0.0  ;;  %v504_v3 = vsel %vm500_vm0, %v3447_v1, 0.0  ;;  %v544_v14 = vld [vmem:[%s3836_s1] sm:$0xff]  ;;  %v545_v15 = vld [vmem:[%s3836_s1 + $0x8] sm:$0xff]  ;;  %v547_v18 = vld [vmem:[%s3836_s1 + $0x18] sm:$0xff]  ;;  %s3522_s26 = scalar_lea.vmem [#allocation6], %s2707_s21 }
  0x45   : > { %502 = vadd.xlane.f32.xlu0 %v501_v2  ;;  %v2981_v17 = vpack.c.bf16 %v545_v15, %v544_v14  ;;  %v2985_v19 = vpack.c.bf16 %v547_v18, %v546_v16  ;;  %s3275_s15 = smov 48   ;;  %p3837_p9 = scmp.ne.s32.totalorder %s3827_s23, 0 }
  0x47   : > { %2982 = vmatprep.subr.bf16.mxu1 %v2981_v17 }
  0x48   : > { %2984 = vmatpush3.bf16.msra.mxu1 %v2981_v17 }
  0x49   : > { %505 = vadd.xlane.f32.xlu0 %v504_v3  ;;  %2986 = vmatprep.subr.bf16.mxu1 %v2985_v19 }
  0x4c   : > { %2988 = vmatpush3.bf16.msra.mxu1 %v2985_v19 }
  0x4d   : > { %2851 = vmatprep.subr.mxu1 %v3266_v36 }
  0xd2   : > { %v503_v4 = vpop.xlane.xlu0 %502 }
  0xd3   : > { %v508_v5 = vmul.f32 0.03125, %v503_v4 }
  0xd5   : > { %v510_v6 = vsub.f32 %v3445_v0, %v508_v5 }
  0xd6   : > { %v506_v7 = vpop.xlane.xlu0 %505 }
  0xd7   : > { %v509_v8 = vmul.f32 0.03125, %v506_v7  ;;  %v512_v9 = vmul.f32 %v510_v6, %v510_v6 }
  0xd9   : > { %v511_v10 = vsub.f32 %v3447_v1, %v509_v8  ;;  %v514_v11 = vsel %vm500_vm0, %v512_v9, 0.0 }
  0xda   : > { %515 = vadd.xlane.f32.xlu1 %v514_v11 }
  0xdb   : > { %v513_v12 = vmul.f32 %v511_v10, %v511_v10 }
  0xdd   : > { %v517_v13 = vsel %vm500_vm0, %v513_v12, 0.0 }
  0xde   : > { %518 = vadd.xlane.f32.xlu1 %v517_v13 }
 0x167   : > { %v516_v20 = vpop.xlane.xlu1 %515 }
 0x168   : > { %v520_v21 = vmul.f32 0.03125, %v516_v20 }
 0x16a   : > { %v522_v22 = vadd.f32 1e-05, %v520_v21 }
 0x16b   : > { %v519_v23 = vpop.xlane.xlu1 %518 }
 0x16c   : > { %3091 = vrsqrt.f32 %v522_v22  ;;  %v521_v24 = vmul.f32 0.03125, %v519_v23 }
 0x16e   : > { %v523_v25 = vadd.f32 1e-05, %v521_v24 }
 0x170   : > { %3093 = vrsqrt.f32 %v523_v25 }
 0x176   : > { %v3092_v26 = vpop.eup %3091 }
 0x177   : > { %v526_v28 = vmul.f32 %v3092_v26, %v510_v6 }
 0x179   : > { %v534_v30 = vmul.f32 %v2710_v27, %v526_v28 }
 0x17a   : > { %v3094_v31 = vpop.eup %3093 }
 0x17b   : > { %v527_v32 = vmul.f32 %v3094_v31, %v511_v10  ;;  %v542_v33 = vadd.f32 %v2711_v29, %v534_v30 }
 0x17d   : > { %v535_v34 = vmul.f32 %v2710_v27, %v527_v32  ;;  %2848 = vmatprep.mubr.msk.f32.mxu1 %vm500_vm0, %v542_v33 }
 0x17f   : > { %v543_v35 = vadd.f32 %v2711_v29, %v535_v34 }
 0x181   : > { %2849 = vmatmul.mubr.msk.f32.vlgmr.msra.gmra.mrb[0].mxu1 %vm500_vm0, %v543_v35 }
 0x182   : > { %2853 = vmatprep.mubr.msk.f32.mxu1 %vm3267_vm1, %v3266_v36 }
 0x254   : > { %v2850_v38 = vpop.f32.mrb[0].mxu1 }
 0x255   : > { %v3486_v39 = vadd.f32 %v2850_v38, %v2712_v37  ;;  %v627_v40 = vpop.f32.mrb[1].mxu1 }
 0x256   : > { %v3488_v41 = vadd.f32 %v2712_v37, %v627_v40 }
 0x257   : > { %715 = vrot.lane.b32.xlu1 %v3486_v39, %s3268_s22 }
 0x258   : > { %637 = vrot.lane.b32.xlu0 %v3488_v41, %s3268_s22  ;;  %s3276_s22 = smov 72  }
 0x2c9   : > { %v716_v43 = vpop.permute.xlu1 %715 }
 0x2ca   : > { %v638_v42 = vpop.permute.xlu0 %637 }
 0x2cb   : > { %2852 = vmatpush3.xpose.msk.msra.mxu1 %vm639_vm2, %v638_v42 }
 0x2cc   : > { %2856 = vmatprep.subr.mxu1 %v3266_v36 }
 0x2ce   : > { %2854 = vmatmul.mubr.msk.f32.vlgmr.msra.gmra.mrb[2].mxu1 %vm639_vm2, %v3488_v41 }
 0x2cf   : > { %2857 = vmatpush3.xpose.msk.msra.mxu1 %vm639_vm2, %v716_v43  ;;  %2858 = vmatprep.mubr.msk.f32.mxu1 %vm3267_vm1, %v3266_v36 }
 0x2d0   : > { %2866 = vmatprep.subr.mxu1 %v3266_v36 }
 0x2d2   : > { %2859 = vmatmul.mubr.msk.f32.vlgmr.msra.gmra.mrb[4].mxu1 %vm639_vm2, %v3486_v39 }
 0x2d3   : > { %2868 = vmatprep.mubr.msk.f32.mxu1 %vm3267_vm1, %v3266_v36 }
 0x3a1   : > { %v710_v44 = vpop.f32.mrb[2].mxu1 }
 0x3a2   : > { %v2855_v45 = vpop.f32.mrb[3].mxu1  ;;  %v791_v49 = vsel %vm639_vm2, %v710_v44, -inf }
 0x3a5   : > { %v787_v46 = vpop.f32.mrb[4].mxu1 }
 0x3a6   : > { %v2860_v47 = vpop.f32.mrb[5].mxu1  ;;  %v794_v48 = vsel %vm639_vm2, %v787_v46, -inf }
 0x3a7   : > { %795 = vmax.xlane.f32.xlu1 %v794_v48 }
 0x3b8   : > { %1048 = vrot.lane.b32.xlu1 %v3486_v39, %s3269_s18 }
 0x3bc   : > { %1046 = vrot.lane.b32.xlu1 %v3486_v39, %s3270_s20 }
 0x3e0   : > { %792 = vmax.xlane.f32.xlu1 %v791_v49 }
 0x3f1   : > { %970 = vrot.lane.b32.xlu1 %v3488_v41, %s3269_s18  ;;  %s3277_s18 = smov 104  }
 0x3f5   : > { %968 = vrot.lane.b32.xlu1 %v3488_v41, %s3270_s20 }
 0x3f9   : > { %1466 = vrot.lane.b32.xlu1 %v3488_v41, %s3271_s19 }
 0x434   : > { %v796_v50 = vpop.xlane.xlu1 %795 }
 0x435   : > { %v798_v51 = vsub.f32 %v787_v46, %v796_v50 }
 0x437   : > { %v801_v52 = vmul.f32 1.442695, %v798_v51 }
 0x438   : > { %v1049_v55 = vpop.permute.xlu1 %1048 }
 0x439   : > { %3095 = vpow2.f32 %v801_v52 }
 0x43c   : > { %v1047_v56 = vpop.permute.xlu1 %1046 }
 0x443   : > { %v3096_v53 = vpop.eup %3095 }
 0x444   : > { %v806_v54 = vsel %vm639_vm2, %v3096_v53, 0.0 }
 0x445   : > { %807 = vadd.xlane.f32.xlu0 %v806_v54  ;;  %v1301_v54 = vld [vmem:[%s3803_s3 + $0x8] sm:$0xff] }
 0x45b   : > { %891 = vrot.lane.b32.xlu0 %v3486_v39, %s3272_s24 }
 0x46d   : > { %v793_v57 = vpop.xlane.xlu1 %792 }
 0x46e   : > { %v797_v58 = vsub.f32 %v710_v44, %v793_v57 }
 0x470   : > { %v799_v59 = vmul.f32 1.442695, %v797_v58 }
 0x471   : > { %v971_v7 = vpop.permute.xlu1 %970 }
 0x472   : > { %3097 = vpow2.f32 %v799_v59 }
 0x475   : > { %v969_v9 = vpop.permute.xlu1 %968 }
 0x479   : > { %v1467_v26 = vpop.permute.xlu1 %1466 }
 0x47c   : > { %v3098_v60 = vpop.eup %3097 }
 0x47d   : > { %v803_v61 = vsel %vm639_vm2, %v3098_v60, 0.0 }
 0x47e   : > { %804 = vadd.xlane.f32.xlu0 %v803_v61 }
 0x494   : > { %815 = vrot.lane.b32.xlu0 %v3488_v41, %s3272_s24  ;;  %s2564_s24 = scalar_lea.sflag [#allocation7], %s3517_s28 }
 0x4d2   : > { %v808_v62 = vpop.xlane.xlu0 %807 }
 0x4d3   : > { %3099 = vrcp.f32 %v808_v62 }
 0x4d6   : > { %v892_v63 = vpop.permute.xlu0 %891 }
 0x4d7   : > { %2867 = vmatpush3.msra.mxu1 %v892_v63 }
 0x4d8   : > { %2876 = vmatprep.subr.mxu1 %v3266_v36 }
 0x4dd   : > { %v3100_v2 = vpop.eup %3099 }
 0x4de   : > { %v812_v3 = vmul.f32 %v3100_v2, %v3096_v53 }
 0x4e0   : > { %2869 = vmatmul.mubr.msk.f32.vlgmr.msra.gmra.mrb[6].mxu1 %vm639_vm2, %v812_v3  ;;  %814 = vst.msk [vmem:[%s3522_s26 + $0x20] sm:$0xff] %vm639_vm2, %v812_v3 }
 0x4e1   : > { %2877 = vmatpush3.xpose.msk.msra.mxu1 %vm639_vm2, %v1049_v55  ;;  %2878 = vmatprep.mubr.msk.f32.mxu1 %vm3267_vm1, %v3266_v36  ;;  %v967_v55 = vld [vmem:[%s3803_s3] sm:$0xff] }
 0x4e2   : > { %2886 = vmatprep.subr.mxu1 %v3266_v36 }
 0x4e4   : > { %2879 = vmatmul.mubr.msk.f32.vlgmr.msra.gmra.mrb[8].mxu1 %vm639_vm2, %v1047_v56 }
 0x4e5   : > { %2888 = vmatprep.mubr.msk.f32.mxu1 %vm3267_vm1, %v3266_v36 }
 0x50b   : > { %v805_v4 = vpop.xlane.xlu0 %804 }
 0x50c   : > { %3101 = vrcp.f32 %v805_v4 }
 0x50f   : > { %v816_v5 = vpop.permute.xlu0 %815 }
 0x510   : > { %2862 = vmatpush3.msra.mxu0 %v816_v5 }
 0x511   : > { %2871 = vmatprep.subr.mxu0 %v3266_v36 }
 0x516   : > { %v3102_v6 = vpop.eup %3101 }
 0x517   : > { %v810_v8 = vmul.f32 %v3102_v6, %v3098_v60 }
 0x519   : > { %813 = vst.msk [vmem:[%s3522_s26] sm:$0xff] %vm639_vm2, %v810_v8  ;;  %2864 = vmatmul.mubr.msk.f32.vlgmr.msra.gmra.mrb[0].mxu0 %vm639_vm2, %v810_v8  ;;  %v1797_v8 = vld [vmem:[%s3803_s3 + $0x10] sm:$0xff] }
 0x51a   : > { %2872 = vmatpush3.xpose.msk.msra.mxu0 %vm639_vm2, %v971_v7  ;;  %2873 = vmatprep.mubr.msk.f32.mxu0 %vm3267_vm1, %v3266_v36 }
 0x51b   : > { %2881 = vmatprep.subr.mxu0 %v3266_v36 }
 0x51d   : > { %2874 = vmatmul.mubr.msk.f32.vlgmr.msra.gmra.mrb[2].mxu0 %vm639_vm2, %v969_v9 }
 0x51e   : > { %2883 = vmatprep.mubr.msk.f32.mxu0 %vm3267_vm1, %v3266_v36 }
 0x5b3   : > { %v3544_v10 = vpop.f32.mrb[6].mxu1 }
 0x5b4   : > { %v2870_v11 = vpop.f32.mrb[7].mxu1 }
 0x5b7   : > { %v1120_v12 = vpop.f32.mrb[8].mxu1 }
 0x5b8   : > { %v2880_v13 = vpop.f32.mrb[9].mxu1  ;;  %v1127_v14 = vsel %vm639_vm2, %v1120_v12, -inf }
 0x5b9   : > { %1128 = vmax.xlane.f32.xlu0 %v1127_v14 }
 0x5cf   : > { %1225 = vrot.lane.b32.xlu0 %v3486_v39, %s3273_s25 }
 0x5d3   : > { %1464 = vrot.lane.b32.xlu0 %v3488_v41, %s3274_s27 }
 0x5d7   : > { %1542 = vrot.lane.b32.xlu0 %v3486_v39, %s3274_s27 }
 0x5ec   : > { %v3551_v15 = vpop.f32.mrb[0].mxu0 }
 0x5ed   : > { %v2865_v16 = vpop.f32.mrb[1].mxu0 }
 0x5f0   : > { %v1042_v17 = vpop.f32.mrb[2].mxu0 }
 0x5f1   : > { %v2875_v18 = vpop.f32.mrb[3].mxu0  ;;  %v1124_v25 = vsel %vm639_vm2, %v1042_v17, -inf }
 0x646   : > { %v1129_v19 = vpop.xlane.xlu0 %1128 }
 0x647   : > { %v1131_v20 = vsub.f32 %v1120_v12, %v1129_v19 }
 0x649   : > { %v1134_v21 = vmul.f32 1.442695, %v1131_v20 }
 0x64a   : > { %v1226_v22 = vpop.permute.xlu0 %1225 }
 0x64b   : > { %3103 = vpow2.f32 %v1134_v21  ;;  %2887 = vmatpush3.msra.mxu1 %v1226_v22 }
 0x64c   : > { %2901 = vmatprep.subr.mxu1 %v3266_v36 }
 0x64e   : > { %v1465_v30 = vpop.permute.xlu0 %1464 }
 0x652   : > { %v1543_v32 = vpop.permute.xlu0 %1542 }
 0x655   : > { %v3104_v23 = vpop.eup %3103 }
 0x656   : > { %v1139_v24 = vsel %vm639_vm2, %v3104_v23, 0.0 }
 0x657   : > { %1140 = vadd.xlane.f32.xlu1 %v1139_v24 }
 0x668   : > { %1544 = vrot.lane.b32.xlu1 %v3486_v39, %s3271_s19  ;;  %s2594_s19 = sshll.u32 %s3522_s26, 4  ;;  %s3711_s19 = int_to_ptr.vmem [resolvable:$true] %s2594_s19 }
 0x669   : > { %s3163_s21 = scalar_lea.vmem %s3711_s19, 1024 }
 0x66a   : > { %p3164_p6 = scmp.ne.s32.totalorder %s3711_s19, %s3163_s21 }
 0x66c   : > { %p3165_p10 = pnand %p3164_p6, %p3837_p9 }
 0x66e   : > { %p3166_p12 = pneg %p3165_p10 }
 0x68c   : > { %1125 = vmax.xlane.f32.xlu1 %v1124_v25 }
 0x6e4   : > { %v1141_v27 = vpop.xlane.xlu1 %1140 }
 0x6e5   : > { %3105 = vrcp.f32 %v1141_v27 }
 0x6e8   : > { %v1545_v31 = vpop.permute.xlu1 %1544 }
 0x6ef   : > { %v3106_v28 = vpop.eup %3105 }
 0x6f0   : > { %v1145_v29 = vmul.f32 %v3106_v28, %v3104_v23 }
 0x6f2   : > { %2726 = vst.msk [vmem:[%s3522_s26 + $0x28] sm:$0xff] %vm639_vm2, %v1145_v29  ;;  %2889 = vmatmul.mubr.msk.f32.vlgmr.msra.gmra.mrb[10].mxu1 %vm639_vm2, %v1145_v29 }
 0x6f3   : > { %2902 = vmatpush3.xpose.msk.msra.mxu1 %vm639_vm2, %v1467_v26  ;;  %2903 = vmatprep.mubr.msk.f32.mxu1 %vm3267_vm1, %v3266_v36 }
 0x6f4   : > { %2906 = vmatprep.subr.mxu1 %v3266_v36 }
 0x6f6   : > { %2904 = vmatmul.mubr.msk.f32.vlgmr.msra.gmra.mrb[12].mxu1 %vm639_vm2, %v1465_v30 }
 0x6f7   : > { %2907 = vmatpush3.xpose.msk.msra.mxu1 %vm639_vm2, %v1545_v31  ;;  %2908 = vmatprep.mubr.msk.f32.mxu1 %vm3267_vm1, %v3266_v36 }
 0x6f8   : > { %2916 = vmatprep.subr.mxu1 %v3266_v36 }
 0x6fa   : > { %2909 = vmatmul.mubr.msk.f32.vlgmr.msra.gmra.mrb[14].mxu1 %vm639_vm2, %v1543_v32 }
 0x6fb   : > { %2918 = vmatprep.mubr.msk.f32.mxu1 %vm3267_vm1, %v3266_v36 }
 0x719   : > { %v1126_v33 = vpop.xlane.xlu1 %1125 }
 0x71a   : > { %v1130_v34 = vsub.f32 %v1042_v17, %v1126_v33 }
 0x71c   : > { %v1132_v35 = vmul.f32 1.442695, %v1130_v34 }
 0x71e   : > { %3107 = vpow2.f32 %v1132_v35 }
 0x728   : > { %v3108_v37 = vpop.eup %3107 }
 0x729   : > { %v1136_v38 = vsel %vm639_vm2, %v3108_v37, 0.0 }
 0x72a   : > { %1137 = vadd.xlane.f32.xlu0 %v1136_v38 }
 0x740   : > { %1149 = vrot.lane.b32.xlu0 %v3488_v41, %s3273_s25  ;;  %s3279_s25 = smov [#allocation6]  }
 0x741   : > { %s3167_s27 = sshll.u32 %s3279_s25, 4  ;;  %s3168_s27 = int_to_ptr.vmem [resolvable:$false] %s3167_s27 }
 0x742   : > { %s3169_s0 = scalar_lea.vmem %s3168_s27, 2048  ;;  %p3170_p2 = scmp.lt.s32.totalorder %s3711_s19, %s3168_s27 }
 0x743   : > { %p3171_p3 = scmp.lt.s32.totalorder %s3169_s0, %s3163_s21 }
 0x744   : > { %1721 = vrot.lane.b32.xlu0 %v3486_v39, %s3275_s15 }
 0x745   : > { %p3172_p4 = por %p3171_p3, %p3170_p2 }
 0x747   : > { %p3173_p7 = pnand %p3172_p4, %p3166_p12 }
 0x748   : > { %1883 = vrot.lane.b32.xlu0 %v3488_v41, %s3276_s22 }
 0x74c   : > { %1961 = vrot.lane.b32.xlu0 %v3486_v39, %s3276_s22 }
 0x750   : > { %1881 = vrot.lane.b32.xlu0 %v3488_v41, %s3277_s18 }
 0x7b7   : > { %v1138_v40 = vpop.xlane.xlu0 %1137 }
 0x7b8   : > { %3109 = vrcp.f32 %v1138_v40 }
 0x7bb   : > { %v1150_v42 = vpop.permute.xlu0 %1149 }
 0x7bc   : > { %2882 = vmatpush3.msra.mxu0 %v1150_v42 }
 0x7bd   : > { %2891 = vmatprep.subr.mxu0 %v1301_v54 }
 0x7bf   : > { %v1722_v43 = vpop.permute.xlu0 %1721 }
 0x7c0   : > { %2917 = vmatpush3.msra.mxu1 %v1722_v43 }
 0x7c1   : > { %2926 = vmatprep.subr.mxu1 %v3266_v36 }
 0x7c2   : > { %v3110_v44 = vpop.eup %3109 }
 0x7c3   : > { %v1143_v45 = vmul.f32 %v3110_v44, %v3108_v37  ;;  %v1884_v11 = vpop.permute.xlu0 %1883 }
 0x7c5   : > { %2725 = vst.msk [vmem:[%s3522_s26 + $0x8] sm:$0xff] %vm639_vm2, %v1143_v45  ;;  %2884 = vmatmul.mubr.msk.f32.vlgmr.msra.gmra.mrb[4].mxu0 %vm639_vm2, %v1143_v45  ;;  %v1297_v46 = vpop.f32.mrb[10].mxu1 }
 0x7c6   : > { %v2890_v47 = vpop.f32.mrb[11].mxu1  ;;  %2892 = vmatpush3.msra.mxu0 %v1301_v54 }
 0x7c7   : > { %2896 = vmatprep.subr.mxu0 %v967_v55  ;;  %v1962_v14 = vpop.permute.xlu0 %1961  ;;  %v2214_v47 = vld [vmem:[%s3803_s3 + $0x18] sm:$0xff] }
 0x7c9   : > { %v1538_v48 = vpop.f32.mrb[12].mxu1 }
 0x7ca   : > { %v2905_v49 = vpop.f32.mrb[13].mxu1  ;;  %v1620_v50 = vsel %vm639_vm2, %v1538_v48, -inf }
 0x7cb   : > { %1621 = vmax.xlane.f32.xlu1 %v1620_v50  ;;  %v1882_v16 = vpop.permute.xlu0 %1881 }
 0x7cd   : > { %v1616_v51 = vpop.f32.mrb[14].mxu1 }
 0x7ce   : > { %v2910_v52 = vpop.f32.mrb[15].mxu1  ;;  %v1623_v53 = vsel %vm639_vm2, %v1616_v51, -inf }
 0x7cf   : > { %1624 = vmax.xlane.f32.xlu1 %v1623_v53  ;;  %v2753_v52 = vld [vmem:[%s3804_s4] ss:$0 sm:$0xff] }
 0x858   : > { %v1622_v56 = vpop.xlane.xlu1 %1621 }
 0x859   : > { %v1626_v57 = vsub.f32 %v1538_v48, %v1622_v56 }
 0x85b   : > { %v1628_v58 = vmul.f32 1.442695, %v1626_v57 }
 0x85c   : > { %v1625_v59 = vpop.xlane.xlu1 %1624 }
 0x85d   : > { %3111 = vpow2.f32 %v1628_v58  ;;  %v1627_v60 = vsub.f32 %v1616_v51, %v1625_v59 }
 0x85f   : > { %v1630_v61 = vmul.f32 1.442695, %v1627_v60 }
 0x861   : > { %3113 = vpow2.f32 %v1630_v61 }
 0x867   : > { %v3112_v62 = vpop.eup %3111 }
 0x868   : > { %v1632_v63 = vsel %vm639_vm2, %v3112_v62, 0.0 }
 0x869   : > { %1633 = vadd.xlane.f32.xlu1 %v1632_v63 }
 0x86b   : > { %v3114_v2 = vpop.eup %3113 }
 0x86c   : > { %v1635_v3 = vsel %vm639_vm2, %v3114_v2, 0.0 }
 0x86d   : > { %1636 = vadd.xlane.f32.xlu1 %v1635_v3 }
 0x87e   : > { %1645 = vrot.lane.b32.xlu1 %v3488_v41, %s3275_s15  ;;  %s3278_s15 = smov 40  }
 0x882   : > { %1959 = vrot.lane.b32.xlu1 %v3486_v39, %s3277_s18 }
 0x898   : > { %v1221_v4 = vpop.f32.mrb[4].mxu0 }
 0x899   : > { %v2885_v5 = vpop.f32.mrb[5].mxu0  ;;  %2893 = vmatprep.mubr.msk.f32.mxu0 %vm639_vm2, %v1221_v4 }
 0x89a   : > { %2894 = vmatmul.mubr.msk.f32.vlgmr.msra.gmra.mrb[6].mxu0 %vm639_vm2, %v1297_v46 }
 0x89b   : > { %2898 = vmatprep.mubr.msk.f32.mxu0 %vm639_vm2, %v3551_v15  ;;  %2897 = vmatpush3.msra.mxu0 %v967_v55 }
 0x89c   : > { %2911 = vmatprep.subr.mxu0 %v3266_v36 }
 0x8a2   : > { %2899 = vmatmul.mubr.msk.f32.vlgmr.msra.gmra.mrb[6].mxu0 %vm639_vm2, %v3544_v10 }
 0x8a3   : > { %2913 = vmatprep.mubr.msk.f32.mxu0 %vm3267_vm1, %v3266_v36 }
 0x8f6   : > { %v1634_v6 = vpop.xlane.xlu1 %1633 }
 0x8f7   : > { %3115 = vrcp.f32 %v1634_v6  ;;  %v2353_v6 = vld [vmem:[#allocation2] sm:$0xff] }
 0x8fa   : > { %v1637_v7 = vpop.xlane.xlu1 %1636 }
 0x8fb   : > { %3117 = vrcp.f32 %v1637_v7  ;;  %v2354_v7 = vld [vmem:[#allocation2 + $0x8] sm:$0xff] }
 0x8fe   : > { %v1646_v9 = vpop.permute.xlu1 %1645 }
 0x8ff   : > { %2912 = vmatpush3.msra.mxu0 %v1646_v9  ;;  %v2355_v9 = vld [vmem:[#allocation2 + $0x10] sm:$0xff] }
 0x900   : > { %2921 = vmatprep.subr.mxu0 %v1797_v8 }
 0x901   : > { %v3116_v12 = vpop.eup %3115 }
 0x902   : > { %v1639_v13 = vmul.f32 %v3116_v12, %v3112_v62  ;;  %v1960_v21 = vpop.permute.xlu1 %1959 }
 0x904   : > { %2737 = vst.msk [vmem:[%s3522_s26 + $0x10] sm:$0xff] %vm639_vm2, %v1639_v13  ;;  %2914 = vmatmul.mubr.msk.f32.vlgmr.msra.gmra.mrb[8].mxu0 %vm639_vm2, %v1639_v13 }
 0x905   : > { %v3118_v10 = vpop.eup %3117  ;;  %2922 = vmatpush3.msra.mxu0 %v1797_v8  ;;  %v2989_v8 = vpack.c.bf16 %v2354_v7, %v2353_v6 }
 0x906   : > { %v1641_v15 = vmul.f32 %v3118_v10, %v3114_v2  ;;  %2931 = vmatprep.subr.mxu0 %v3266_v36 }
 0x908   : > { %2738 = vst.msk [vmem:[%s3522_s26 + $0x30] sm:$0xff] %vm639_vm2, %v1641_v15  ;;  %2919 = vmatmul.mubr.msk.f32.vlgmr.msra.gmra.mrb[16].mxu1 %vm639_vm2, %v1641_v15 }
 0x909   : > { %2927 = vmatpush3.xpose.msk.msra.mxu1 %vm639_vm2, %v1884_v11  ;;  %2928 = vmatprep.mubr.msk.f32.mxu1 %vm3267_vm1, %v3266_v36  ;;  %v2356_v11 = vld [vmem:[#allocation2 + $0x18] sm:$0xff] }
 0x90a   : > { %2936 = vmatprep.subr.mxu1 %v3266_v36  ;;  %v2993_v12 = vpack.c.bf16 %v2356_v11, %v2355_v9 }
 0x90c   : > { %2929 = vmatmul.mubr.msk.f32.vlgmr.msra.gmra.mrb[18].mxu1 %vm639_vm2, %v1882_v16 }
 0x90d   : > { %2938 = vmatprep.mubr.msk.f32.mxu1 %vm3267_vm1, %v3266_v36 }
 0x9d7   : > { %v1717_v17 = vpop.f32.mrb[8].mxu0 }
 0x9d8   : > { %v2915_v18 = vpop.f32.mrb[9].mxu0  ;;  %2923 = vmatprep.mubr.msk.f32.mxu0 %vm639_vm2, %v1717_v17 }
 0x9db   : > { %v1793_v19 = vpop.f32.mrb[16].mxu1 }
 0x9dc   : > { %v2920_v20 = vpop.f32.mrb[17].mxu1  ;;  %2924 = vmatmul.mubr.msk.f32.vlgmr.msra.gmra.mrb[6].mxu0 %vm639_vm2, %v1793_v19  ;;  %v2754_v19 = vld [vmem:[%s3807_s7] ss:$0 sm:$0xff] }
 0x9dd   : > { %2932 = vmatpush3.xpose.msk.msra.mxu0 %vm639_vm2, %v1962_v14  ;;  %2933 = vmatprep.mubr.msk.f32.mxu0 %vm3267_vm1, %v3266_v36 }
 0x9de   : > { %2941 = vmatprep.subr.mxu0 %v3266_v36 }
 0x9df   : > { %v1955_v22 = vpop.f32.mrb[18].mxu1 }
 0x9e0   : > { %v2930_v23 = vpop.f32.mrb[19].mxu1  ;;  %2934 = vmatmul.mubr.msk.f32.vlgmr.msra.gmra.mrb[10].mxu0 %vm639_vm2, %v1960_v21  ;;  %v2037_v24 = vsel %vm639_vm2, %v1955_v22, -inf }
 0x9e1   : > { %2038 = vmax.xlane.f32.xlu0 %v2037_v24  ;;  %2943 = vmatprep.mubr.msk.f32.mxu0 %vm3267_vm1, %v3266_v36  ;;  %v2755_v23 = vld [vmem:[%s3808_s8] ss:$0 sm:$0xff] }
 0xa6e   : > { %v2039_v25 = vpop.xlane.xlu0 %2038 }
 0xa6f   : > { %v2043_v26 = vsub.f32 %v1955_v22, %v2039_v25 }
 0xa71   : > { %v2045_v27 = vmul.f32 1.442695, %v2043_v26 }
 0xa73   : > { %3119 = vpow2.f32 %v2045_v27 }
 0xa7d   : > { %v3120_v28 = vpop.eup %3119 }
 0xa7e   : > { %v2049_v29 = vsel %vm639_vm2, %v3120_v28, 0.0 }
 0xa7f   : > { %2050 = vadd.xlane.f32.xlu0 %v2049_v29  ;;  %v2456_v29 = vld [vmem:[%s3811_s11 + $0x8] sm:$0xff] }
 0xab3   : > { %v2033_v30 = vpop.f32.mrb[10].mxu0 }
 0xab4   : > { %v2935_v31 = vpop.f32.mrb[11].mxu0  ;;  %v2040_v32 = vsel %vm639_vm2, %v2033_v30, -inf }
 0xab5   : > { %2041 = vmax.xlane.f32.xlu1 %v2040_v32  ;;  %v2457_v31 = vld [vmem:[%s3811_s11 + $0x10] sm:$0xff]  ;;  %v2458_v32 = vld [vmem:[%s3811_s11 + $0x18] sm:$0xff] }
 0xac6   : > { %2138 = vrot.lane.b32.xlu1 %v3486_v39, %s3278_s15 }
 0xb0c   : > { %v2051_v33 = vpop.xlane.xlu0 %2050 }
 0xb0d   : > { %3121 = vrcp.f32 %v2051_v33  ;;  %v3001_v33 = vpack.c.bf16 %v2458_v32, %v2457_v31 }
 0xb17   : > { %v3122_v36 = vpop.eup %3121 }
 0xb18   : > { %v2056_v34 = vmul.f32 %v3122_v36, %v3120_v28  ;;  %v2455_v28 = vld [vmem:[%s3811_s11] sm:$0xff] }
 0xb19   : > { %v2459_v36 = vld [vmem:[%s3811_s11 + $0x20] sm:$0xff] }
 0xb1a   : > { %2747 = vst.msk [vmem:[%s3522_s26 + $0x18] sm:$0xff] %vm639_vm2, %v2056_v34 }
 0xb42   : > { %v2042_v35 = vpop.xlane.xlu1 %2041 }
 0xb43   : > { %v2044_v37 = vsub.f32 %v2033_v30, %v2042_v35  ;;  %v2997_v30 = vpack.c.bf16 %v2456_v29, %v2455_v28 }
 0xb45   : > { %v2047_v38 = vmul.f32 1.442695, %v2044_v37  ;;  %v2461_v37 = vld [vmem:[%s3811_s11 + $0x30] sm:$0xff] }
 0xb46   : > { %v2139_v40 = vpop.permute.xlu1 %2138 }
 0xb47   : > { %3123 = vpow2.f32 %v2047_v38  ;;  %2942 = vmatpush3.msra.mxu0 %v2139_v40  ;;  %v2462_v38 = vld [vmem:[%s3811_s11 + $0x38] sm:$0xff] }
 0xb48   : > { %2946 = vmatprep.subr.mxu0 %v2214_v47  ;;  %v3009_v40 = vpack.c.bf16 %v2462_v38, %v2461_v37 }
 0xb51   : > { %v3124_v42 = vpop.eup %3123 }
 0xb52   : > { %v2052_v43 = vsel %vm639_vm2, %v3124_v42, 0.0 }
 0xb53   : > { %2053 = vadd.xlane.f32.xlu0 %v2052_v43 }
 0xb69   : > { %2062 = vrot.lane.b32.xlu0 %v3488_v41, %s3278_s15  ;;  %s2773_s15 = sshll.u32 %s3379_s17, 10 }
 0xb6a   : > { %s3708_s20 = scalar_lea.hbm %s3814_s14, %s2773_s15 }
 0xbe0   : > { %v2054_v39 = vpop.xlane.xlu0 %2053 }
 0xbe1   : > { %3125 = vrcp.f32 %v2054_v39 }
 0xbe4   : > { %v2063_v44 = vpop.permute.xlu0 %2062 }
 0xbe5   : > { %2937 = vmatpush3.msra.mxu1 %v2063_v44 }
 0xbe6   : > { %2939 = vmatmul.mubr.msk.f32.vlgmr.msra.gmra.mrb[20].mxu1 %vm639_vm2, %v2056_v34  ;;  %2990 = vmatprep.subr.bf16.mxu1 %v2989_v8  ;;  %v2460_v34 = vld [vmem:[%s3811_s11 + $0x28] sm:$0xff] }
 0xbe7   : > { %2992 = vmatpush3.bf16.msra.mxu1 %v2989_v8  ;;  %v3005_v35 = vpack.c.bf16 %v2460_v34, %v2459_v36 }
 0xbe8   : > { %2994 = vmatprep.subr.bf16.mxu1 %v2993_v12 }
 0xbeb   : > { %v3126_v45 = vpop.eup %3125  ;;  %2996 = vmatpush3.bf16.msra.mxu1 %v2993_v12 }
 0xbec   : > { %v2058_v46 = vmul.f32 %v3126_v45, %v3124_v42  ;;  %v2756_v42 = vld [vmem:[%s3810_s10] ss:$0 sm:$0xff] }
 0xbee   : > { %2748 = vst.msk [vmem:[%s3522_s26 + $0x38] sm:$0xff] %vm639_vm2, %v2058_v46  ;;  %2944 = vmatmul.mubr.msk.f32.vlgmr.msra.gmra.mrb[12].mxu0 %vm639_vm2, %v2058_v46 }
 0xbef   : > { %2947 = vmatpush3.msra.mxu0 %v2214_v47 }
 0xbf0   : > { %2998 = vmatprep.subr.bf16.mxu0 %v2997_v30 }
 0xcb9   : > { %v2134_v48 = vpop.f32.mrb[20].mxu1 }
 0xcba   : > { %v2940_v41 = vpop.f32.mrb[21].mxu1  ;;  %2948 = vmatprep.mubr.msk.f32.mxu0 %vm639_vm2, %v2134_v48 }
 0xcc1   : > { %v2210_v49 = vpop.f32.mrb[12].mxu0 }
 0xcc2   : > { %v2945_v50 = vpop.f32.mrb[13].mxu0  ;;  %2949 = vmatmul.mubr.msk.f32.vlgmr.msra.gmra.mrb[6].mxu0 %vm639_vm2, %v2210_v49 }
 0xcc3   : > { %3000 = vmatpush3.bf16.msra.mxu0 %v2997_v30 }
 0xcc4   : > { %3002 = vmatprep.subr.bf16.mxu0 %v3001_v33 }
 0xcc7   : > { %3004 = vmatpush3.bf16.msra.mxu0 %v3001_v33 }
 0xcc8   : > { %3006 = vmatprep.subr.bf16.mxu0 %v3005_v35 }
 0xccb   : > { %3008 = vmatpush3.bf16.msra.mxu0 %v3005_v35 }
 0xccc   : > { %3010 = vmatprep.subr.bf16.mxu0 %v3009_v40 }
 0xccf   : > { %3012 = vmatpush3.bf16.msra.mxu0 %v3009_v40 }
 0xd95   : > { %v2950_v51 = vpop.f32.mrb[6].mxu0 }
 0xd96   : > { %v2299_v53 = vadd.f32 %v2950_v51, %v3447_v1  ;;  %v2287_v54 = vpop.f32.mrb[7].mxu0 }
 0xd97   : > { %v2298_v55 = vadd.f32 %v2287_v54, %v3445_v0 }
 0xd98   : > { %v3657_v56 = vadd.f32 %v2753_v52, %v2299_v53 }
 0xd99   : > { %v3659_v57 = vadd.f32 %v2753_v52, %v2298_v55 }
 0xd9a   : > { %v2314_v58 = vsel %vm500_vm0, %v3657_v56, 0.0 }
 0xd9b   : > { %2315 = vadd.xlane.f32.xlu0 %v2314_v58  ;;  %v2311_v59 = vsel %vm500_vm0, %v3659_v57, 0.0 }
 0xd9c   : > { %2312 = vadd.xlane.f32.xlu1 %v2311_v59 }
 0xe28   : > { %v2316_v60 = vpop.xlane.xlu0 %2315 }
 0xe29   : > { %v2318_v61 = vmul.f32 0.03125, %v2316_v60  ;;  %v2313_v62 = vpop.xlane.xlu1 %2312 }
 0xe2a   : > { %v2317_v63 = vmul.f32 0.03125, %v2313_v62 }
 0xe2b   : > { %v2320_v1 = vsub.f32 %v3657_v56, %v2318_v61 }
 0xe2c   : > { %v2319_v0 = vsub.f32 %v3659_v57, %v2317_v63 }
 0xe2d   : > { %v2322_v2 = vmul.f32 %v2320_v1, %v2320_v1 }
 0xe2e   : > { %v2321_v3 = vmul.f32 %v2319_v0, %v2319_v0 }
 0xe2f   : > { %v2326_v4 = vsel %vm500_vm0, %v2322_v2, 0.0 }
 0xe30   : > { %2327 = vadd.xlane.f32.xlu1 %v2326_v4  ;;  %v2323_v5 = vsel %vm500_vm0, %v2321_v3, 0.0 }
 0xe31   : > { %2324 = vadd.xlane.f32.xlu0 %v2323_v5 }
 0xebd   : > { %v2328_v13 = vpop.xlane.xlu1 %2327 }
 0xebe   : > { %v2330_v10 = vmul.f32 0.03125, %v2328_v13  ;;  %v2325_v14 = vpop.xlane.xlu0 %2324 }
 0xebf   : > { %v2329_v15 = vmul.f32 0.03125, %v2325_v14 }
 0xec0   : > { %v2332_v16 = vadd.f32 1e-05, %v2330_v10 }
 0xec1   : > { %v2331_v17 = vadd.f32 1e-05, %v2329_v15 }
 0xec2   : > { %3127 = vrsqrt.f32 %v2332_v16 }
 0xec3   : > { %3129 = vrsqrt.f32 %v2331_v17 }
 0xecc   : > { %v3128_v18 = vpop.eup %3127 }
 0xecd   : > { %v3130_v20 = vpop.eup %3129  ;;  %v2336_v21 = vmul.f32 %v3128_v18, %v2320_v1 }
 0xece   : > { %v2335_v22 = vmul.f32 %v3130_v20, %v2319_v0 }
 0xecf   : > { %v2344_v24 = vmul.f32 %v2754_v19, %v2336_v21 }
 0xed0   : > { %v2343_v25 = vmul.f32 %v2754_v19, %v2335_v22 }
 0xed1   : > { %v2352_v27 = vadd.f32 %v2755_v23, %v2344_v24 }
 0xed2   : > { %v2351_v26 = vadd.f32 %v2755_v23, %v2343_v25 }
 0xed4   : > { %2959 = vmatprep.mubr.msk.f32.mxu1 %vm500_vm0, %v2351_v26 }
 0xed5   : > { %2960 = vmatmul.mubr.msk.f32.vlgmr.msra.gmra.mrb[22].mxu1 %vm500_vm0, %v2352_v27 }
 0xfa8   : > { %v2961_v43 = vpop.f32.mrb[22].mxu1 }
 0xfa9   : > { %v2442_v39 = vadd.f32 %v2961_v43, %v2756_v42  ;;  %v2436_v44 = vpop.f32.mrb[23].mxu1 }
 0xfaa   : > { %v2437_v45 = vadd.f32 %v2756_v42, %v2436_v44 }
 0xfab   : > { %v2448_v46 = vmul.f32 0.70710677, %v2442_v39  ;;  %v2446_v52 = vmul.f32 0.5, %v2442_v39 }
 0xfac   : > { %v2447_v47 = vmul.f32 0.70710677, %v2437_v45  ;;  %v2445_v50 = vmul.f32 0.5, %v2437_v45 }
 0xfad   : > { %3131 = verf.f32 %v2448_v46 }
 0xfae   : > { %3133 = verf.f32 %v2447_v47 }
 0xfb7   : > { %v3132_v48 = vpop.eup %3131 }
 0xfb8   : > { %v3134_v41 = vpop.eup %3133  ;;  %v2452_v49 = vadd.f32 1.0, %v3132_v48 }
 0xfb9   : > { %v2451_v51 = vadd.f32 1.0, %v3134_v41 }
 0xfba   : > { %v2454_v54 = vmul.f32 %v2452_v49, %v2446_v52 }
 0xfbb   : > { %v2453_v53 = vmul.f32 %v2451_v51, %v2445_v50 }
 0xfbd   : > { %2978 = vmatprep.mubr.msk.f32.mxu0 %vm2463_vm3, %v2453_v53 }
 0xfbe   : > { %2979 = vmatmul.mubr.msk.f32.vlgmr.msra.gmra.mrb[14].mxu0 %vm2463_vm3, %v2454_v54 }
 0xfbf   : > { %3176 = shalt.err (!%p3173_p7)
}
 0xfc0   : > { %s3177_s26 = scalar_lea.hbm %s3708_s20, 1024  ;;  %s3181_s18 = scalar_lea.hbm %s3814_s14, 2048 }
 0xfc1   : > { %p3178_p8 = scmp.ne.s32.totalorder %s3708_s20, %s3177_s26  ;;  %p3182_p1 = scmp.lt.u32.totalorder %s3708_s20, %s3814_s14 }
 0xfc2   : > { %p3183_p0 = scmp.lt.u32.totalorder %s3181_s18, %s3177_s26  ;;  %p3185_p6 = scmp.lt.u32.totalorder %s3177_s26, %s3708_s20 }
 0xfc3   : > { %p3179_p11 = pnand %p3178_p8, %p3837_p9 }
 0xfc4   : > { %p3184_p5 = por %p3183_p0, %p3182_p1 }
 0xfc5   : > { %p3180_p13 = pneg %p3179_p11 }
 0xfc6   : > { %p3186_p10 = por %p3185_p6, %p3184_p5 }
 0xfc8   : > { %p3187_p12 = pnand %p3186_p10, %p3180_p13 }
 0xfca   : > { %3190 = shalt.err (!%p3187_p12)
}
 0xfcb   : > { %s3280_s0 = smov 128   ;;  %s3281_s21 = smov 8   ;;  %v2761_v58 = vld [vmem:[%s3812_s12] ss:$0 sm:$0xff] }
 0xfcc   : > { %3024 = dma.vmem_to_hbm [thread:$0]  (%p3837_p9), %s3711_s19, 1024, %s3708_s20, %s2564_s24, %s3280_s0, %s3280_s0, %s3281_s21  }
 0xfcd   : > { %s2706_s15 = sshll.u32 %s3517_s28, 4  ;;  %s2771_s18 = sshll.u32 %s3379_s17, 8 }
 0xfce   : > { %s480_s25 = scalar_lea.vmem [#allocation5], %s2706_s15  ;;  %s3750_s19 = scalar_lea.hbm %s3813_s13, %s2771_s18 }
 0xfcf   : > { %s2577_s27 = sshll.u32 %s480_s25, 4  ;;  %s2559_s17 = scalar_lea.sflag [#allocation4], %s3517_s28  ;;  %s3752_s27 = int_to_ptr.vmem [resolvable:$true] %s2577_s27 }
 0xfd0   : > { %s3191_s24 = scalar_lea.vmem %s3752_s27, 256  ;;  %s3282_s15 = smov [#allocation5]  }
 0xfd1   : > { %p3192_p2 = scmp.ne.s32.totalorder %s3752_s27, %s3191_s24  ;;  %s3195_s26 = sshll.u32 %s3282_s15, 4  ;;  %s3196_s26 = int_to_ptr.vmem [resolvable:$false] %s3195_s26 }
 0xfd2   : > { %s3197_s1 = scalar_lea.vmem %s3196_s26, 512  ;;  %p3198_p7 = scmp.lt.s32.totalorder %s3752_s27, %s3196_s26 }
 0xfd3   : > { %p3193_p3 = pnand %p3192_p2, %p3837_p9  ;;  %p3199_p8 = scmp.lt.s32.totalorder %s3197_s1, %s3191_s24 }
 0xfd5   : > { %p3194_p4 = pneg %p3193_p3  ;;  %p3200_p11 = por %p3199_p8, %p3198_p7 }
 0xfd7   : > { %p3201_p13 = pnand %p3200_p11, %p3194_p4 }
0x1091   : > { %v2980_v55 = vpop.f32.mrb[14].mxu0 }
0x1092   : > { %v2546_v59 = vadd.f32 %v2980_v55, %v3657_v56  ;;  %v2536_v60 = vpop.f32.mrb[15].mxu0 }
0x1093   : > { %v2545_v61 = vadd.f32 %v2536_v60, %v3659_v57 }
0x1094   : > { %v2555_v62 = vadd.f32 %v2761_v58, %v2546_v59 }
0x1095   : > { %v2554_v63 = vadd.f32 %v2761_v58, %v2545_v61 }
0x1096   : > { %2557 = vst.msk [vmem:[%s480_s25 + $0x8] sm:$0xff] %vm500_vm0, %v2555_v62 }
0x1097   : > { %2556 = vst.msk [vmem:[%s480_s25] sm:$0xff] %vm500_vm0, %v2554_v63 }
0x1098   : > { %3204 = shalt.err (!%p3201_p13)
}
0x1099   : > { %s3205_s22 = scalar_lea.hbm %s3750_s19, 256  ;;  %s3209_s20 = scalar_lea.hbm %s3813_s13, 512 }
0x109a   : > { %p3206_p1 = scmp.ne.s32.totalorder %s3750_s19, %s3205_s22  ;;  %p3210_p6 = scmp.lt.u32.totalorder %s3750_s19, %s3813_s13 }
0x109b   : > { %p3211_p10 = scmp.lt.u32.totalorder %s3209_s20, %s3205_s22  ;;  %p3213_p2 = scmp.lt.u32.totalorder %s3205_s22, %s3750_s19 }
0x109c   : > { %p3207_p0 = pnand %p3206_p1, %p3837_p9 }
0x109d   : > { %p3212_p12 = por %p3211_p10, %p3210_p6 }
0x109e   : > { %p3208_p5 = pneg %p3207_p0 }
0x109f   : > { %p3214_p3 = por %p3213_p2, %p3212_p12 }
0x10a1   : > { %p3215_p4 = pnand %p3214_p3, %p3208_p5 }
0x10a3   : > { %3218 = shalt.err (!%p3215_p4)
}
0x10a4   : > { %3023 = dma.vmem_to_hbm [thread:$0]  (%p3837_p9), %s3752_s27, 256, %s3750_s19, %s2559_s17, %s3280_s0, %s3280_s0, %s3281_s21  }
0x10a5 PF: > { %s3838_s24 = sld [smem:[#allocation14_spill]]  ;;  %p3040_p7 = scmp.ge.s32.totalorder %s3261_s16, 2 }
0x10a6   : > { %s2609_s1 = sand.u32 1, %s3249_s29  }
0x10a7   : > { %s2610_s22 = scalar_lea.sflag [#allocation4], %s2609_s1 }
0x10ab   : > { %p3839_p8 = scmp.ne.s32.totalorder %s3838_s24, 0 }
0x10ad   : > { %p3032_p11 = pnand %p3040_p7, %p3839_p8 }
0x10af   : > { %3240 = dma.done.wait (!%p3032_p11), %s2610_s22, 256  }
0x10b0   : > { %3242 = vsyncadd (!%p3032_p11), %s2610_s22, 4294967040  ;;  %s2619_s23 = scalar_lea.sflag [#allocation7], %s2609_s1 }
0x10b1   : > { %3244 = dma.done.wait (!%p3032_p11), %s2619_s23, 1024  }
0x10b2   : > { %3246 = vsyncadd (!%p3032_p11), %s2619_s23, 4294966272  ;;  %s3840_s16 = sld [smem:[#allocation12_spill]]  ;;  %s3841_s28 = sld [smem:[#allocation11_spill]] }
0x10b3   : > { %s3842_s15 = sld [smem:[#allocation13_spill]]  ;;  %s3843_s29 = smov %s3253_s30 }
0x10b8   : > { %p29_p9 = scmp.ge.s32.totalorder %s3840_s16, 4   ;;  %s3844_s30 = smov %s3841_s28 }
0x10ba   :  { %31 = sbr.rel (!%p29_p9) target bundleno = 9 (0x9), region = 132 }
0x10c1   :  { %2624 = vsyncpa [#allocation3], 1 }
0x10c2   :  { %2626 = vsyncpa [#allocation3 + $0x1], 1 }
0x10c3   :  { %2627 = vsyncpa [#allocation4], 1 }
0x10c4   :  { %2629 = vsyncpa [#allocation4 + $0x1], 1 }
0x10c5   :  { %2630 = vsyncpa [#allocation7], 1 }
0x10c6   :  { %2632 = vsyncpa [#allocation7 + $0x1], 1 }

</bundles_post_ra>
